<compile_context>
chip_gen: v6e
topology: v6e:2x2x1
jax: 0.10.0
libtpu: 0.0.40
codegen_flags: <defaults>
</compile_context>

<pallas_src>
import math
import numpy as np
import jax
import jax.numpy as jnp
from jax.experimental import pallas as pl
from jax.experimental.pallas import tpu as pltpu

MASKING_VALUE = 999.0

# ---- model config (conv1 out-channels & PositionalEncoding are hard-coded
#      to 128 in the module, so emb_dim must be 128) -------------------------
D_MODEL = 16          # input feature channels
EMB = 128             # emb_dim
FF = 256              # ff_dim
HEADS = 4             # num_heads
LAYERS = 2            # num_layers
NUM_CLASSES = 5       # fc_output head exists but is unused while pretraining
HEAD_DIM = EMB // HEADS
SCALE = 1.0 / math.sqrt(HEAD_DIM)
LN_EPS = 1e-5


def _ln(x, g, b):
    # single-pass LayerNorm: var = E[x^2] - E[x]^2 halves the dependent
    # cross-lane reductions (frees XLU slots for the attention max/sum).
    mu = jnp.mean(x, axis=-1, keepdims=True)
    var = jnp.mean(x * x, axis=-1, keepdims=True) - mu * mu
    return (x - mu) * jax.lax.rsqrt(var + LN_EPS) * g + b


def _dot_f32(a_bf, w_bf):
    # bf16 operands, f32 accumulate: single-pass native MXU path.
    return jnp.dot(a_bf, w_bf, preferred_element_type=jnp.float32)


# ---------------------------------------------------------------------------
# Pallas kernel: whole encoder forward for bb batch elements per grid step.
# ---------------------------------------------------------------------------
def seq2seq_kernel(x_ref, maskb_ref, pe_ref,
                   wemb_ref, bemb_ref,
                   wqkv_ref, bqkv_ref, wo_ref, bo_ref,
                   ln1g_ref, ln1b_ref,
                   wff1_ref, bff1_ref, wff2_ref, bff2_ref,
                   ln2g_ref, ln2b_ref,
                   o_ref, qkv_s):
    bb, T, _ = x_ref.shape
    rows = bb * T
    bf = jnp.bfloat16

    x2 = x_ref[...].reshape(rows, D_MODEL)
    # hoisted once: key-padding bias broadcast to [bb, T, T] (reused by every head/layer)
    mask_b = jnp.broadcast_to(maskb_ref[...], (bb, T, T))

    # Conv2d(1, 128, (d_model, 1)) == per-timestep linear D_MODEL -> EMB
    h = _dot_f32(x2.astype(bf), wemb_ref[...]) + bemb_ref[...]          # [rows, EMB] f32
    # PositionalEncoding exactly as the module calls it: pe indexed by batch,
    # broadcast over time (faithful to the pre-permute call order).
    h = (h.reshape(bb, T, EMB) + pe_ref[...]).reshape(rows, EMB)
    # TODO(synk): dropout (p=0.1) layers are identity here (eval-mode semantics).

    for l in range(LAYERS):
        # ---- fused full-width QKV projection: one [rows,128]@[128,384] MXU dot
        qkv = _dot_f32(h.astype(bf), wqkv_ref[l]) + bqkv_ref[l]         # [rows, 3E] f32
        # One lane-dense (3*128-wide) bf16 scratch store; the per-head q/k/v
        # slabs come back as cheap sliced VMEM loads (bf16 cast hoisted here).
        qkv_s[...] = qkv.reshape(bb, T, 3 * EMB).astype(bf)

        # ---- multi-head attention; head outputs accumulate straight into the
        #      out-projection (lane-dense f32 register accumulation, no concat,
        #      no masked 32-lane stores)
        attn = jnp.zeros((rows, EMB), jnp.float32)
        for hh in range(HEADS):
            lo = hh * HEAD_DIM
            qh = qkv_s[:, :, lo:lo + HEAD_DIM]                          # [bb,T,32] bf16
            kh = qkv_s[:, :, EMB + lo:EMB + lo + HEAD_DIM]
            vh = qkv_s[:, :, 2 * EMB + lo:2 * EMB + lo + HEAD_DIM]

            s = jnp.einsum("bqd,bkd->bqk", qh, kh,
                           preferred_element_type=jnp.float32) * SCALE
            s = s + mask_b                                              # key padding mask
            s = s - jnp.max(s, axis=-1, keepdims=True)
            p = jnp.exp(s)
            p = p * pl.reciprocal(jnp.sum(p, axis=-1, keepdims=True), approx=True)
            oh = jnp.einsum("bqk,bkd->bqd", p.astype(bf), vh,
                            preferred_element_type=jnp.float32)         # [bb,T,32] f32
            # attn += oh @ Wo[head rows]  (concat-free head merge)
            attn = attn + _dot_f32(oh.reshape(rows, HEAD_DIM).astype(bf),
                                   wo_ref[l, hh])
        attn = attn + bo_ref[l]

        h = _ln(h + attn, ln1g_ref[l], ln1b_ref[l])                     # post-norm

        # ---- feed-forward
        f = _dot_f32(h.astype(bf), wff1_ref[l]) + bff1_ref[l]
        f = jnp.maximum(f, 0.0)                                         # ReLU
        f = _dot_f32(f.astype(bf), wff2_ref[l]) + bff2_ref[l]
        h = _ln(h + f, ln2g_ref[l], ln2b_ref[l])

    # Lane-dense bf16 output (last dim = 128) halves HBM writeback; the
    # EMB -> D_MODEL translation head runs in the wrapper.
    o_ref[...] = h.reshape(bb, T, EMB).astype(jnp.bfloat16)
    # TODO(synk): sequences approaching max_len=5000 need flash-style key
    # tiling of the [T, T] score block (would overflow VMEM as written).


# ---------------------------------------------------------------------------
# Wrapper
# ---------------------------------------------------------------------------
def run_pallas(x, mask_bias, pe_b, P):
    B, T, _ = x.shape

    # Large blocks (target ~1024 fused rows per grid step) amortize the
    # ~0.35 us per-step pipeline overhead; keep >= 2 grid blocks whenever
    # B >= 2 so v7x's two TensorCores both get work.
    target_rows = 1024
    bb = max(1, min(B, target_rows // max(T, 1)))
    if B >= 2:
        bb = min(bb, (B + 1) // 2)
    n_blk = -(-B // bb)
    Bp = n_blk * bb
    if Bp != B:
        pad = Bp - B
        x = jnp.concatenate([x, jnp.zeros((pad, T, D_MODEL), x.dtype)], axis=0)
        mask_bias = jnp.concatenate(
            [mask_bias, jnp.zeros((pad, 1, T), mask_bias.dtype)], axis=0)
        pe_b = jnp.concatenate([pe_b, jnp.zeros((pad, 1, EMB), pe_b.dtype)], axis=0)

    bf = jnp.bfloat16

    # Fused QKV weight/bias: [L, E, 3E] / [L, 1, 3E]  (one full-width dot/layer).
    wqkv = jnp.concatenate([P["Wq"], P["Wk"], P["Wv"]], axis=-1).astype(bf)
    bqkv = jnp.concatenate([P["bq"], P["bk"], P["bv"]], axis=-1)
    # Out-projection split by head ROWS: [L, H, Hd, E] (last dim stays 128,
    # so no VMEM lane padding).
    wo = P["Wo"].reshape(LAYERS, HEADS, HEAD_DIM, EMB).astype(bf)

    # Matmul weights pre-cast to bf16 host-side (halves weight DMA); biases
    # and LayerNorm params stay f32 (added on the f32 accumulate path).
    weights = [
        P["W_emb"].astype(bf), P["b_emb"],
        wqkv, bqkv, wo, P["bo"],
        P["ln1g"], P["ln1b"],
        P["Wff1"].astype(bf), P["bff1"],
        P["Wff2"].astype(bf), P["bff2"],
        P["ln2g"], P["ln2b"],
    ]

    def full_spec(arr):
        # TODO(synk): pipeline_mode=pl.Buffered(1) would single-buffer these
        # grid-invariant weights; skipped to keep lowering conservative.
        nd = arr.ndim
        return pl.BlockSpec(arr.shape, lambda b, _nd=nd: (0,) * _nd)

    in_specs = (
        [pl.BlockSpec((bb, T, D_MODEL), lambda b: (b, 0, 0)),   # x
         pl.BlockSpec((bb, 1, T), lambda b: (b, 0, 0)),          # mask bias
         pl.BlockSpec((bb, 1, EMB), lambda b: (b, 0, 0))]        # pe per batch row
        + [full_spec(w) for w in weights]
    )

    hid = pl.pallas_call(
        seq2seq_kernel,
        out_shape=jax.ShapeDtypeStruct((Bp, T, EMB), jnp.bfloat16),
        grid=(n_blk,),
        in_specs=in_specs,
        out_specs=pl.BlockSpec((bb, T, EMB), lambda b: (b, 0, 0)),
        scratch_shapes=[pltpu.VMEM((bb, T, 3 * EMB), jnp.bfloat16)],
        compiler_params=pltpu.CompilerParams(
            dimension_semantics=("parallel",),
            vmem_limit_bytes=32 * 1024 * 1024),
    )(x, mask_bias, pe_b, *weights)

    # fc_translation (pretraining=True head) outside the kernel so the kernel's
    # stores stay lane-dense (128-wide bf16 instead of 16-wide f32).
    return hid[:B].astype(jnp.float32) @ P["W_out"] + P["b_out"]


# ---------------------------------------------------------------------------
# Pure-JAX reference (same math, for validation)
# ---------------------------------------------------------------------------
def reference(x, mask_bias, pe_b, P):
    B, T, _ = x.shape
    h = x @ P["W_emb"] + P["b_emb"]
    h = h + pe_b
    for l in range(LAYERS):
        q = h @ P["Wq"][l] + P["bq"][l]
        k = h @ P["Wk"][l] + P["bk"][l]
        v = h @ P["Wv"][l] + P["bv"][l]
        qh = q.reshape(B, T, HEADS, HEAD_DIM).transpose(0, 2, 1, 3)
        kh = k.reshape(B, T, HEADS, HEAD_DIM).transpose(0, 2, 1, 3)
        vh = v.reshape(B, T, HEADS, HEAD_DIM).transpose(0, 2, 1, 3)
        s = jnp.einsum("bhqd,bhkd->bhqk", qh, kh) * SCALE
        s = s + mask_bias[:, :, None, :]
        p = jax.nn.softmax(s, axis=-1)
        o = jnp.einsum("bhqk,bhkd->bhqd", p, vh).transpose(0, 2, 1, 3).reshape(B, T, EMB)
        o = o @ P["Wo"][l] + P["bo"][l]
        h = _ln(h + o, P["ln1g"][l], P["ln1b"][l])
        f = jax.nn.relu(h @ P["Wff1"][l] + P["bff1"][l]) @ P["Wff2"][l] + P["bff2"][l]
        h = _ln(h + f, P["ln2g"][l], P["ln2b"][l])
    return h @ P["W_out"] + P["b_out"]


# ---------------------------------------------------------------------------
# Deterministic parameter construction
# ---------------------------------------------------------------------------
def make_params(key):
    ks = iter(jax.random.split(key, 40))

    def nrm(shape, scale=0.05):
        return jax.random.normal(next(ks), shape, dtype=jnp.float32) * scale

    P = {
        # conv1 weight [128,1,d_model,1] reshaped/transposed to [d_model,128]
        "W_emb": nrm((D_MODEL, EMB)), "b_emb": nrm((1, EMB), 0.01),
        "Wq": nrm((LAYERS, EMB, EMB)), "bq": nrm((LAYERS, 1, EMB), 0.01),
        "Wk": nrm((LAYERS, EMB, EMB)), "bk": nrm((LAYERS, 1, EMB), 0.01),
        "Wv": nrm((LAYERS, EMB, EMB)), "bv": nrm((LAYERS, 1, EMB), 0.01),
        "Wo": nrm((LAYERS, EMB, EMB)), "bo": nrm((LAYERS, 1, EMB), 0.01),
        "ln1g": jnp.ones((LAYERS, 1, EMB), jnp.float32),
        "ln1b": jnp.zeros((LAYERS, 1, EMB), jnp.float32),
        "Wff1": nrm((LAYERS, EMB, FF)), "bff1": nrm((LAYERS, 1, FF), 0.01),
        "Wff2": nrm((LAYERS, FF, EMB)), "bff2": nrm((LAYERS, 1, EMB), 0.01),
        "ln2g": jnp.ones((LAYERS, 1, EMB), jnp.float32),
        "ln2b": jnp.zeros((LAYERS, 1, EMB), jnp.float32),
        "W_out": nrm((EMB, D_MODEL)), "b_out": nrm((1, D_MODEL), 0.01),
    }
    return P


def make_positional_encoding(max_len=5000):
    position = jnp.arange(max_len, dtype=jnp.float32)[:, None]
    div_term = jnp.exp(jnp.arange(0, EMB, 2, dtype=jnp.float32)
                       * (-math.log(10000.0) / EMB))
    pe = jnp.zeros((max_len, EMB), jnp.float32)
    pe = pe.at[:, 0::2].set(jnp.sin(position * div_term))
    pe = pe.at[:, 1::2].set(jnp.cos(position * div_term))
    return pe


# ---------------------------------------------------------------------------
if __name__ == "__main__":
    key = jax.random.PRNGKey(0)
    k_x, k_p = jax.random.split(key)

    B, SEQ = 2, 16
    x_full = jax.random.normal(k_x, (B, SEQ, D_MODEL), jnp.float32)
    # padding tails marked with MASKING_VALUE (batch 0 from t=8, batch 1 from t=6)
    x_full = x_full.at[0, 8:, :].set(MASKING_VALUE)
    x_full = x_full.at[1, 6:, :].set(MASKING_VALUE)

    # ---- host-side glue reproducing the dynamic truncation ----------------
    # TODO(synk): the .item()-based dynamic length truncation is data-dependent
    # host logic, kept outside the kernel.
    x_np = np.asarray(x_full)
    mask_full = np.all(x_np == MASKING_VALUE, axis=2)                 # [B, SEQ]
    first_true = mask_full.astype(np.float32).argmax(axis=1)          # first pad idx
    max_idx = int(first_true.max())                                   # == 8 here
    x_sl = jnp.asarray(x_np[:, :max_idx, :])                          # [B, T, D]
    mask_sl = jnp.asarray(mask_full[:, :max_idx])                     # [B, T] bool
    mask_bias = jnp.where(mask_sl, -1e9, 0.0).astype(jnp.float32)[:, None, :]  # [B,1,T]

    pe = make_positional_encoding()
    pe_b = pe[:B][:, None, :]                                         # [B, 1, EMB]

    P = make_params(k_p)

    out = run_pallas(x_sl, mask_bias, pe_b, P)
    out = jax.block_until_ready(out)

    ref = reference(x_sl, mask_bias, pe_b, P)
    assert out.shape == (B, max_idx, D_MODEL)
    err = jnp.abs(out - ref)
    tol = 5e-2 + 5e-2 * jnp.abs(ref)
    max_err = float(jnp.max(err))
    assert bool(jnp.all(err <= tol)), f"mismatch vs reference: max abs err {max_err}"

    print("KERNEL_OK")
</pallas_src>

<mosaic_0001>
module attributes {stable_mosaic.version = 11 : i64} {
  func.func @seq2seq_kernel(%arg0: i32, %arg1: memref<1x8x16xf32, #tpu.memory_space<vmem>>, %arg2: memref<1x1x8xf32, #tpu.memory_space<vmem>>, %arg3: memref<1x1x128xf32, #tpu.memory_space<vmem>>, %arg4: memref<16x128xbf16, #tpu.memory_space<vmem>>, %arg5: memref<1x128xf32, #tpu.memory_space<vmem>>, %arg6: memref<2x128x384xbf16, #tpu.memory_space<vmem>>, %arg7: memref<2x1x384xf32, #tpu.memory_space<vmem>>, %arg8: memref<2x4x32x128xbf16, #tpu.memory_space<vmem>>, %arg9: memref<2x1x128xf32, #tpu.memory_space<vmem>>, %arg10: memref<2x1x128xf32, #tpu.memory_space<vmem>>, %arg11: memref<2x1x128xf32, #tpu.memory_space<vmem>>, %arg12: memref<2x128x256xbf16, #tpu.memory_space<vmem>>, %arg13: memref<2x1x256xf32, #tpu.memory_space<vmem>>, %arg14: memref<2x256x128xbf16, #tpu.memory_space<vmem>>, %arg15: memref<2x1x128xf32, #tpu.memory_space<vmem>>, %arg16: memref<2x1x128xf32, #tpu.memory_space<vmem>>, %arg17: memref<2x1x128xf32, #tpu.memory_space<vmem>>, %arg18: memref<1x8x128xbf16, #tpu.memory_space<vmem>>, %arg19: memref<1x8x384xbf16, #tpu.memory_space<vmem>>) attributes {dimension_semantics = [#tpu.dimension_semantics<parallel>], iteration_bounds = array<i64: 2>, scalar_prefetch = 0 : i64, scratch_operands = 1 : i64, tpu.core_type = #tpu.core_type<tc>, window_params = [{transform_indices = @transform_0, window_bounds = array<i64: 1, 8, 16>}, {transform_indices = @transform_1, window_bounds = array<i64: 1, 1, 8>}, {transform_indices = @transform_2, window_bounds = array<i64: 1, 1, 128>}, {pipeline_mode = #tpu.pipeline_mode<synchronous>, transform_indices = @transform_3, window_bounds = array<i64: 16, 128>}, {pipeline_mode = #tpu.pipeline_mode<synchronous>, transform_indices = @transform_4, window_bounds = array<i64: 1, 128>}, {pipeline_mode = #tpu.pipeline_mode<synchronous>, transform_indices = @transform_5, window_bounds = array<i64: 2, 128, 384>}, {pipeline_mode = #tpu.pipeline_mode<synchronous>, transform_indices = @transform_6, window_bounds = array<i64: 2, 1, 384>}, {pipeline_mode = #tpu.pipeline_mode<synchronous>, transform_indices = @transform_7, window_bounds = array<i64: 2, 4, 32, 128>}, {pipeline_mode = #tpu.pipeline_mode<synchronous>, transform_indices = @transform_8, window_bounds = array<i64: 2, 1, 128>}, {pipeline_mode = #tpu.pipeline_mode<synchronous>, transform_indices = @transform_9, window_bounds = array<i64: 2, 1, 128>}, {pipeline_mode = #tpu.pipeline_mode<synchronous>, transform_indices = @transform_10, window_bounds = array<i64: 2, 1, 128>}, {pipeline_mode = #tpu.pipeline_mode<synchronous>, transform_indices = @transform_11, window_bounds = array<i64: 2, 128, 256>}, {pipeline_mode = #tpu.pipeline_mode<synchronous>, transform_indices = @transform_12, window_bounds = array<i64: 2, 1, 256>}, {pipeline_mode = #tpu.pipeline_mode<synchronous>, transform_indices = @transform_13, window_bounds = array<i64: 2, 256, 128>}, {pipeline_mode = #tpu.pipeline_mode<synchronous>, transform_indices = @transform_14, window_bounds = array<i64: 2, 1, 128>}, {pipeline_mode = #tpu.pipeline_mode<synchronous>, transform_indices = @transform_15, window_bounds = array<i64: 2, 1, 128>}, {pipeline_mode = #tpu.pipeline_mode<synchronous>, transform_indices = @transform_16, window_bounds = array<i64: 2, 1, 128>}, {transform_indices = @transform_17, window_bounds = array<i64: 1, 8, 128>}]} {
    %c0 = arith.constant 0 : index
    %c0_0 = arith.constant 0 : index
    %c0_1 = arith.constant 0 : index
    %0 = vector.load %arg1[%c0, %c0_0, %c0_1] : memref<1x8x16xf32, #tpu.memory_space<vmem>>, vector<1x8x16xf32>
    %1 = vector.shape_cast %0 : vector<1x8x16xf32> to vector<8x16xf32>
    %c0_2 = arith.constant 0 : index
    %c0_3 = arith.constant 0 : index
    %c0_4 = arith.constant 0 : index
    %2 = vector.load %arg2[%c0_2, %c0_3, %c0_4] : memref<1x1x8xf32, #tpu.memory_space<vmem>>, vector<1x1x8xf32>
    %3 = vector.shape_cast %2 : vector<1x1x8xf32> to vector<1x1x8xf32>
    %4 = vector.broadcast %3 : vector<1x1x8xf32> to vector<1x8x8xf32>
    %5 = arith.truncf %1 : vector<8x16xf32> to vector<8x16xbf16>
    %c0_5 = arith.constant 0 : index
    %c0_6 = arith.constant 0 : index
    %6 = vector.load %arg4[%c0_5, %c0_6] : memref<16x128xbf16, #tpu.memory_space<vmem>>, vector<16x128xbf16>
    %cst = arith.constant dense<0.000000e+00> : vector<8x128xf32>
    %7 = tpu.matmul %5, %6, %cst {dimension_numbers = #tpu.dot_dimension_numbers<[1], [0], [0], [1], [0, 0, 1, 1], [], []>} : vector<8x16xbf16>, vector<16x128xbf16>, vector<8x128xf32> -> vector<8x128xf32>
    %c0_7 = arith.constant 0 : index
    %c0_8 = arith.constant 0 : index
    %8 = vector.load %arg5[%c0_7, %c0_8] : memref<1x128xf32, #tpu.memory_space<vmem>>, vector<1x128xf32>
    %9 = vector.broadcast %8 : vector<1x128xf32> to vector<8x128xf32>
    %10 = arith.addf %7, %9 : vector<8x128xf32>
    %11 = vector.shape_cast %10 : vector<8x128xf32> to vector<1x8x128xf32>
    %c0_9 = arith.constant 0 : index
    %c0_10 = arith.constant 0 : index
    %c0_11 = arith.constant 0 : index
    %12 = vector.load %arg3[%c0_9, %c0_10, %c0_11] : memref<1x1x128xf32, #tpu.memory_space<vmem>>, vector<1x1x128xf32>
    %13 = vector.broadcast %12 : vector<1x1x128xf32> to vector<1x8x128xf32>
    %14 = arith.addf %11, %13 : vector<1x8x128xf32>
    %15 = vector.shape_cast %14 : vector<1x8x128xf32> to vector<8x128xf32>
    %16 = arith.truncf %15 : vector<8x128xf32> to vector<8x128xbf16>
    %c0_12 = arith.constant 0 : index
    %c0_13 = arith.constant 0 : index
    %c0_14 = arith.constant 0 : index
    %17 = vector.load %arg6[%c0_12, %c0_13, %c0_14] : memref<2x128x384xbf16, #tpu.memory_space<vmem>>, vector<1x128x384xbf16>
    %18 = vector.shape_cast %17 : vector<1x128x384xbf16> to vector<128x384xbf16>
    %cst_15 = arith.constant dense<0.000000e+00> : vector<8x384xf32>
    %19 = tpu.matmul %16, %18, %cst_15 {dimension_numbers = #tpu.dot_dimension_numbers<[1], [0], [0], [1], [0, 0, 1, 1], [], []>} : vector<8x128xbf16>, vector<128x384xbf16>, vector<8x384xf32> -> vector<8x384xf32>
    %c0_16 = arith.constant 0 : index
    %c0_17 = arith.constant 0 : index
    %c0_18 = arith.constant 0 : index
    %20 = vector.load %arg7[%c0_16, %c0_17, %c0_18] : memref<2x1x384xf32, #tpu.memory_space<vmem>>, vector<1x1x384xf32>
    %21 = vector.shape_cast %20 : vector<1x1x384xf32> to vector<1x384xf32>
    %22 = vector.broadcast %21 : vector<1x384xf32> to vector<8x384xf32>
    %23 = arith.addf %19, %22 : vector<8x384xf32>
    %24 = vector.shape_cast %23 : vector<8x384xf32> to vector<1x8x384xf32>
    %25 = arith.truncf %24 : vector<1x8x384xf32> to vector<1x8x384xbf16>
    %c0_19 = arith.constant 0 : index
    %c0_20 = arith.constant 0 : index
    %c0_21 = arith.constant 0 : index
    %26 = vector.load %arg19[%c0_19, %c0_20, %c0_21] : memref<1x8x384xbf16, #tpu.memory_space<vmem>>, vector<1x8x384xbf16>
    tpu.vector_store %arg19[%c0_19, %c0_20, %c0_21], %25 {strides = array<i32>} : memref<1x8x384xbf16, #tpu.memory_space<vmem>>, vector<1x8x384xbf16>,
    %cst_22 = arith.constant 0.000000e+00 : f32
    %27 = vector.broadcast %cst_22 : f32 to vector<8x128xf32>
    %c0_23 = arith.constant 0 : index
    %c0_24 = arith.constant 0 : index
    %c0_25 = arith.constant 0 : index
    %28 = vector.load %arg19[%c0_23, %c0_24, %c0_25] : memref<1x8x384xbf16, #tpu.memory_space<vmem>>, vector<1x8x32xbf16>
    %c0_26 = arith.constant 0 : index
    %c0_27 = arith.constant 0 : index
    %c128 = arith.constant 128 : index
    %29 = vector.load %arg19[%c0_26, %c0_27, %c128] : memref<1x8x384xbf16, #tpu.memory_space<vmem>>, vector<1x8x32xbf16>
    %c0_28 = arith.constant 0 : index
    %c0_29 = arith.constant 0 : index
    %c256 = arith.constant 256 : index
    %30 = vector.load %arg19[%c0_28, %c0_29, %c256] : memref<1x8x384xbf16, #tpu.memory_space<vmem>>, vector<1x8x32xbf16>
    "tpu.trace_start"() <{level = 10 : i32, message = "bqd,bkd->bqk"}> : () -> ()
    %cst_30 = arith.constant dense<0.000000e+00> : vector<1x8x8xf32>
    %31 = tpu.matmul %28, %29, %cst_30 {dimension_numbers = #tpu.dot_dimension_numbers<[2], [2], [1], [1], [0, 0, 0, 1, 1, 1], [0], [0]>} : vector<1x8x32xbf16>, vector<1x8x32xbf16>, vector<1x8x8xf32> -> vector<1x8x8xf32>
    "tpu.trace_stop"() : () -> ()
    %cst_31 = arith.constant 0.176776692 : f32
    %32 = vector.broadcast %cst_31 : f32 to vector<1x8x8xf32>
    %33 = arith.mulf %31, %32 : vector<1x8x8xf32>
    %34 = arith.addf %33, %4 : vector<1x8x8xf32>
    %cst_32 = arith.constant dense<0xFF800000> : vector<1x8xf32>
    %35 = vector.multi_reduction <maximumf>, %34, %cst_32 [2] : vector<1x8x8xf32> to vector<1x8xf32>
    %36 = vector.shape_cast %35 : vector<1x8xf32> to vector<1x8x1xf32>
    %37 = vector.broadcast %36 : vector<1x8x1xf32> to vector<1x8x8xf32>
    %38 = arith.subf %34, %37 : vector<1x8x8xf32>
    %39 = math.exp %38 : vector<1x8x8xf32>
    %cst_33 = arith.constant dense<0.000000e+00> : vector<1x8xf32>
    %40 = vector.multi_reduction <add>, %39, %cst_33 [2] : vector<1x8x8xf32> to vector<1x8xf32>
    %41 = vector.shape_cast %40 : vector<1x8xf32> to vector<1x8x1xf32>
    %42 = tpu.reciprocal %41 {approx = true} : vector<1x8x1xf32> -> vector<1x8x1xf32>
    %43 = vector.broadcast %42 : vector<1x8x1xf32> to vector<1x8x8xf32>
    %44 = arith.mulf %39, %43 : vector<1x8x8xf32>
    %45 = arith.truncf %44 : vector<1x8x8xf32> to vector<1x8x8xbf16>
    "tpu.trace_start"() <{level = 10 : i32, message = "bqk,bkd->bqd"}> : () -> ()
    %cst_34 = arith.constant dense<0.000000e+00> : vector<1x8x32xf32>
    %46 = tpu.matmul %45, %30, %cst_34 {dimension_numbers = #tpu.dot_dimension_numbers<[2], [1], [1], [2], [0, 0, 0, 1, 1, 2], [0], [0]>} : vector<1x8x8xbf16>, vector<1x8x32xbf16>, vector<1x8x32xf32> -> vector<1x8x32xf32>
    "tpu.trace_stop"() : () -> ()
    %47 = vector.shape_cast %46 : vector<1x8x32xf32> to vector<8x32xf32>
    %48 = arith.truncf %47 : vector<8x32xf32> to vector<8x32xbf16>
    %c0_35 = arith.constant 0 : index
    %c0_36 = arith.constant 0 : index
    %c0_37 = arith.constant 0 : index
    %c0_38 = arith.constant 0 : index
    %49 = vector.load %arg8[%c0_35, %c0_36, %c0_37, %c0_38] : memref<2x4x32x128xbf16, #tpu.memory_space<vmem>>, vector<1x1x32x128xbf16>
    %50 = vector.shape_cast %49 : vector<1x1x32x128xbf16> to vector<32x128xbf16>
    %cst_39 = arith.constant dense<0.000000e+00> : vector<8x128xf32>
    %51 = tpu.matmul %48, %50, %cst_39 {dimension_numbers = #tpu.dot_dimension_numbers<[1], [0], [0], [1], [0, 0, 1, 1], [], []>} : vector<8x32xbf16>, vector<32x128xbf16>, vector<8x128xf32> -> vector<8x128xf32>
    %52 = arith.addf %27, %51 : vector<8x128xf32>
    %c0_40 = arith.constant 0 : index
    %c0_41 = arith.constant 0 : index
    %c32 = arith.constant 32 : index
    %53 = vector.load %arg19[%c0_40, %c0_41, %c32] : memref<1x8x384xbf16, #tpu.memory_space<vmem>>, vector<1x8x32xbf16>
    %c0_42 = arith.constant 0 : index
    %c0_43 = arith.constant 0 : index
    %c160 = arith.constant 160 : index
    %54 = vector.load %arg19[%c0_42, %c0_43, %c160] : memref<1x8x384xbf16, #tpu.memory_space<vmem>>, vector<1x8x32xbf16>
    %c0_44 = arith.constant 0 : index
    %c0_45 = arith.constant 0 : index
    %c288 = arith.constant 288 : index
    %55 = vector.load %arg19[%c0_44, %c0_45, %c288] : memref<1x8x384xbf16, #tpu.memory_space<vmem>>, vector<1x8x32xbf16>
    "tpu.trace_start"() <{level = 10 : i32, message = "bqd,bkd->bqk"}> : () -> ()
    %cst_46 = arith.constant dense<0.000000e+00> : vector<1x8x8xf32>
    %56 = tpu.matmul %53, %54, %cst_46 {dimension_numbers = #tpu.dot_dimension_numbers<[2], [2], [1], [1], [0, 0, 0, 1, 1, 1], [0], [0]>} : vector<1x8x32xbf16>, vector<1x8x32xbf16>, vector<1x8x8xf32> -> vector<1x8x8xf32>
    "tpu.trace_stop"() : () -> ()
    %cst_47 = arith.constant 0.176776692 : f32
    %57 = vector.broadcast %cst_47 : f32 to vector<1x8x8xf32>
    %58 = arith.mulf %56, %57 : vector<1x8x8xf32>
    %59 = arith.addf %58, %4 : vector<1x8x8xf32>
    %cst_48 = arith.constant dense<0xFF800000> : vector<1x8xf32>
    %60 = vector.multi_reduction <maximumf>, %59, %cst_48 [2] : vector<1x8x8xf32> to vector<1x8xf32>
    %61 = vector.shape_cast %60 : vector<1x8xf32> to vector<1x8x1xf32>
    %62 = vector.broadcast %61 : vector<1x8x1xf32> to vector<1x8x8xf32>
    %63 = arith.subf %59, %62 : vector<1x8x8xf32>
    %64 = math.exp %63 : vector<1x8x8xf32>
    %cst_49 = arith.constant dense<0.000000e+00> : vector<1x8xf32>
    %65 = vector.multi_reduction <add>, %64, %cst_49 [2] : vector<1x8x8xf32> to vector<1x8xf32>
    %66 = vector.shape_cast %65 : vector<1x8xf32> to vector<1x8x1xf32>
    %67 = tpu.reciprocal %66 {approx = true} : vector<1x8x1xf32> -> vector<1x8x1xf32>
    %68 = vector.broadcast %67 : vector<1x8x1xf32> to vector<1x8x8xf32>
    %69 = arith.mulf %64, %68 : vector<1x8x8xf32>
    %70 = arith.truncf %69 : vector<1x8x8xf32> to vector<1x8x8xbf16>
    "tpu.trace_start"() <{level = 10 : i32, message = "bqk,bkd->bqd"}> : () -> ()
    %cst_50 = arith.constant dense<0.000000e+00> : vector<1x8x32xf32>
    %71 = tpu.matmul %70, %55, %cst_50 {dimension_numbers = #tpu.dot_dimension_numbers<[2], [1], [1], [2], [0, 0, 0, 1, 1, 2], [0], [0]>} : vector<1x8x8xbf16>, vector<1x8x32xbf16>, vector<1x8x32xf32> -> vector<1x8x32xf32>
    "tpu.trace_stop"() : () -> ()
    %72 = vector.shape_cast %71 : vector<1x8x32xf32> to vector<8x32xf32>
    %73 = arith.truncf %72 : vector<8x32xf32> to vector<8x32xbf16>
    %c0_51 = arith.constant 0 : index
    %c1 = arith.constant 1 : index
    %c0_52 = arith.constant 0 : index
    %c0_53 = arith.constant 0 : index
    %74 = vector.load %arg8[%c0_51, %c1, %c0_52, %c0_53] : memref<2x4x32x128xbf16, #tpu.memory_space<vmem>>, vector<1x1x32x128xbf16>
    %75 = vector.shape_cast %74 : vector<1x1x32x128xbf16> to vector<32x128xbf16>
    %cst_54 = arith.constant dense<0.000000e+00> : vector<8x128xf32>
    %76 = tpu.matmul %73, %75, %cst_54 {dimension_numbers = #tpu.dot_dimension_numbers<[1], [0], [0], [1], [0, 0, 1, 1], [], []>} : vector<8x32xbf16>, vector<32x128xbf16>, vector<8x128xf32> -> vector<8x128xf32>
    %77 = arith.addf %52, %76 : vector<8x128xf32>
    %c0_55 = arith.constant 0 : index
    %c0_56 = arith.constant 0 : index
    %c64 = arith.constant 64 : index
    %78 = vector.load %arg19[%c0_55, %c0_56, %c64] : memref<1x8x384xbf16, #tpu.memory_space<vmem>>, vector<1x8x32xbf16>
    %c0_57 = arith.constant 0 : index
    %c0_58 = arith.constant 0 : index
    %c192 = arith.constant 192 : index
    %79 = vector.load %arg19[%c0_57, %c0_58, %c192] : memref<1x8x384xbf16, #tpu.memory_space<vmem>>, vector<1x8x32xbf16>
    %c0_59 = arith.constant 0 : index
    %c0_60 = arith.constant 0 : index
    %c320 = arith.constant 320 : index
    %80 = vector.load %arg19[%c0_59, %c0_60, %c320] : memref<1x8x384xbf16, #tpu.memory_space<vmem>>, vector<1x8x32xbf16>
    "tpu.trace_start"() <{level = 10 : i32, message = "bqd,bkd->bqk"}> : () -> ()
    %cst_61 = arith.constant dense<0.000000e+00> : vector<1x8x8xf32>
    %81 = tpu.matmul %78, %79, %cst_61 {dimension_numbers = #tpu.dot_dimension_numbers<[2], [2], [1], [1], [0, 0, 0, 1, 1, 1], [0], [0]>} : vector<1x8x32xbf16>, vector<1x8x32xbf16>, vector<1x8x8xf32> -> vector<1x8x8xf32>
    "tpu.trace_stop"() : () -> ()
    %cst_62 = arith.constant 0.176776692 : f32
    %82 = vector.broadcast %cst_62 : f32 to vector<1x8x8xf32>
    %83 = arith.mulf %81, %82 : vector<1x8x8xf32>
    %84 = arith.addf %83, %4 : vector<1x8x8xf32>
    %cst_63 = arith.constant dense<0xFF800000> : vector<1x8xf32>
    %85 = vector.multi_reduction <maximumf>, %84, %cst_63 [2] : vector<1x8x8xf32> to vector<1x8xf32>
    %86 = vector.shape_cast %85 : vector<1x8xf32> to vector<1x8x1xf32>
    %87 = vector.broadcast %86 : vector<1x8x1xf32> to vector<1x8x8xf32>
    %88 = arith.subf %84, %87 : vector<1x8x8xf32>
    %89 = math.exp %88 : vector<1x8x8xf32>
    %cst_64 = arith.constant dense<0.000000e+00> : vector<1x8xf32>
    %90 = vector.multi_reduction <add>, %89, %cst_64 [2] : vector<1x8x8xf32> to vector<1x8xf32>
    %91 = vector.shape_cast %90 : vector<1x8xf32> to vector<1x8x1xf32>
    %92 = tpu.reciprocal %91 {approx = true} : vector<1x8x1xf32> -> vector<1x8x1xf32>
    %93 = vector.broadcast %92 : vector<1x8x1xf32> to vector<1x8x8xf32>
    %94 = arith.mulf %89, %93 : vector<1x8x8xf32>
    %95 = arith.truncf %94 : vector<1x8x8xf32> to vector<1x8x8xbf16>
    "tpu.trace_start"() <{level = 10 : i32, message = "bqk,bkd->bqd"}> : () -> ()
    %cst_65 = arith.constant dense<0.000000e+00> : vector<1x8x32xf32>
    %96 = tpu.matmul %95, %80, %cst_65 {dimension_numbers = #tpu.dot_dimension_numbers<[2], [1], [1], [2], [0, 0, 0, 1, 1, 2], [0], [0]>} : vector<1x8x8xbf16>, vector<1x8x32xbf16>, vector<1x8x32xf32> -> vector<1x8x32xf32>
    "tpu.trace_stop"() : () -> ()
    %97 = vector.shape_cast %96 : vector<1x8x32xf32> to vector<8x32xf32>
    %98 = arith.truncf %97 : vector<8x32xf32> to vector<8x32xbf16>
    %c0_66 = arith.constant 0 : index
    %c2 = arith.constant 2 : index
    %c0_67 = arith.constant 0 : index
    %c0_68 = arith.constant 0 : index
    %99 = vector.load %arg8[%c0_66, %c2, %c0_67, %c0_68] : memref<2x4x32x128xbf16, #tpu.memory_space<vmem>>, vector<1x1x32x128xbf16>
    %100 = vector.shape_cast %99 : vector<1x1x32x128xbf16> to vector<32x128xbf16>
    %cst_69 = arith.constant dense<0.000000e+00> : vector<8x128xf32>
    %101 = tpu.matmul %98, %100, %cst_69 {dimension_numbers = #tpu.dot_dimension_numbers<[1], [0], [0], [1], [0, 0, 1, 1], [], []>} : vector<8x32xbf16>, vector<32x128xbf16>, vector<8x128xf32> -> vector<8x128xf32>
    %102 = arith.addf %77, %101 : vector<8x128xf32>
    %c0_70 = arith.constant 0 : index
    %c0_71 = arith.constant 0 : index
    %c96 = arith.constant 96 : index
    %103 = vector.load %arg19[%c0_70, %c0_71, %c96] : memref<1x8x384xbf16, #tpu.memory_space<vmem>>, vector<1x8x32xbf16>
    %c0_72 = arith.constant 0 : index
    %c0_73 = arith.constant 0 : index
    %c224 = arith.constant 224 : index
    %104 = vector.load %arg19[%c0_72, %c0_73, %c224] : memref<1x8x384xbf16, #tpu.memory_space<vmem>>, vector<1x8x32xbf16>
    %c0_74 = arith.constant 0 : index
    %c0_75 = arith.constant 0 : index
    %c352 = arith.constant 352 : index
    %105 = vector.load %arg19[%c0_74, %c0_75, %c352] : memref<1x8x384xbf16, #tpu.memory_space<vmem>>, vector<1x8x32xbf16>
    "tpu.trace_start"() <{level = 10 : i32, message = "bqd,bkd->bqk"}> : () -> ()
    %cst_76 = arith.constant dense<0.000000e+00> : vector<1x8x8xf32>
    %106 = tpu.matmul %103, %104, %cst_76 {dimension_numbers = #tpu.dot_dimension_numbers<[2], [2], [1], [1], [0, 0, 0, 1, 1, 1], [0], [0]>} : vector<1x8x32xbf16>, vector<1x8x32xbf16>, vector<1x8x8xf32> -> vector<1x8x8xf32>
    "tpu.trace_stop"() : () -> ()
    %cst_77 = arith.constant 0.176776692 : f32
    %107 = vector.broadcast %cst_77 : f32 to vector<1x8x8xf32>
    %108 = arith.mulf %106, %107 : vector<1x8x8xf32>
    %109 = arith.addf %108, %4 : vector<1x8x8xf32>
    %cst_78 = arith.constant dense<0xFF800000> : vector<1x8xf32>
    %110 = vector.multi_reduction <maximumf>, %109, %cst_78 [2] : vector<1x8x8xf32> to vector<1x8xf32>
    %111 = vector.shape_cast %110 : vector<1x8xf32> to vector<1x8x1xf32>
    %112 = vector.broadcast %111 : vector<1x8x1xf32> to vector<1x8x8xf32>
    %113 = arith.subf %109, %112 : vector<1x8x8xf32>
    %114 = math.exp %113 : vector<1x8x8xf32>
    %cst_79 = arith.constant dense<0.000000e+00> : vector<1x8xf32>
    %115 = vector.multi_reduction <add>, %114, %cst_79 [2] : vector<1x8x8xf32> to vector<1x8xf32>
    %116 = vector.shape_cast %115 : vector<1x8xf32> to vector<1x8x1xf32>
    %117 = tpu.reciprocal %116 {approx = true} : vector<1x8x1xf32> -> vector<1x8x1xf32>
    %118 = vector.broadcast %117 : vector<1x8x1xf32> to vector<1x8x8xf32>
    %119 = arith.mulf %114, %118 : vector<1x8x8xf32>
    %120 = arith.truncf %119 : vector<1x8x8xf32> to vector<1x8x8xbf16>
    "tpu.trace_start"() <{level = 10 : i32, message = "bqk,bkd->bqd"}> : () -> ()
    %cst_80 = arith.constant dense<0.000000e+00> : vector<1x8x32xf32>
    %121 = tpu.matmul %120, %105, %cst_80 {dimension_numbers = #tpu.dot_dimension_numbers<[2], [1], [1], [2], [0, 0, 0, 1, 1, 2], [0], [0]>} : vector<1x8x8xbf16>, vector<1x8x32xbf16>, vector<1x8x32xf32> -> vector<1x8x32xf32>
    "tpu.trace_stop"() : () -> ()
    %122 = vector.shape_cast %121 : vector<1x8x32xf32> to vector<8x32xf32>
    %123 = arith.truncf %122 : vector<8x32xf32> to vector<8x32xbf16>
    %c0_81 = arith.constant 0 : index
    %c3 = arith.constant 3 : index
    %c0_82 = arith.constant 0 : index
    %c0_83 = arith.constant 0 : index
    %124 = vector.load %arg8[%c0_81, %c3, %c0_82, %c0_83] : memref<2x4x32x128xbf16, #tpu.memory_space<vmem>>, vector<1x1x32x128xbf16>
    %125 = vector.shape_cast %124 : vector<1x1x32x128xbf16> to vector<32x128xbf16>
    %cst_84 = arith.constant dense<0.000000e+00> : vector<8x128xf32>
    %126 = tpu.matmul %123, %125, %cst_84 {dimension_numbers = #tpu.dot_dimension_numbers<[1], [0], [0], [1], [0, 0, 1, 1], [], []>} : vector<8x32xbf16>, vector<32x128xbf16>, vector<8x128xf32> -> vector<8x128xf32>
    %127 = arith.addf %102, %126 : vector<8x128xf32>
    %c0_85 = arith.constant 0 : index
    %c0_86 = arith.constant 0 : index
    %c0_87 = arith.constant 0 : index
    %128 = vector.load %arg9[%c0_85, %c0_86, %c0_87] : memref<2x1x128xf32, #tpu.memory_space<vmem>>, vector<1x1x128xf32>
    %129 = vector.shape_cast %128 : vector<1x1x128xf32> to vector<1x128xf32>
    %130 = vector.broadcast %129 : vector<1x128xf32> to vector<8x128xf32>
    %131 = arith.addf %127, %130 : vector<8x128xf32>
    %132 = arith.addf %15, %131 : vector<8x128xf32>
    %c0_88 = arith.constant 0 : index
    %c0_89 = arith.constant 0 : index
    %c0_90 = arith.constant 0 : index
    %133 = vector.load %arg10[%c0_88, %c0_89, %c0_90] : memref<2x1x128xf32, #tpu.memory_space<vmem>>, vector<1x1x128xf32>
    %134 = vector.shape_cast %133 : vector<1x1x128xf32> to vector<1x128xf32>
    %c0_91 = arith.constant 0 : index
    %c0_92 = arith.constant 0 : index
    %c0_93 = arith.constant 0 : index
    %135 = vector.load %arg11[%c0_91, %c0_92, %c0_93] : memref<2x1x128xf32, #tpu.memory_space<vmem>>, vector<1x1x128xf32>
    %136 = vector.shape_cast %135 : vector<1x1x128xf32> to vector<1x128xf32>
    %cst_94 = arith.constant dense<0.000000e+00> : vector<8xf32>
    %137 = vector.multi_reduction <add>, %132, %cst_94 [1] : vector<8x128xf32> to vector<8xf32>
    %138 = vector.shape_cast %137 : vector<8xf32> to vector<8x1xf32>
    %cst_95 = arith.constant 1.280000e+02 : f32
    %139 = vector.broadcast %cst_95 : f32 to vector<8x1xf32>
    %140 = arith.divf %138, %139 : vector<8x1xf32>
    %141 = arith.mulf %132, %132 : vector<8x128xf32>
    %cst_96 = arith.constant dense<0.000000e+00> : vector<8xf32>
    %142 = vector.multi_reduction <add>, %141, %cst_96 [1] : vector<8x128xf32> to vector<8xf32>
    %143 = vector.shape_cast %142 : vector<8xf32> to vector<8x1xf32>
    %cst_97 = arith.constant 1.280000e+02 : f32
    %144 = vector.broadcast %cst_97 : f32 to vector<8x1xf32>
    %145 = arith.divf %143, %144 : vector<8x1xf32>
    %146 = arith.mulf %140, %140 : vector<8x1xf32>
    %147 = arith.subf %145, %146 : vector<8x1xf32>
    %148 = vector.broadcast %140 : vector<8x1xf32> to vector<8x128xf32>
    %149 = arith.subf %132, %148 : vector<8x128xf32>
    %cst_98 = arith.constant 9.99999974E-6 : f32
    %150 = vector.broadcast %cst_98 : f32 to vector<8x1xf32>
    %151 = arith.addf %147, %150 : vector<8x1xf32>
    %152 = math.rsqrt %151 : vector<8x1xf32>
    %153 = vector.broadcast %152 : vector<8x1xf32> to vector<8x128xf32>
    %154 = arith.mulf %149, %153 : vector<8x128xf32>
    %155 = vector.broadcast %134 : vector<1x128xf32> to vector<8x128xf32>
    %156 = arith.mulf %154, %155 : vector<8x128xf32>
    %157 = vector.broadcast %136 : vector<1x128xf32> to vector<8x128xf32>
    %158 = arith.addf %156, %157 : vector<8x128xf32>
    %159 = arith.truncf %158 : vector<8x128xf32> to vector<8x128xbf16>
    %c0_99 = arith.constant 0 : index
    %c0_100 = arith.constant 0 : index
    %c0_101 = arith.constant 0 : index
    %160 = vector.load %arg12[%c0_99, %c0_100, %c0_101] : memref<2x128x256xbf16, #tpu.memory_space<vmem>>, vector<1x128x256xbf16>
    %161 = vector.shape_cast %160 : vector<1x128x256xbf16> to vector<128x256xbf16>
    %cst_102 = arith.constant dense<0.000000e+00> : vector<8x256xf32>
    %162 = tpu.matmul %159, %161, %cst_102 {dimension_numbers = #tpu.dot_dimension_numbers<[1], [0], [0], [1], [0, 0, 1, 1], [], []>} : vector<8x128xbf16>, vector<128x256xbf16>, vector<8x256xf32> -> vector<8x256xf32>
    %c0_103 = arith.constant 0 : index
    %c0_104 = arith.constant 0 : index
    %c0_105 = arith.constant 0 : index
    %163 = vector.load %arg13[%c0_103, %c0_104, %c0_105] : memref<2x1x256xf32, #tpu.memory_space<vmem>>, vector<1x1x256xf32>
    %164 = vector.shape_cast %163 : vector<1x1x256xf32> to vector<1x256xf32>
    %165 = vector.broadcast %164 : vector<1x256xf32> to vector<8x256xf32>
    %166 = arith.addf %162, %165 : vector<8x256xf32>
    %cst_106 = arith.constant 0.000000e+00 : f32
    %167 = vector.broadcast %cst_106 : f32 to vector<8x256xf32>
    %168 = arith.maximumf %166, %167 : vector<8x256xf32>
    %169 = arith.truncf %168 : vector<8x256xf32> to vector<8x256xbf16>
    %c0_107 = arith.constant 0 : index
    %c0_108 = arith.constant 0 : index
    %c0_109 = arith.constant 0 : index
    %170 = vector.load %arg14[%c0_107, %c0_108, %c0_109] : memref<2x256x128xbf16, #tpu.memory_space<vmem>>, vector<1x256x128xbf16>
    %171 = vector.shape_cast %170 : vector<1x256x128xbf16> to vector<256x128xbf16>
    %cst_110 = arith.constant dense<0.000000e+00> : vector<8x128xf32>
    %172 = tpu.matmul %169, %171, %cst_110 {dimension_numbers = #tpu.dot_dimension_numbers<[1], [0], [0], [1], [0, 0, 1, 1], [], []>} : vector<8x256xbf16>, vector<256x128xbf16>, vector<8x128xf32> -> vector<8x128xf32>
    %c0_111 = arith.constant 0 : index
    %c0_112 = arith.constant 0 : index
    %c0_113 = arith.constant 0 : index
    %173 = vector.load %arg15[%c0_111, %c0_112, %c0_113] : memref<2x1x128xf32, #tpu.memory_space<vmem>>, vector<1x1x128xf32>
    %174 = vector.shape_cast %173 : vector<1x1x128xf32> to vector<1x128xf32>
    %175 = vector.broadcast %174 : vector<1x128xf32> to vector<8x128xf32>
    %176 = arith.addf %172, %175 : vector<8x128xf32>
    %177 = arith.addf %158, %176 : vector<8x128xf32>
    %c0_114 = arith.constant 0 : index
    %c0_115 = arith.constant 0 : index
    %c0_116 = arith.constant 0 : index
    %178 = vector.load %arg16[%c0_114, %c0_115, %c0_116] : memref<2x1x128xf32, #tpu.memory_space<vmem>>, vector<1x1x128xf32>
    %179 = vector.shape_cast %178 : vector<1x1x128xf32> to vector<1x128xf32>
    %c0_117 = arith.constant 0 : index
    %c0_118 = arith.constant 0 : index
    %c0_119 = arith.constant 0 : index
    %180 = vector.load %arg17[%c0_117, %c0_118, %c0_119] : memref<2x1x128xf32, #tpu.memory_space<vmem>>, vector<1x1x128xf32>
    %181 = vector.shape_cast %180 : vector<1x1x128xf32> to vector<1x128xf32>
    %cst_120 = arith.constant dense<0.000000e+00> : vector<8xf32>
    %182 = vector.multi_reduction <add>, %177, %cst_120 [1] : vector<8x128xf32> to vector<8xf32>
    %183 = vector.shape_cast %182 : vector<8xf32> to vector<8x1xf32>
    %cst_121 = arith.constant 1.280000e+02 : f32
    %184 = vector.broadcast %cst_121 : f32 to vector<8x1xf32>
    %185 = arith.divf %183, %184 : vector<8x1xf32>
    %186 = arith.mulf %177, %177 : vector<8x128xf32>
    %cst_122 = arith.constant dense<0.000000e+00> : vector<8xf32>
    %187 = vector.multi_reduction <add>, %186, %cst_122 [1] : vector<8x128xf32> to vector<8xf32>
    %188 = vector.shape_cast %187 : vector<8xf32> to vector<8x1xf32>
    %cst_123 = arith.constant 1.280000e+02 : f32
    %189 = vector.broadcast %cst_123 : f32 to vector<8x1xf32>
    %190 = arith.divf %188, %189 : vector<8x1xf32>
    %191 = arith.mulf %185, %185 : vector<8x1xf32>
    %192 = arith.subf %190, %191 : vector<8x1xf32>
    %193 = vector.broadcast %185 : vector<8x1xf32> to vector<8x128xf32>
    %194 = arith.subf %177, %193 : vector<8x128xf32>
    %cst_124 = arith.constant 9.99999974E-6 : f32
    %195 = vector.broadcast %cst_124 : f32 to vector<8x1xf32>
    %196 = arith.addf %192, %195 : vector<8x1xf32>
    %197 = math.rsqrt %196 : vector<8x1xf32>
    %198 = vector.broadcast %197 : vector<8x1xf32> to vector<8x128xf32>
    %199 = arith.mulf %194, %198 : vector<8x128xf32>
    %200 = vector.broadcast %179 : vector<1x128xf32> to vector<8x128xf32>
    %201 = arith.mulf %199, %200 : vector<8x128xf32>
    %202 = vector.broadcast %181 : vector<1x128xf32> to vector<8x128xf32>
    %203 = arith.addf %201, %202 : vector<8x128xf32>
    %204 = arith.truncf %203 : vector<8x128xf32> to vector<8x128xbf16>
    %c1_125 = arith.constant 1 : index
    %c0_126 = arith.constant 0 : index
    %c0_127 = arith.constant 0 : index
    %205 = vector.load %arg6[%c1_125, %c0_126, %c0_127] : memref<2x128x384xbf16, #tpu.memory_space<vmem>>, vector<1x128x384xbf16>
    %206 = vector.shape_cast %205 : vector<1x128x384xbf16> to vector<128x384xbf16>
    %cst_128 = arith.constant dense<0.000000e+00> : vector<8x384xf32>
    %207 = tpu.matmul %204, %206, %cst_128 {dimension_numbers = #tpu.dot_dimension_numbers<[1], [0], [0], [1], [0, 0, 1, 1], [], []>} : vector<8x128xbf16>, vector<128x384xbf16>, vector<8x384xf32> -> vector<8x384xf32>
    %c1_129 = arith.constant 1 : index
    %c0_130 = arith.constant 0 : index
    %c0_131 = arith.constant 0 : index
    %208 = vector.load %arg7[%c1_129, %c0_130, %c0_131] : memref<2x1x384xf32, #tpu.memory_space<vmem>>, vector<1x1x384xf32>
    %209 = vector.shape_cast %208 : vector<1x1x384xf32> to vector<1x384xf32>
    %210 = vector.broadcast %209 : vector<1x384xf32> to vector<8x384xf32>
    %211 = arith.addf %207, %210 : vector<8x384xf32>
    %212 = vector.shape_cast %211 : vector<8x384xf32> to vector<1x8x384xf32>
    %213 = arith.truncf %212 : vector<1x8x384xf32> to vector<1x8x384xbf16>
    %c0_132 = arith.constant 0 : index
    %c0_133 = arith.constant 0 : index
    %c0_134 = arith.constant 0 : index
    %214 = vector.load %arg19[%c0_132, %c0_133, %c0_134] : memref<1x8x384xbf16, #tpu.memory_space<vmem>>, vector<1x8x384xbf16>
    tpu.vector_store %arg19[%c0_132, %c0_133, %c0_134], %213 {strides = array<i32>} : memref<1x8x384xbf16, #tpu.memory_space<vmem>>, vector<1x8x384xbf16>,
    %cst_135 = arith.constant 0.000000e+00 : f32
    %215 = vector.broadcast %cst_135 : f32 to vector<8x128xf32>
    %c0_136 = arith.constant 0 : index
    %c0_137 = arith.constant 0 : index
    %c0_138 = arith.constant 0 : index
    %216 = vector.load %arg19[%c0_136, %c0_137, %c0_138] : memref<1x8x384xbf16, #tpu.memory_space<vmem>>, vector<1x8x32xbf16>
    %c0_139 = arith.constant 0 : index
    %c0_140 = arith.constant 0 : index
    %c128_141 = arith.constant 128 : index
    %217 = vector.load %arg19[%c0_139, %c0_140, %c128_141] : memref<1x8x384xbf16, #tpu.memory_space<vmem>>, vector<1x8x32xbf16>
    %c0_142 = arith.constant 0 : index
    %c0_143 = arith.constant 0 : index
    %c256_144 = arith.constant 256 : index
    %218 = vector.load %arg19[%c0_142, %c0_143, %c256_144] : memref<1x8x384xbf16, #tpu.memory_space<vmem>>, vector<1x8x32xbf16>
    "tpu.trace_start"() <{level = 10 : i32, message = "bqd,bkd->bqk"}> : () -> ()
    %cst_145 = arith.constant dense<0.000000e+00> : vector<1x8x8xf32>
    %219 = tpu.matmul %216, %217, %cst_145 {dimension_numbers = #tpu.dot_dimension_numbers<[2], [2], [1], [1], [0, 0, 0, 1, 1, 1], [0], [0]>} : vector<1x8x32xbf16>, vector<1x8x32xbf16>, vector<1x8x8xf32> -> vector<1x8x8xf32>
    "tpu.trace_stop"() : () -> ()
    %cst_146 = arith.constant 0.176776692 : f32
    %220 = vector.broadcast %cst_146 : f32 to vector<1x8x8xf32>
    %221 = arith.mulf %219, %220 : vector<1x8x8xf32>
    %222 = arith.addf %221, %4 : vector<1x8x8xf32>
    %cst_147 = arith.constant dense<0xFF800000> : vector<1x8xf32>
    %223 = vector.multi_reduction <maximumf>, %222, %cst_147 [2] : vector<1x8x8xf32> to vector<1x8xf32>
    %224 = vector.shape_cast %223 : vector<1x8xf32> to vector<1x8x1xf32>
    %225 = vector.broadcast %224 : vector<1x8x1xf32> to vector<1x8x8xf32>
    %226 = arith.subf %222, %225 : vector<1x8x8xf32>
    %227 = math.exp %226 : vector<1x8x8xf32>
    %cst_148 = arith.constant dense<0.000000e+00> : vector<1x8xf32>
    %228 = vector.multi_reduction <add>, %227, %cst_148 [2] : vector<1x8x8xf32> to vector<1x8xf32>
    %229 = vector.shape_cast %228 : vector<1x8xf32> to vector<1x8x1xf32>
    %230 = tpu.reciprocal %229 {approx = true} : vector<1x8x1xf32> -> vector<1x8x1xf32>
    %231 = vector.broadcast %230 : vector<1x8x1xf32> to vector<1x8x8xf32>
    %232 = arith.mulf %227, %231 : vector<1x8x8xf32>
    %233 = arith.truncf %232 : vector<1x8x8xf32> to vector<1x8x8xbf16>
    "tpu.trace_start"() <{level = 10 : i32, message = "bqk,bkd->bqd"}> : () -> ()
    %cst_149 = arith.constant dense<0.000000e+00> : vector<1x8x32xf32>
    %234 = tpu.matmul %233, %218, %cst_149 {dimension_numbers = #tpu.dot_dimension_numbers<[2], [1], [1], [2], [0, 0, 0, 1, 1, 2], [0], [0]>} : vector<1x8x8xbf16>, vector<1x8x32xbf16>, vector<1x8x32xf32> -> vector<1x8x32xf32>
    "tpu.trace_stop"() : () -> ()
    %235 = vector.shape_cast %234 : vector<1x8x32xf32> to vector<8x32xf32>
    %236 = arith.truncf %235 : vector<8x32xf32> to vector<8x32xbf16>
    %c1_150 = arith.constant 1 : index
    %c0_151 = arith.constant 0 : index
    %c0_152 = arith.constant 0 : index
    %c0_153 = arith.constant 0 : index
    %237 = vector.load %arg8[%c1_150, %c0_151, %c0_152, %c0_153] : memref<2x4x32x128xbf16, #tpu.memory_space<vmem>>, vector<1x1x32x128xbf16>
    %238 = vector.shape_cast %237 : vector<1x1x32x128xbf16> to vector<32x128xbf16>
    %cst_154 = arith.constant dense<0.000000e+00> : vector<8x128xf32>
    %239 = tpu.matmul %236, %238, %cst_154 {dimension_numbers = #tpu.dot_dimension_numbers<[1], [0], [0], [1], [0, 0, 1, 1], [], []>} : vector<8x32xbf16>, vector<32x128xbf16>, vector<8x128xf32> -> vector<8x128xf32>
    %240 = arith.addf %215, %239 : vector<8x128xf32>
    %c0_155 = arith.constant 0 : index
    %c0_156 = arith.constant 0 : index
    %c32_157 = arith.constant 32 : index
    %241 = vector.load %arg19[%c0_155, %c0_156, %c32_157] : memref<1x8x384xbf16, #tpu.memory_space<vmem>>, vector<1x8x32xbf16>
    %c0_158 = arith.constant 0 : index
    %c0_159 = arith.constant 0 : index
    %c160_160 = arith.constant 160 : index
    %242 = vector.load %arg19[%c0_158, %c0_159, %c160_160] : memref<1x8x384xbf16, #tpu.memory_space<vmem>>, vector<1x8x32xbf16>
    %c0_161 = arith.constant 0 : index
    %c0_162 = arith.constant 0 : index
    %c288_163 = arith.constant 288 : index
    %243 = vector.load %arg19[%c0_161, %c0_162, %c288_163] : memref<1x8x384xbf16, #tpu.memory_space<vmem>>, vector<1x8x32xbf16>
    "tpu.trace_start"() <{level = 10 : i32, message = "bqd,bkd->bqk"}> : () -> ()
    %cst_164 = arith.constant dense<0.000000e+00> : vector<1x8x8xf32>
    %244 = tpu.matmul %241, %242, %cst_164 {dimension_numbers = #tpu.dot_dimension_numbers<[2], [2], [1], [1], [0, 0, 0, 1, 1, 1], [0], [0]>} : vector<1x8x32xbf16>, vector<1x8x32xbf16>, vector<1x8x8xf32> -> vector<1x8x8xf32>
    "tpu.trace_stop"() : () -> ()
    %cst_165 = arith.constant 0.176776692 : f32
    %245 = vector.broadcast %cst_165 : f32 to vector<1x8x8xf32>
    %246 = arith.mulf %244, %245 : vector<1x8x8xf32>
    %247 = arith.addf %246, %4 : vector<1x8x8xf32>
    %cst_166 = arith.constant dense<0xFF800000> : vector<1x8xf32>
    %248 = vector.multi_reduction <maximumf>, %247, %cst_166 [2] : vector<1x8x8xf32> to vector<1x8xf32>
    %249 = vector.shape_cast %248 : vector<1x8xf32> to vector<1x8x1xf32>
    %250 = vector.broadcast %249 : vector<1x8x1xf32> to vector<1x8x8xf32>
    %251 = arith.subf %247, %250 : vector<1x8x8xf32>
    %252 = math.exp %251 : vector<1x8x8xf32>
    %cst_167 = arith.constant dense<0.000000e+00> : vector<1x8xf32>
    %253 = vector.multi_reduction <add>, %252, %cst_167 [2] : vector<1x8x8xf32> to vector<1x8xf32>
    %254 = vector.shape_cast %253 : vector<1x8xf32> to vector<1x8x1xf32>
    %255 = tpu.reciprocal %254 {approx = true} : vector<1x8x1xf32> -> vector<1x8x1xf32>
    %256 = vector.broadcast %255 : vector<1x8x1xf32> to vector<1x8x8xf32>
    %257 = arith.mulf %252, %256 : vector<1x8x8xf32>
    %258 = arith.truncf %257 : vector<1x8x8xf32> to vector<1x8x8xbf16>
    "tpu.trace_start"() <{level = 10 : i32, message = "bqk,bkd->bqd"}> : () -> ()
    %cst_168 = arith.constant dense<0.000000e+00> : vector<1x8x32xf32>
    %259 = tpu.matmul %258, %243, %cst_168 {dimension_numbers = #tpu.dot_dimension_numbers<[2], [1], [1], [2], [0, 0, 0, 1, 1, 2], [0], [0]>} : vector<1x8x8xbf16>, vector<1x8x32xbf16>, vector<1x8x32xf32> -> vector<1x8x32xf32>
    "tpu.trace_stop"() : () -> ()
    %260 = vector.shape_cast %259 : vector<1x8x32xf32> to vector<8x32xf32>
    %261 = arith.truncf %260 : vector<8x32xf32> to vector<8x32xbf16>
    %c1_169 = arith.constant 1 : index
    %c1_170 = arith.constant 1 : index
    %c0_171 = arith.constant 0 : index
    %c0_172 = arith.constant 0 : index
    %262 = vector.load %arg8[%c1_169, %c1_170, %c0_171, %c0_172] : memref<2x4x32x128xbf16, #tpu.memory_space<vmem>>, vector<1x1x32x128xbf16>
    %263 = vector.shape_cast %262 : vector<1x1x32x128xbf16> to vector<32x128xbf16>
    %cst_173 = arith.constant dense<0.000000e+00> : vector<8x128xf32>
    %264 = tpu.matmul %261, %263, %cst_173 {dimension_numbers = #tpu.dot_dimension_numbers<[1], [0], [0], [1], [0, 0, 1, 1], [], []>} : vector<8x32xbf16>, vector<32x128xbf16>, vector<8x128xf32> -> vector<8x128xf32>
    %265 = arith.addf %240, %264 : vector<8x128xf32>
    %c0_174 = arith.constant 0 : index
    %c0_175 = arith.constant 0 : index
    %c64_176 = arith.constant 64 : index
    %266 = vector.load %arg19[%c0_174, %c0_175, %c64_176] : memref<1x8x384xbf16, #tpu.memory_space<vmem>>, vector<1x8x32xbf16>
    %c0_177 = arith.constant 0 : index
    %c0_178 = arith.constant 0 : index
    %c192_179 = arith.constant 192 : index
    %267 = vector.load %arg19[%c0_177, %c0_178, %c192_179] : memref<1x8x384xbf16, #tpu.memory_space<vmem>>, vector<1x8x32xbf16>
    %c0_180 = arith.constant 0 : index
    %c0_181 = arith.constant 0 : index
    %c320_182 = arith.constant 320 : index
    %268 = vector.load %arg19[%c0_180, %c0_181, %c320_182] : memref<1x8x384xbf16, #tpu.memory_space<vmem>>, vector<1x8x32xbf16>
    "tpu.trace_start"() <{level = 10 : i32, message = "bqd,bkd->bqk"}> : () -> ()
    %cst_183 = arith.constant dense<0.000000e+00> : vector<1x8x8xf32>
    %269 = tpu.matmul %266, %267, %cst_183 {dimension_numbers = #tpu.dot_dimension_numbers<[2], [2], [1], [1], [0, 0, 0, 1, 1, 1], [0], [0]>} : vector<1x8x32xbf16>, vector<1x8x32xbf16>, vector<1x8x8xf32> -> vector<1x8x8xf32>
    "tpu.trace_stop"() : () -> ()
    %cst_184 = arith.constant 0.176776692 : f32
    %270 = vector.broadcast %cst_184 : f32 to vector<1x8x8xf32>
    %271 = arith.mulf %269, %270 : vector<1x8x8xf32>
    %272 = arith.addf %271, %4 : vector<1x8x8xf32>
    %cst_185 = arith.constant dense<0xFF800000> : vector<1x8xf32>
    %273 = vector.multi_reduction <maximumf>, %272, %cst_185 [2] : vector<1x8x8xf32> to vector<1x8xf32>
    %274 = vector.shape_cast %273 : vector<1x8xf32> to vector<1x8x1xf32>
    %275 = vector.broadcast %274 : vector<1x8x1xf32> to vector<1x8x8xf32>
    %276 = arith.subf %272, %275 : vector<1x8x8xf32>
    %277 = math.exp %276 : vector<1x8x8xf32>
    %cst_186 = arith.constant dense<0.000000e+00> : vector<1x8xf32>
    %278 = vector.multi_reduction <add>, %277, %cst_186 [2] : vector<1x8x8xf32> to vector<1x8xf32>
    %279 = vector.shape_cast %278 : vector<1x8xf32> to vector<1x8x1xf32>
    %280 = tpu.reciprocal %279 {approx = true} : vector<1x8x1xf32> -> vector<1x8x1xf32>
    %281 = vector.broadcast %280 : vector<1x8x1xf32> to vector<1x8x8xf32>
    %282 = arith.mulf %277, %281 : vector<1x8x8xf32>
    %283 = arith.truncf %282 : vector<1x8x8xf32> to vector<1x8x8xbf16>
    "tpu.trace_start"() <{level = 10 : i32, message = "bqk,bkd->bqd"}> : () -> ()
    %cst_187 = arith.constant dense<0.000000e+00> : vector<1x8x32xf32>
    %284 = tpu.matmul %283, %268, %cst_187 {dimension_numbers = #tpu.dot_dimension_numbers<[2], [1], [1], [2], [0, 0, 0, 1, 1, 2], [0], [0]>} : vector<1x8x8xbf16>, vector<1x8x32xbf16>, vector<1x8x32xf32> -> vector<1x8x32xf32>
    "tpu.trace_stop"() : () -> ()
    %285 = vector.shape_cast %284 : vector<1x8x32xf32> to vector<8x32xf32>
    %286 = arith.truncf %285 : vector<8x32xf32> to vector<8x32xbf16>
    %c1_188 = arith.constant 1 : index
    %c2_189 = arith.constant 2 : index
    %c0_190 = arith.constant 0 : index
    %c0_191 = arith.constant 0 : index
    %287 = vector.load %arg8[%c1_188, %c2_189, %c0_190, %c0_191] : memref<2x4x32x128xbf16, #tpu.memory_space<vmem>>, vector<1x1x32x128xbf16>
    %288 = vector.shape_cast %287 : vector<1x1x32x128xbf16> to vector<32x128xbf16>
    %cst_192 = arith.constant dense<0.000000e+00> : vector<8x128xf32>
    %289 = tpu.matmul %286, %288, %cst_192 {dimension_numbers = #tpu.dot_dimension_numbers<[1], [0], [0], [1], [0, 0, 1, 1], [], []>} : vector<8x32xbf16>, vector<32x128xbf16>, vector<8x128xf32> -> vector<8x128xf32>
    %290 = arith.addf %265, %289 : vector<8x128xf32>
    %c0_193 = arith.constant 0 : index
    %c0_194 = arith.constant 0 : index
    %c96_195 = arith.constant 96 : index
    %291 = vector.load %arg19[%c0_193, %c0_194, %c96_195] : memref<1x8x384xbf16, #tpu.memory_space<vmem>>, vector<1x8x32xbf16>
    %c0_196 = arith.constant 0 : index
    %c0_197 = arith.constant 0 : index
    %c224_198 = arith.constant 224 : index
    %292 = vector.load %arg19[%c0_196, %c0_197, %c224_198] : memref<1x8x384xbf16, #tpu.memory_space<vmem>>, vector<1x8x32xbf16>
    %c0_199 = arith.constant 0 : index
    %c0_200 = arith.constant 0 : index
    %c352_201 = arith.constant 352 : index
    %293 = vector.load %arg19[%c0_199, %c0_200, %c352_201] : memref<1x8x384xbf16, #tpu.memory_space<vmem>>, vector<1x8x32xbf16>
    "tpu.trace_start"() <{level = 10 : i32, message = "bqd,bkd->bqk"}> : () -> ()
    %cst_202 = arith.constant dense<0.000000e+00> : vector<1x8x8xf32>
    %294 = tpu.matmul %291, %292, %cst_202 {dimension_numbers = #tpu.dot_dimension_numbers<[2], [2], [1], [1], [0, 0, 0, 1, 1, 1], [0], [0]>} : vector<1x8x32xbf16>, vector<1x8x32xbf16>, vector<1x8x8xf32> -> vector<1x8x8xf32>
    "tpu.trace_stop"() : () -> ()
    %cst_203 = arith.constant 0.176776692 : f32
    %295 = vector.broadcast %cst_203 : f32 to vector<1x8x8xf32>
    %296 = arith.mulf %294, %295 : vector<1x8x8xf32>
    %297 = arith.addf %296, %4 : vector<1x8x8xf32>
    %cst_204 = arith.constant dense<0xFF800000> : vector<1x8xf32>
    %298 = vector.multi_reduction <maximumf>, %297, %cst_204 [2] : vector<1x8x8xf32> to vector<1x8xf32>
    %299 = vector.shape_cast %298 : vector<1x8xf32> to vector<1x8x1xf32>
    %300 = vector.broadcast %299 : vector<1x8x1xf32> to vector<1x8x8xf32>
    %301 = arith.subf %297, %300 : vector<1x8x8xf32>
    %302 = math.exp %301 : vector<1x8x8xf32>
    %cst_205 = arith.constant dense<0.000000e+00> : vector<1x8xf32>
    %303 = vector.multi_reduction <add>, %302, %cst_205 [2] : vector<1x8x8xf32> to vector<1x8xf32>
    %304 = vector.shape_cast %303 : vector<1x8xf32> to vector<1x8x1xf32>
    %305 = tpu.reciprocal %304 {approx = true} : vector<1x8x1xf32> -> vector<1x8x1xf32>
    %306 = vector.broadcast %305 : vector<1x8x1xf32> to vector<1x8x8xf32>
    %307 = arith.mulf %302, %306 : vector<1x8x8xf32>
    %308 = arith.truncf %307 : vector<1x8x8xf32> to vector<1x8x8xbf16>
    "tpu.trace_start"() <{level = 10 : i32, message = "bqk,bkd->bqd"}> : () -> ()
    %cst_206 = arith.constant dense<0.000000e+00> : vector<1x8x32xf32>
    %309 = tpu.matmul %308, %293, %cst_206 {dimension_numbers = #tpu.dot_dimension_numbers<[2], [1], [1], [2], [0, 0, 0, 1, 1, 2], [0], [0]>} : vector<1x8x8xbf16>, vector<1x8x32xbf16>, vector<1x8x32xf32> -> vector<1x8x32xf32>
    "tpu.trace_stop"() : () -> ()
    %310 = vector.shape_cast %309 : vector<1x8x32xf32> to vector<8x32xf32>
    %311 = arith.truncf %310 : vector<8x32xf32> to vector<8x32xbf16>
    %c1_207 = arith.constant 1 : index
    %c3_208 = arith.constant 3 : index
    %c0_209 = arith.constant 0 : index
    %c0_210 = arith.constant 0 : index
    %312 = vector.load %arg8[%c1_207, %c3_208, %c0_209, %c0_210] : memref<2x4x32x128xbf16, #tpu.memory_space<vmem>>, vector<1x1x32x128xbf16>
    %313 = vector.shape_cast %312 : vector<1x1x32x128xbf16> to vector<32x128xbf16>
    %cst_211 = arith.constant dense<0.000000e+00> : vector<8x128xf32>
    %314 = tpu.matmul %311, %313, %cst_211 {dimension_numbers = #tpu.dot_dimension_numbers<[1], [0], [0], [1], [0, 0, 1, 1], [], []>} : vector<8x32xbf16>, vector<32x128xbf16>, vector<8x128xf32> -> vector<8x128xf32>
    %315 = arith.addf %290, %314 : vector<8x128xf32>
    %c1_212 = arith.constant 1 : index
    %c0_213 = arith.constant 0 : index
    %c0_214 = arith.constant 0 : index
    %316 = vector.load %arg9[%c1_212, %c0_213, %c0_214] : memref<2x1x128xf32, #tpu.memory_space<vmem>>, vector<1x1x128xf32>
    %317 = vector.shape_cast %316 : vector<1x1x128xf32> to vector<1x128xf32>
    %318 = vector.broadcast %317 : vector<1x128xf32> to vector<8x128xf32>
    %319 = arith.addf %315, %318 : vector<8x128xf32>
    %320 = arith.addf %203, %319 : vector<8x128xf32>
    %c1_215 = arith.constant 1 : index
    %c0_216 = arith.constant 0 : index
    %c0_217 = arith.constant 0 : index
    %321 = vector.load %arg10[%c1_215, %c0_216, %c0_217] : memref<2x1x128xf32, #tpu.memory_space<vmem>>, vector<1x1x128xf32>
    %322 = vector.shape_cast %321 : vector<1x1x128xf32> to vector<1x128xf32>
    %c1_218 = arith.constant 1 : index
    %c0_219 = arith.constant 0 : index
    %c0_220 = arith.constant 0 : index
    %323 = vector.load %arg11[%c1_218, %c0_219, %c0_220] : memref<2x1x128xf32, #tpu.memory_space<vmem>>, vector<1x1x128xf32>
    %324 = vector.shape_cast %323 : vector<1x1x128xf32> to vector<1x128xf32>
    %cst_221 = arith.constant dense<0.000000e+00> : vector<8xf32>
    %325 = vector.multi_reduction <add>, %320, %cst_221 [1] : vector<8x128xf32> to vector<8xf32>
    %326 = vector.shape_cast %325 : vector<8xf32> to vector<8x1xf32>
    %cst_222 = arith.constant 1.280000e+02 : f32
    %327 = vector.broadcast %cst_222 : f32 to vector<8x1xf32>
    %328 = arith.divf %326, %327 : vector<8x1xf32>
    %329 = arith.mulf %320, %320 : vector<8x128xf32>
    %cst_223 = arith.constant dense<0.000000e+00> : vector<8xf32>
    %330 = vector.multi_reduction <add>, %329, %cst_223 [1] : vector<8x128xf32> to vector<8xf32>
    %331 = vector.shape_cast %330 : vector<8xf32> to vector<8x1xf32>
    %cst_224 = arith.constant 1.280000e+02 : f32
    %332 = vector.broadcast %cst_224 : f32 to vector<8x1xf32>
    %333 = arith.divf %331, %332 : vector<8x1xf32>
    %334 = arith.mulf %328, %328 : vector<8x1xf32>
    %335 = arith.subf %333, %334 : vector<8x1xf32>
    %336 = vector.broadcast %328 : vector<8x1xf32> to vector<8x128xf32>
    %337 = arith.subf %320, %336 : vector<8x128xf32>
    %cst_225 = arith.constant 9.99999974E-6 : f32
    %338 = vector.broadcast %cst_225 : f32 to vector<8x1xf32>
    %339 = arith.addf %335, %338 : vector<8x1xf32>
    %340 = math.rsqrt %339 : vector<8x1xf32>
    %341 = vector.broadcast %340 : vector<8x1xf32> to vector<8x128xf32>
    %342 = arith.mulf %337, %341 : vector<8x128xf32>
    %343 = vector.broadcast %322 : vector<1x128xf32> to vector<8x128xf32>
    %344 = arith.mulf %342, %343 : vector<8x128xf32>
    %345 = vector.broadcast %324 : vector<1x128xf32> to vector<8x128xf32>
    %346 = arith.addf %344, %345 : vector<8x128xf32>
    %347 = arith.truncf %346 : vector<8x128xf32> to vector<8x128xbf16>
    %c1_226 = arith.constant 1 : index
    %c0_227 = arith.constant 0 : index
    %c0_228 = arith.constant 0 : index
    %348 = vector.load %arg12[%c1_226, %c0_227, %c0_228] : memref<2x128x256xbf16, #tpu.memory_space<vmem>>, vector<1x128x256xbf16>
    %349 = vector.shape_cast %348 : vector<1x128x256xbf16> to vector<128x256xbf16>
    %cst_229 = arith.constant dense<0.000000e+00> : vector<8x256xf32>
    %350 = tpu.matmul %347, %349, %cst_229 {dimension_numbers = #tpu.dot_dimension_numbers<[1], [0], [0], [1], [0, 0, 1, 1], [], []>} : vector<8x128xbf16>, vector<128x256xbf16>, vector<8x256xf32> -> vector<8x256xf32>
    %c1_230 = arith.constant 1 : index
    %c0_231 = arith.constant 0 : index
    %c0_232 = arith.constant 0 : index
    %351 = vector.load %arg13[%c1_230, %c0_231, %c0_232] : memref<2x1x256xf32, #tpu.memory_space<vmem>>, vector<1x1x256xf32>
    %352 = vector.shape_cast %351 : vector<1x1x256xf32> to vector<1x256xf32>
    %353 = vector.broadcast %352 : vector<1x256xf32> to vector<8x256xf32>
    %354 = arith.addf %350, %353 : vector<8x256xf32>
    %cst_233 = arith.constant 0.000000e+00 : f32
    %355 = vector.broadcast %cst_233 : f32 to vector<8x256xf32>
    %356 = arith.maximumf %354, %355 : vector<8x256xf32>
    %357 = arith.truncf %356 : vector<8x256xf32> to vector<8x256xbf16>
    %c1_234 = arith.constant 1 : index
    %c0_235 = arith.constant 0 : index
    %c0_236 = arith.constant 0 : index
    %358 = vector.load %arg14[%c1_234, %c0_235, %c0_236] : memref<2x256x128xbf16, #tpu.memory_space<vmem>>, vector<1x256x128xbf16>
    %359 = vector.shape_cast %358 : vector<1x256x128xbf16> to vector<256x128xbf16>
    %cst_237 = arith.constant dense<0.000000e+00> : vector<8x128xf32>
    %360 = tpu.matmul %357, %359, %cst_237 {dimension_numbers = #tpu.dot_dimension_numbers<[1], [0], [0], [1], [0, 0, 1, 1], [], []>} : vector<8x256xbf16>, vector<256x128xbf16>, vector<8x128xf32> -> vector<8x128xf32>
    %c1_238 = arith.constant 1 : index
    %c0_239 = arith.constant 0 : index
    %c0_240 = arith.constant 0 : index
    %361 = vector.load %arg15[%c1_238, %c0_239, %c0_240] : memref<2x1x128xf32, #tpu.memory_space<vmem>>, vector<1x1x128xf32>
    %362 = vector.shape_cast %361 : vector<1x1x128xf32> to vector<1x128xf32>
    %363 = vector.broadcast %362 : vector<1x128xf32> to vector<8x128xf32>
    %364 = arith.addf %360, %363 : vector<8x128xf32>
    %365 = arith.addf %346, %364 : vector<8x128xf32>
    %c1_241 = arith.constant 1 : index
    %c0_242 = arith.constant 0 : index
    %c0_243 = arith.constant 0 : index
    %366 = vector.load %arg16[%c1_241, %c0_242, %c0_243] : memref<2x1x128xf32, #tpu.memory_space<vmem>>, vector<1x1x128xf32>
    %367 = vector.shape_cast %366 : vector<1x1x128xf32> to vector<1x128xf32>
    %c1_244 = arith.constant 1 : index
    %c0_245 = arith.constant 0 : index
    %c0_246 = arith.constant 0 : index
    %368 = vector.load %arg17[%c1_244, %c0_245, %c0_246] : memref<2x1x128xf32, #tpu.memory_space<vmem>>, vector<1x1x128xf32>
    %369 = vector.shape_cast %368 : vector<1x1x128xf32> to vector<1x128xf32>
    %cst_247 = arith.constant dense<0.000000e+00> : vector<8xf32>
    %370 = vector.multi_reduction <add>, %365, %cst_247 [1] : vector<8x128xf32> to vector<8xf32>
    %371 = vector.shape_cast %370 : vector<8xf32> to vector<8x1xf32>
    %cst_248 = arith.constant 1.280000e+02 : f32
    %372 = vector.broadcast %cst_248 : f32 to vector<8x1xf32>
    %373 = arith.divf %371, %372 : vector<8x1xf32>
    %374 = arith.mulf %365, %365 : vector<8x128xf32>
    %cst_249 = arith.constant dense<0.000000e+00> : vector<8xf32>
    %375 = vector.multi_reduction <add>, %374, %cst_249 [1] : vector<8x128xf32> to vector<8xf32>
    %376 = vector.shape_cast %375 : vector<8xf32> to vector<8x1xf32>
    %cst_250 = arith.constant 1.280000e+02 : f32
    %377 = vector.broadcast %cst_250 : f32 to vector<8x1xf32>
    %378 = arith.divf %376, %377 : vector<8x1xf32>
    %379 = arith.mulf %373, %373 : vector<8x1xf32>
    %380 = arith.subf %378, %379 : vector<8x1xf32>
    %381 = vector.broadcast %373 : vector<8x1xf32> to vector<8x128xf32>
    %382 = arith.subf %365, %381 : vector<8x128xf32>
    %cst_251 = arith.constant 9.99999974E-6 : f32
    %383 = vector.broadcast %cst_251 : f32 to vector<8x1xf32>
    %384 = arith.addf %380, %383 : vector<8x1xf32>
    %385 = math.rsqrt %384 : vector<8x1xf32>
    %386 = vector.broadcast %385 : vector<8x1xf32> to vector<8x128xf32>
    %387 = arith.mulf %382, %386 : vector<8x128xf32>
    %388 = vector.broadcast %367 : vector<1x128xf32> to vector<8x128xf32>
    %389 = arith.mulf %387, %388 : vector<8x128xf32>
    %390 = vector.broadcast %369 : vector<1x128xf32> to vector<8x128xf32>
    %391 = arith.addf %389, %390 : vector<8x128xf32>
    %392 = vector.shape_cast %391 : vector<8x128xf32> to vector<1x8x128xf32>
    %393 = arith.truncf %392 : vector<1x8x128xf32> to vector<1x8x128xbf16>
    %c0_252 = arith.constant 0 : index
    %c0_253 = arith.constant 0 : index
    %c0_254 = arith.constant 0 : index
    %394 = vector.load %arg18[%c0_252, %c0_253, %c0_254] : memref<1x8x128xbf16, #tpu.memory_space<vmem>>, vector<1x8x128xbf16>
    tpu.vector_store %arg18[%c0_252, %c0_253, %c0_254], %393 {strides = array<i32>} : memref<1x8x128xbf16, #tpu.memory_space<vmem>>, vector<1x8x128xbf16>,
    return
  }
  func.func @transform_0(%arg0: i32) -> (i32, i32, i32) {
    %c0_i32 = arith.constant 0 : i32
    %c0_i32_0 = arith.constant 0 : i32
    %c0_i32_1 = arith.constant 0 : i32
    return %arg0, %c0_i32, %c0_i32_0 : i32, i32, i32
  }
  func.func @transform_1(%arg0: i32) -> (i32, i32, i32) {
    %c0_i32 = arith.constant 0 : i32
    %c0_i32_0 = arith.constant 0 : i32
    %c0_i32_1 = arith.constant 0 : i32
    return %arg0, %c0_i32, %c0_i32_0 : i32, i32, i32
  }
  func.func @transform_2(%arg0: i32) -> (i32, i32, i32) {
    %c0_i32 = arith.constant 0 : i32
    %c0_i32_0 = arith.constant 0 : i32
    %c0_i32_1 = arith.constant 0 : i32
    return %arg0, %c0_i32, %c0_i32_0 : i32, i32, i32
  }
  func.func @transform_3(%arg0: i32) -> (i32, i32) {
    %c0_i32 = arith.constant 0 : i32
    %c0_i32_0 = arith.constant 0 : i32
    %c0_i32_1 = arith.constant 0 : i32
    return %c0_i32, %c0_i32_0 : i32, i32
  }
  func.func @transform_4(%arg0: i32) -> (i32, i32) {
    %c0_i32 = arith.constant 0 : i32
    %c0_i32_0 = arith.constant 0 : i32
    %c0_i32_1 = arith.constant 0 : i32
    return %c0_i32, %c0_i32_0 : i32, i32
  }
  func.func @transform_5(%arg0: i32) -> (i32, i32, i32) {
    %c0_i32 = arith.constant 0 : i32
    %c0_i32_0 = arith.constant 0 : i32
    %c0_i32_1 = arith.constant 0 : i32
    %c0_i32_2 = arith.constant 0 : i32
    return %c0_i32, %c0_i32_0, %c0_i32_1 : i32, i32, i32
  }
  func.func @transform_6(%arg0: i32) -> (i32, i32, i32) {
    %c0_i32 = arith.constant 0 : i32
    %c0_i32_0 = arith.constant 0 : i32
    %c0_i32_1 = arith.constant 0 : i32
    %c0_i32_2 = arith.constant 0 : i32
    return %c0_i32, %c0_i32_0, %c0_i32_1 : i32, i32, i32
  }
  func.func @transform_7(%arg0: i32) -> (i32, i32, i32, i32) {
    %c0_i32 = arith.constant 0 : i32
    %c0_i32_0 = arith.constant 0 : i32
    %c0_i32_1 = arith.constant 0 : i32
    %c0_i32_2 = arith.constant 0 : i32
    %c0_i32_3 = arith.constant 0 : i32
    return %c0_i32, %c0_i32_0, %c0_i32_1, %c0_i32_2 : i32, i32, i32, i32
  }
  func.func @transform_8(%arg0: i32) -> (i32, i32, i32) {
    %c0_i32 = arith.constant 0 : i32
    %c0_i32_0 = arith.constant 0 : i32
    %c0_i32_1 = arith.constant 0 : i32
    %c0_i32_2 = arith.constant 0 : i32
    return %c0_i32, %c0_i32_0, %c0_i32_1 : i32, i32, i32
  }
  func.func @transform_9(%arg0: i32) -> (i32, i32, i32) {
    %c0_i32 = arith.constant 0 : i32
    %c0_i32_0 = arith.constant 0 : i32
    %c0_i32_1 = arith.constant 0 : i32
    %c0_i32_2 = arith.constant 0 : i32
    return %c0_i32, %c0_i32_0, %c0_i32_1 : i32, i32, i32
  }
  func.func @transform_10(%arg0: i32) -> (i32, i32, i32) {
    %c0_i32 = arith.constant 0 : i32
    %c0_i32_0 = arith.constant 0 : i32
    %c0_i32_1 = arith.constant 0 : i32
    %c0_i32_2 = arith.constant 0 : i32
    return %c0_i32, %c0_i32_0, %c0_i32_1 : i32, i32, i32
  }
  func.func @transform_11(%arg0: i32) -> (i32, i32, i32) {
    %c0_i32 = arith.constant 0 : i32
    %c0_i32_0 = arith.constant 0 : i32
    %c0_i32_1 = arith.constant 0 : i32
    %c0_i32_2 = arith.constant 0 : i32
    return %c0_i32, %c0_i32_0, %c0_i32_1 : i32, i32, i32
  }
  func.func @transform_12(%arg0: i32) -> (i32, i32, i32) {
    %c0_i32 = arith.constant 0 : i32
    %c0_i32_0 = arith.constant 0 : i32
    %c0_i32_1 = arith.constant 0 : i32
    %c0_i32_2 = arith.constant 0 : i32
    return %c0_i32, %c0_i32_0, %c0_i32_1 : i32, i32, i32
  }
  func.func @transform_13(%arg0: i32) -> (i32, i32, i32) {
    %c0_i32 = arith.constant 0 : i32
    %c0_i32_0 = arith.constant 0 : i32
    %c0_i32_1 = arith.constant 0 : i32
    %c0_i32_2 = arith.constant 0 : i32
    return %c0_i32, %c0_i32_0, %c0_i32_1 : i32, i32, i32
  }
  func.func @transform_14(%arg0: i32) -> (i32, i32, i32) {
    %c0_i32 = arith.constant 0 : i32
    %c0_i32_0 = arith.constant 0 : i32
    %c0_i32_1 = arith.constant 0 : i32
    %c0_i32_2 = arith.constant 0 : i32
    return %c0_i32, %c0_i32_0, %c0_i32_1 : i32, i32, i32
  }
  func.func @transform_15(%arg0: i32) -> (i32, i32, i32) {
    %c0_i32 = arith.constant 0 : i32
    %c0_i32_0 = arith.constant 0 : i32
    %c0_i32_1 = arith.constant 0 : i32
    %c0_i32_2 = arith.constant 0 : i32
    return %c0_i32, %c0_i32_0, %c0_i32_1 : i32, i32, i32
  }
  func.func @transform_16(%arg0: i32) -> (i32, i32, i32) {
    %c0_i32 = arith.constant 0 : i32
    %c0_i32_0 = arith.constant 0 : i32
    %c0_i32_1 = arith.constant 0 : i32
    %c0_i32_2 = arith.constant 0 : i32
    return %c0_i32, %c0_i32_0, %c0_i32_1 : i32, i32, i32
  }
  func.func @transform_17(%arg0: i32) -> (i32, i32, i32) {
    %c0_i32 = arith.constant 0 : i32
    %c0_i32_0 = arith.constant 0 : i32
    %c0_i32_1 = arith.constant 0 : i32
    return %arg0, %c0_i32, %c0_i32_0 : i32, i32, i32
  }
}

</mosaic_0001>

<bundles_post_ra>
// kernel: tpu_custom_call.1
= control target key start
LH: loop header
LB: loop body
LE: loop exit
PB: predicated region body
PF: predicated region fallthrough
CT: control target
= control target key end

     0   :  { %s5713_s0 = inlined_call_operand.hbm [shape: f32[2,8,16], index: 0, kind: input, shape index: {}]   ;;  %s5714_s1 = inlined_call_operand.hbm [shape: f32[2,1,8], index: 1, kind: input, shape index: {}]   ;;  %s5715_s2 = inlined_call_operand.hbm [shape: f32[2,1,128], index: 2, kind: input, shape index: {}]   ;;  %s5716_s3 = inlined_call_operand.hbm [shape: bf16[16,128], index: 3, kind: input, shape index: {}]   ;;  %s5717_s4 = inlined_call_operand.hbm [shape: f32[1,128], index: 4, kind: input, shape index: {}]   ;;  %s5718_s5 = inlined_call_operand.hbm [shape: bf16[2,128,384], index: 5, kind: input, shape index: {}]   ;;  %s5719_s6 = inlined_call_operand.vmem [shape: f32[2,1,384], index: 6, kind: input, shape index: {}]   ;;  %s5720_s7 = inlined_call_operand.hbm [shape: bf16[2,4,32,128], index: 7, kind: input, shape index: {}]   ;;  %s5721_s8 = inlined_call_operand.vmem [shape: f32[2,1,128], index: 8, kind: input, shape index: {}]   ;;  %s5722_s9 = inlined_call_operand.vmem [shape: f32[2,1,128], index: 9, kind: input, shape index: {}]   ;;  %s5723_s10 = inlined_call_operand.vmem [shape: f32[2,1,128], index: 10, kind: input, shape index: {}]   ;;  %s5724_s11 = inlined_call_operand.hbm [shape: bf16[2,128,256], index: 11, kind: input, shape index: {}]   ;;  %s5725_s12 = inlined_call_operand.vmem [shape: f32[2,1,256], index: 12, kind: input, shape index: {}]   ;;  %s5726_s13 = inlined_call_operand.hbm [shape: bf16[2,256,128], index: 13, kind: input, shape index: {}]   ;;  %s5727_s14 = inlined_call_operand.vmem [shape: f32[2,1,128], index: 14, kind: input, shape index: {}]   ;;  %s5728_s15 = inlined_call_operand.vmem [shape: f32[2,1,128], index: 15, kind: input, shape index: {}]   ;;  %s5729_s16 = inlined_call_operand.vmem [shape: f32[2,1,128], index: 16, kind: input, shape index: {}]   ;;  %s5730_s17 = inlined_call_operand.hbm [shape: bf16[2,8,128], index: 17, kind: output, shape index: {}]  }
   0x1   :  { %5763 = sst [smem:[#allocation31_spill]] %s5713_s0 }
   0x2   :  { %5764 = sst [smem:[#allocation32_spill]] %s5714_s1 }
   0x3   :  { %5765 = sst [smem:[#allocation33_spill]] %s5716_s3 }
   0x4   :  { %5766 = sst [smem:[#allocation34_spill]] %s5717_s4 }
   0x5   :  { %5767 = sst [smem:[#allocation35_spill]] %s5718_s5 }
   0x6   :  { %5768 = sst [smem:[#allocation36_spill]] %s5722_s9 }
   0x7   :  { %5769 = sst [smem:[#allocation37_spill]] %s5723_s10 }
   0x8   :  { %5770 = sst [smem:[#allocation38_spill]] %s5724_s11 }
   0x9   :  { %5771 = sst [smem:[#allocation39_spill]] %s5725_s12 }
   0xa   :  { %5772 = sst [smem:[#allocation40_spill]] %s5727_s14 }
   0xb   :  { %5773 = sst [smem:[#allocation41_spill]] %s5728_s15 }
   0xc   :  { %5774 = sst [smem:[#allocation42_spill]] %s5729_s16 }
   0xd   :  { %5775 = sst [smem:[#allocation43_spill]] %s5730_s17 }
   0xe   :  { %22 = vsyncpa [#allocation4], 0 }
   0xf   :  { %24 = vsyncpa [#allocation4 + $0x1], 0 }
  0x10   :  { %25 = vsyncpa [#allocation7], 0 }
  0x11   :  { %27 = vsyncpa [#allocation7 + $0x1], 0 }
  0x12   :  { %28 = vsyncpa [#allocation10], 0 }
  0x13   :  { %29 = vsyncpa [#allocation13], 0 }
  0x14   :  { %30 = vsyncpa [#allocation16], 0 }
  0x15   :  { %31 = vsyncpa [#allocation5], 0 }
  0x16   :  { %33 = vsyncpa [#allocation5 + $0x1], 0  ;;  %s5119_s24 = smov 0   ;;  %s5121_s25 = smov 0  }
  0x17   :  { %s5123_s26 = smov 0   ;;  %s5125_s27 = smov 0  }
  0x18 LB: > { %5776 = sst [smem:[#allocation25_spill]] %s4993_s24  ;;  %s5007_s28 = smov [#allocation9]   ;;  %s5005_s27 = sphi %s5125_s27, %s5824_s27   ;;  %s5001_s26 = sphi %s5123_s26, %s5826_s26   ;;  %s4997_s25 = sphi %s5121_s25, %s5828_s25   ;;  %s4993_s24 = sphi %s5119_s24, %s5827_s24  }
  0x19   : > { %5777 = sst [smem:[#allocation26_spill]] %s5001_s26  ;;  %s454_s29 = sshll.u32 %s5007_s28, 4  ;;  %s455_s29 = int_to_ptr.vmem [resolvable:$true] %s454_s29 }
  0x1a   : > { %s5140_s0 = sadd.s32 4294967295, %s5005_s27   ;;  %p3782_p0 = scmp.ge.s32.totalorder %s5005_s27, 1 }
  0x1b   : > { %p5749_p1 = scmp.eq.s32.totalorder %s5140_s0, 0  ;;  %p442_p2 = scmp.lt.s32.totalorder %s5005_s27, 3 }
  0x1c   : > { %s5008_s18 = smov [#allocation12]   ;;  %s5009_s20 = smov [#allocation15]  }
  0x1d   : > { %p5145_p3 = pnand %p3782_p0, %p442_p2  ;;  %s478_s19 = sshll.u32 %s5008_s18, 4  ;;  %s5158_s19 = int_to_ptr.vmem [resolvable:$true] %s478_s19 }
  0x1e   : > { %s5160_s21 = sshll.u32 %s5009_s20, 4  ;;  %s4696_s23 = scalar_lea.vmem %s455_s29, 128  ;;  %s517_s21 = int_to_ptr.vmem [resolvable:$true] %s5160_s21 }
  0x1f   : > { %s5778_s30 = scalar_select %p5145_p3, 1, 0 }
  0x20   : > { %p4368_p5 = pneg %p5145_p3  ;;  %p4697_p8 = scmp.ne.s32.totalorder %s455_s29, %s4696_s23 }
  0x21   : > { %p4704_p11 = scmp.lt.s32.totalorder %s455_s29, %s455_s29  ;;  %p4705_p12 = scmp.lt.s32.totalorder %s4696_s23, %s4696_s23 }
  0x22   : > { %p5154_p6 = pnand %p4368_p5, %p5749_p1 }
  0x23   : > { %p4706_p13 = por %p4705_p12, %p4704_p11 }
  0x24   : > { %s5779_s1 = scalar_select %p5154_p6, 1, 0 }
  0x25   : > { %p5164_p7 = pneg %p5154_p6 }
  0x27   : > { %s5780_s22 = scalar_select %p5164_p7, 1, 0 }
  0x28   : > { %p4699_p9 = pnand %p4697_p8, %p5164_p7 }
  0x2a   : > { %p4700_p10 = pneg %p4699_p9 }
  0x2c   : > { %p4707_p0 = pnand %p4706_p13, %p4700_p10 }
  0x2e   : > { %4710 = shalt.err (!%p4707_p0)
}
  0x2f   : > { %s5736_s28 = smov 64   ;;  %s5738_s18 = smov 4  }
  0x30   : > { %s5781_s3 = sld [smem:[#allocation33_spill]]  ;;  %s4722_s16 = scalar_lea.vmem %s5158_s19, 6144 }
  0x31   : > { %p4723_p2 = scmp.ne.s32.totalorder %s5158_s19, %s4722_s16  ;;  %p4730_p9 = scmp.lt.s32.totalorder %s5158_s19, %s5158_s19 }
  0x32   : > { %p4731_p10 = scmp.lt.s32.totalorder %s4722_s16, %s4722_s16 }
  0x33   : > { %p4725_p5 = pnand %p4723_p2, %p5164_p7 }
  0x34   : > { %p4732_p11 = por %p4731_p10, %p4730_p9 }
  0x35   : > { %p4726_p8 = pneg %p4725_p5 }
  0x36   : > { %4371 = dma.hbm_to_vmem [thread:$0]  (!%p5154_p6), %s5781_s3, 128, %s455_s29, [#allocation10], %s5736_s28, %s5736_s28, %s5738_s18  }
  0x37   : > { %p4733_p12 = pnand %p4732_p11, %p4726_p8 }
  0x39   : > { %4736 = shalt.err (!%p4733_p12)
}
  0x3a   : > { %s5012_s23 = smov 192   ;;  %s5013_s15 = smov 12  }
  0x3b   : > { %s5782_s5 = sld [smem:[#allocation35_spill]]  ;;  %s4748_s20 = scalar_lea.vmem %s517_s21, 4096 }
  0x3c   : > { %p4749_p13 = scmp.ne.s32.totalorder %s517_s21, %s4748_s20  ;;  %p4756_p5 = scmp.lt.s32.totalorder %s517_s21, %s517_s21 }
  0x3d   : > { %p4757_p8 = scmp.lt.s32.totalorder %s4748_s20, %s4748_s20 }
  0x3e   : > { %p4751_p0 = pnand %p4749_p13, %p5164_p7 }
  0x3f   : > { %p4758_p9 = por %p4757_p8, %p4756_p5 }
  0x40   : > { %p4752_p2 = pneg %p4751_p0 }
  0x41   : > { %4377 = dma.hbm_to_vmem [thread:$0]  (!%p5154_p6), %s5782_s5, 6144, %s5158_s19, [#allocation13], %s5012_s23, %s5012_s23, %s5013_s15  }
  0x42   : > { %p4759_p10 = pnand %p4758_p9, %p4752_p2 }
  0x44   : > { %4762 = shalt.err (!%p4759_p10)
}
  0x45   : > { %s5014_s16 = smov 128   ;;  %s5015_s15 = smov 8  }
  0x46   : > { %s5783_s11 = sld [smem:[#allocation38_spill]]  ;;  %s3781_s17 = sadd.s32 4294967294, %s5005_s27  }
  0x47   : > { %s5200_s29 = sadd.s32 1, %s5005_s27   ;;  %s46_s20 = sadd.s32 1, %s5001_s26 }
  0x48   : > { %5784 = sst [smem:[#allocation27_spill]] %s5200_s29  ;;  %s43_s28 = ssub.s32 %s5005_s27, %s5200_s29 }
  0x49   : > { %p53_p11 = scmp.ne.s32.totalorder %s5001_s26, %s4997_s25  ;;  %p44_p12 = scmp.eq.s32.totalorder %s43_s28, 0 }
  0x4a   : > { %p54_p13 = scmp.eq.s32.totalorder %s5005_s27, 0  ;;  %p59_p0 = scmp.ne.s32.totalorder %s4997_s25, %s4993_s24 }
  0x4b   : > { %p429_p2 = scmp.eq.s32.totalorder %s5140_s0, 1  ;;  %p435_p10 = scmp.eq.s32.totalorder %s3781_s17, 1 }
  0x4c   : > { %4383 = dma.hbm_to_vmem [thread:$0]  (!%p5154_p6), %s5783_s11, 4096, %s517_s21, [#allocation16], %s5014_s16, %s5014_s16, %s5015_s15  }
  0x4d   : > { %s5212_s18 = scalar_select %p44_p12, %s5001_s26, %s46_s20  }
  0x4e   : > { %p55_p5 = por %p54_p13, %p53_p11  ;;  %p5216_p8 = por %p5749_p1, %p59_p0 }
  0x4f   : > { %5785 = sst [smem:[#allocation28_spill]] %s5212_s18  ;;  %p5220_p9 = por %p429_p2, %p53_p11 }
  0x50   : > { %s5786_s21 = scalar_select %p5216_p8, 1, 0 }
  0x51   : > { %s5787_s16 = scalar_select %p5220_p9, 1, 0 }
  0x52   : > { %p4407_p4 = scmp.lt.s32.totalorder %s5005_s27, 2  ;;  %s5226_s15 = sand.u32 1, %s5001_s26  }
  0x53   : > { %5788 = sst [smem:[#allocation29_spill]] %s5787_s16  ;;  %p5228_p3 = por %p435_p10, %p59_p0 }
  0x54   : > { %s573_s19 = sand.u32 1, %s5005_s27   ;;  %p5233_p12 = pnand %p4407_p4, %p55_p5 }
  0x55   : > { %s5789_s28 = scalar_select %p5228_p3, 1, 0 }
  0x56   : > { %s5791_s23 = scalar_select %p5233_p12, 1, 0 }
  0x57   : > { %5790 = sst [smem:[#allocation30_spill]] %s5789_s28  ;;  %s3792_s20 = sshll.u32 %s5005_s27, 4 }
  0x58   : > { %s5792_s11 = sld [smem:[#allocation32_spill]]  ;;  %s576_s17 = scalar_lea.vmem [#allocation6], %s5226_s15 }
  0x59   : > { %s583_s26 = sshll.u32 %s576_s17, 4  ;;  %s5247_s28 = scalar_lea.hbm %s5715_s2, %s3792_s20  ;;  %s584_s26 = int_to_ptr.vmem [resolvable:$true] %s583_s26 }
  0x5a   : > { %s5249_s16 = scalar_lea.sflag [#allocation7], %s573_s19  ;;  %p5255_p11 = pneg %p5233_p12 }
  0x5c   : > { %s5793_s3 = scalar_select %p5255_p11, 1, 0 }
  0x5e   : > { %s5241_s18 = scalar_lea.hbm %s5792_s11, %s3792_s20  ;;  %s4768_s24 = scalar_lea.hbm %s5792_s11, 32 }
  0x5f   : > { %s4763_s14 = scalar_lea.hbm %s5241_s18, 16  ;;  %p4769_p2 = scmp.lt.s32.totalorder %s5241_s18, %s5792_s11 }
  0x60   : > { %p4764_p4 = scmp.ne.s32.totalorder %s5241_s18, %s4763_s14  ;;  %p4770_p5 = scmp.lt.s32.totalorder %s4768_s24, %s4763_s14 }
  0x62   : > { %p4766_p13 = pnand %p5255_p11, %p4764_p4  ;;  %p4771_p10 = por %p4770_p5, %p4769_p2 }
  0x64   : > { %p4767_p0 = pneg %p4766_p13 }
  0x66   : > { %p4772_p1 = pnand %p4771_p10, %p4767_p0 }
  0x68   : > { %4775 = shalt.err (!%p4772_p1)
}
  0x69   : > { %s4776_s19 = scalar_lea.vmem %s584_s26, 16  ;;  %s5016_s12 = smov [#allocation6]  }
  0x6a   : > { %p4777_p3 = scmp.ne.s32.totalorder %s584_s26, %s4776_s19  ;;  %s4781_s10 = sshll.u32 %s5016_s12, 4  ;;  %s4782_s10 = int_to_ptr.vmem [resolvable:$false] %s4781_s10 }
  0x6b   : > { %s4783_s9 = scalar_lea.vmem %s4782_s10, 32  ;;  %p4784_p4 = scmp.lt.s32.totalorder %s584_s26, %s4782_s10 }
  0x6c   : > { %p4779_p9 = pnand %p4777_p3, %p5255_p11  ;;  %p4785_p13 = scmp.lt.s32.totalorder %s4783_s9, %s4776_s19 }
  0x6e   : > { %p4780_p8 = pneg %p4779_p9  ;;  %p4786_p6 = por %p4785_p13, %p4784_p4 }
  0x70   : > { %p4787_p7 = pnand %p4786_p6, %p4780_p8 }
  0x72   : > { %4790 = shalt.err (!%p4787_p7)
}
  0x73   : > { %4393 = dma.hbm_to_vmem [thread:$0]  (!%p5233_p12), %s5241_s18, 16, %s584_s26, %s5249_s16  }
  0x74   : > { %s5017_s14 = smov [#allocation11]   ;;  %s5018_s17 = smov [#allocation14]  }
  0x75   : > { %s468_s5 = sshll.u32 %s5017_s14, 4  ;;  %s494_s24 = sshll.u32 %s5018_s17, 4  ;;  %s469_s5 = int_to_ptr.vmem [resolvable:$true] %s468_s5  ;;  %s495_s24 = int_to_ptr.vmem [resolvable:$true] %s494_s24 }
  0x76   : > { %s4802_s29 = scalar_lea.vmem %s469_s5, 16  ;;  %p5794_p3 = scmp.ne.s32.totalorder %s5780_s22, 0 }
  0x77   : > { %p4803_p1 = scmp.ne.s32.totalorder %s469_s5, %s4802_s29  ;;  %s4809_s9 = scalar_lea.vmem %s469_s5, 32 }
  0x78   : > { %p4810_p2 = scmp.lt.s32.totalorder %s469_s5, %s469_s5  ;;  %p4811_p6 = scmp.lt.s32.totalorder %s4809_s9, %s4802_s29 }
  0x79   : > { %p4805_p9 = pnand %p4803_p1, %p5794_p3 }
  0x7a   : > { %p4812_p7 = por %p4811_p6, %p4810_p2 }
  0x7b   : > { %p4806_p0 = pneg %p4805_p9 }
  0x7d   : > { %p4813_p8 = pnand %p4812_p7, %p4806_p0 }
  0x7f   : > { %4816 = shalt.err (!%p4813_p8)
}
  0x80   : > { %p5795_p5 = scmp.ne.s32.totalorder %s5779_s1, 0  ;;  %s5796_s4 = sld [smem:[#allocation34_spill]] }
  0x81   : > { %s4828_s26 = scalar_lea.vmem %s495_s24, 2048  ;;  %p4836_p1 = scmp.lt.s32.totalorder %s495_s24, %s495_s24 }
  0x82   : > { %p4829_p10 = scmp.ne.s32.totalorder %s495_s24, %s4828_s26  ;;  %p4837_p9 = scmp.lt.s32.totalorder %s4828_s26, %s4828_s26 }
  0x84   : > { %p4831_p4 = pnand %p4829_p10, %p5794_p3  ;;  %p4838_p12 = por %p4837_p9, %p4836_p1 }
  0x86   : > { %4374 = dma.hbm_to_vmem [thread:$0]  (!%p5795_p5), %s5796_s4, 16, %s469_s5, [#allocation10]  }
  0x87   : > { %p4832_p13 = pneg %p4831_p4 }
  0x89   : > { %p4839_p11 = pnand %p4838_p12, %p4832_p13 }
  0x8b   : > { %4842 = shalt.err (!%p4839_p11)
}
  0x8c   : > { %s5797_s18 = smov 4   ;;  %s5798_s20 = smov 64  }
  0x8d   : > { %4380 = dma.hbm_to_vmem [thread:$0]  (!%p5795_p5), %s5720_s7, 2048, %s495_s24, [#allocation13], %s5798_s20, %s5798_s20, %s5797_s18  }
  0x8e   : > { %s5019_s5 = smov [#allocation17]   ;;  %s3790_s29 = sshll.u32 %s5226_s15, 3 }
  0x8f   : > { %s532_s17 = sshll.u32 %s5019_s5, 4  ;;  %s533_s17 = int_to_ptr.vmem [resolvable:$true] %s532_s17 }
  0x90   : > { %s4854_s9 = scalar_lea.vmem %s533_s17, 4096  ;;  %p4862_p2 = scmp.lt.s32.totalorder %s533_s17, %s533_s17 }
  0x91   : > { %p4855_p0 = scmp.ne.s32.totalorder %s533_s17, %s4854_s9  ;;  %p4863_p6 = scmp.lt.s32.totalorder %s4854_s9, %s4854_s9 }
  0x93   : > { %p4857_p12 = pnand %p4855_p0, %p5794_p3  ;;  %p4864_p7 = por %p4863_p6, %p4862_p2 }
  0x95   : > { %p4858_p11 = pneg %p4857_p12 }
  0x97   : > { %p4865_p8 = pnand %p4864_p7, %p4858_p11 }
  0x99   : > { %4868 = shalt.err (!%p4865_p8)
}
  0x9a   : > { %4386 = dma.hbm_to_vmem [thread:$0]  (!%p5795_p5), %s5726_s13, 4096, %s533_s17, [#allocation16], %s5798_s20, %s5798_s20, %s5797_s18  }
  0x9b   : > { %s3791_s22 = sshll.u32 %s5005_s27, 7  ;;  %s5799_s19 = sld [smem:[#allocation31_spill]] }
  0x9c   : > { %s559_s1 = scalar_lea.vmem [#allocation3], %s3790_s29  ;;  %s556_s9 = scalar_lea.sflag [#allocation4], %s5226_s15 }
  0x9d   : > { %s566_s5 = sshll.u32 %s559_s1, 4  ;;  %p5800_p10 = scmp.ne.s32.totalorder %s5793_s3, 0  ;;  %s567_s5 = int_to_ptr.vmem [resolvable:$true] %s566_s5 }
  0xa1   : > { %s5306_s14 = scalar_lea.hbm %s5799_s19, %s3791_s22  ;;  %s4874_s20 = scalar_lea.hbm %s5799_s19, 256 }
  0xa2   : > { %s4869_s4 = scalar_lea.hbm %s5306_s14, 128  ;;  %p4875_p5 = scmp.lt.s32.totalorder %s5306_s14, %s5799_s19 }
  0xa3   : > { %p4870_p3 = scmp.ne.s32.totalorder %s5306_s14, %s4869_s4  ;;  %p4876_p1 = scmp.lt.s32.totalorder %s4874_s20, %s4869_s4 }
  0xa5   : > { %p4872_p4 = pnand %p4870_p3, %p5800_p10  ;;  %p4877_p9 = por %p4876_p1, %p4875_p5 }
  0xa7   : > { %p4873_p13 = pneg %p4872_p4 }
  0xa9   : > { %p4878_p0 = pnand %p4877_p9, %p4873_p13 }
  0xab   : > { %4881 = shalt.err (!%p4878_p0)
}
  0xac   : > { %s4882_s29 = scalar_lea.vmem %s567_s5, 128  ;;  %s5020_s22 = smov [#allocation3]  }
  0xad   : > { %p4883_p12 = scmp.ne.s32.totalorder %s567_s5, %s4882_s29  ;;  %s4887_s12 = sshll.u32 %s5020_s22, 4  ;;  %s4888_s12 = int_to_ptr.vmem [resolvable:$false] %s4887_s12 }
  0xae   : > { %s4889_s26 = scalar_lea.vmem %s4888_s12, 256  ;;  %p4890_p6 = scmp.lt.s32.totalorder %s567_s5, %s4888_s12 }
  0xaf   : > { %p4885_p11 = pnand %p4883_p12, %p5800_p10  ;;  %p4891_p7 = scmp.lt.s32.totalorder %s4889_s26, %s4882_s29 }
  0xb1   : > { %p4886_p2 = pneg %p4885_p11  ;;  %p4892_p8 = por %p4891_p7, %p4890_p6 }
  0xb3   : > { %p4893_p3 = pnand %p4892_p8, %p4886_p2 }
  0xb5   : > { %4896 = shalt.err (!%p4893_p3)
}
  0xb6   : > { %p5801_p4 = scmp.ne.s32.totalorder %s5791_s23, 0  ;;  %s593_s4 = scalar_lea.vmem [#allocation8], %s5226_s15 }
  0xb7   : > { %s600_s1 = sshll.u32 %s593_s4, 4  ;;  %s4897_s24 = scalar_lea.hbm %s5247_s28, 16  ;;  %s601_s1 = int_to_ptr.vmem [resolvable:$true] %s600_s1 }
  0xb8   : > { %4390 = dma.hbm_to_vmem [thread:$0]  (!%p5801_p4), %s5306_s14, 128, %s567_s5, %s556_s9  }
  0xb9   : > { %p4898_p13 = scmp.ne.s32.totalorder %s5247_s28, %s4897_s24  ;;  %s4902_s17 = scalar_lea.hbm %s5715_s2, 32 }
  0xba   : > { %p4903_p9 = scmp.lt.s32.totalorder %s5247_s28, %s5715_s2  ;;  %p4904_p0 = scmp.lt.s32.totalorder %s4902_s17, %s4897_s24 }
  0xbb   : > { %p4900_p5 = pnand %p4898_p13, %p5800_p10 }
  0xbc   : > { %p4905_p12 = por %p4904_p0, %p4903_p9 }
  0xbd   : > { %p4901_p1 = pneg %p4900_p5 }
  0xbf   : > { %p4906_p11 = pnand %p4905_p12, %p4901_p1 }
  0xc1   : > { %4909 = shalt.err (!%p4906_p11)
}
  0xc2   : > { %s4910_s15 = scalar_lea.vmem %s601_s1, 16  ;;  %s5021_s14 = smov [#allocation8]  }
  0xc3   : > { %p4911_p2 = scmp.ne.s32.totalorder %s601_s1, %s4910_s15  ;;  %s4915_s5 = sshll.u32 %s5021_s14, 4  ;;  %s4916_s5 = int_to_ptr.vmem [resolvable:$false] %s4915_s5 }
  0xc4   : > { %s4917_s9 = scalar_lea.vmem %s4916_s5, 32  ;;  %p4918_p8 = scmp.lt.s32.totalorder %s601_s1, %s4916_s5 }
  0xc5   : > { %p4913_p6 = pnand %p4911_p2, %p5800_p10  ;;  %p4919_p3 = scmp.lt.s32.totalorder %s4917_s9, %s4910_s15 }
  0xc7   : > { %p4914_p7 = pneg %p4913_p6  ;;  %p4920_p13 = por %p4919_p3, %p4918_p8 }
  0xc9   : > { %p4921_p5 = pnand %p4920_p13, %p4914_p7 }
  0xcb   : > { %4924 = shalt.err (!%p4921_p5)
}
  0xcc   : > { %4396 = dma.hbm_to_vmem [thread:$0]  (!%p5801_p4), %s5247_s28, 16, %s601_s1, %s5249_s16  }
  0xcd   : > { %p5802_p1 = scmp.ne.s32.totalorder %s5778_s30, 0 }
  0xce   : > { %s5346_s3 = sand.u32 (!%p5802_p1), 1, %s4997_s25   ;;  %p5803_p10 = scmp.ne.s32.totalorder (!%p5802_p1), %s5786_s21, 0 }
  0xcf   : > { %609 = sbr.rel (%p5802_p1) target bundleno = 6864 (0x1ad0), region = 88  ;;  %s3795_s22 = sshll.u32 (!%p5802_p1), %s5346_s3, 3 }
  0xd0   : > { %s612_s12 = scalar_lea.sflag (!%p5802_p1), [#allocation4], %s5346_s3  ;;  %s615_s26 = scalar_lea.vmem (!%p5802_p1), [#allocation3], %s3795_s22 }
  0xd4   : > { %4968 = dma.done.wait (%p5803_p10), %s612_s12, 128  }
  0xd5   : > { %4970 = vsyncadd (%p5803_p10), %s612_s12, 4294967168  ;;  %s620_s16 = sand.u32 1, %s5140_s0   ;;  %s623_s28 = scalar_lea.vmem [#allocation6], %s5346_s3 }
  0xd6   : > { %s621_s30 = scalar_lea.sflag [#allocation7], %s620_s16 }
  0xd7   : > { %4972 = dma.done.wait (%p5803_p10), %s621_s30, 32  }
  0xd8   : > { %4974 = vsyncadd (%p5803_p10), %s621_s30, 4294967264  ;;  %s631_s23 = scalar_lea.vmem [#allocation8], %s5346_s3  ;;  %p5804_p4 = scmp.eq.s32.totalorder %s5140_s0, 0 }
  0xda   : > { %4976 = dma.done.wait (%p5804_p4), [#allocation10], 144   ;;  %p5805_p9 = pmov %p5804_p4 }
  0xdb   : > { %p5806_p0 = pmov %p5804_p4 }
  0xdc   : > { %4978 = vsyncadd (%p5805_p9), [#allocation10], 4294967152 }
  0xdd   : > { %4980 = dma.done.wait (%p5806_p0), [#allocation13], 8192   ;;  %p5807_p12 = pmov %p5806_p0 }
  0xde   : > { %p5808_p11 = pmov %p5806_p0 }
  0xdf   : > { %4982 = vsyncadd (%p5807_p12), [#allocation13], 4294959104 }
  0xe0   : > { %4984 = dma.done.wait (%p5808_p11), [#allocation16], 8192   ;;  %p5809_p2 = pmov %p5806_p0 }
  0xe1   : > { %v5022_v0 = vmov 0.0   ;;  %vm5023_vm0 = vmmov 0   ;;  %v4465_v1 = vld [vmem:[#allocation9] sm:$0xff]   ;;  %v715_v2 = vld [vmem:[%s615_s26] sm:$0xff]  ;;  %vm739_vm1 = vcmask 130048   ;;  %v5024_v28 = vmov 0  }
  0xe2   : > { %4986 = vsyncadd (%p5809_p2), [#allocation16], 4294959104  ;;  %4130 = vmatprep.subr.bf16.mxu0 %v5022_v0  ;;  %4132 = vmatprep.mubr.msk.bf16.mxu0 %vm5023_vm0, %v5022_v0  ;;  %v723_v3 = vpack.c.bf16 %v715_v2, %v715_v2  ;;  %v4466_v4 = vld [vmem:[#allocation12 + $0xac] ss:$12 sps:$4 sm:$0xff]   ;;  %v4468_v5 = vld [vmem:[#allocation12 + $0xa8] ss:$12 sps:$4 sm:$0xff]   ;;  %v826_v38 = vlaneseq }
  0xe3   : > { %4131 = vmatpush3.bf16.msra.mxu0 %v4465_v1  ;;  %v4469_v6 = vld [vmem:[#allocation12 + $0xb0] ss:$12 sps:$4 sm:$0xff]   ;;  %969 = vmatprep.subr.bf16.mxu1 %v4466_v4  ;;  %v4470_v7 = vld [vmem:[#allocation12 + $0x94] ss:$12 sps:$4 sm:$0xff]   ;;  %v4473_v9 = vld [vmem:[#allocation12 + $0x98] ss:$12 sps:$4 sm:$0xff]  }
  0xe4   : > { %4136 = vmatprep.subr.bf16.mxu0 %v5022_v0  ;;  %v4472_v8 = vld [vmem:[#allocation12 + $0x90] ss:$12 sps:$4 sm:$0xff]   ;;  %970 = vmatpush1.bf16.msra.mxu1 %v4468_v5  ;;  %v4476_v11 = vld [vmem:[#allocation12 + $0x78] ss:$12 sps:$4 sm:$0xff]   ;;  %v4477_v12 = vld [vmem:[#allocation12 + $0x80] ss:$12 sps:$4 sm:$0xff]  }
  0xe5   : > { %971 = vmatprep.subr.bf16.mxu1 %v4470_v7  ;;  %v4474_v10 = vld [vmem:[#allocation12 + $0x7c] ss:$12 sps:$4 sm:$0xff]   ;;  %v4478_v13 = vld [vmem:[#allocation12 + $0x64] ss:$12 sps:$4 sm:$0xff]   ;;  %v4480_v14 = vld [vmem:[#allocation12 + $0x60] ss:$12 sps:$4 sm:$0xff]   ;;  %1001 = vmatprep.mubr.bf16.mxu1 %v5024_v28 }
  0xe6   : > { %4133 = vmatmul.mubr.msk.bf16.vlgmr.msra.gmra.mxu0 %vm739_vm1, %v723_v3  ;;  %v4481_v15 = vld [vmem:[#allocation12 + $0x68] ss:$12 sps:$4 sm:$0xff]   ;;  %v4482_v16 = vld [vmem:[#allocation12 + $0x4c] ss:$12 sps:$4 sm:$0xff]   ;;  %v4485_v18 = vld [vmem:[#allocation12 + $0x50] ss:$12 sps:$4 sm:$0xff]  }
  0xe7   : > { %4137 = vmatpush3.bf16.msra.mxu0 %v4469_v6  ;;  %4152 = vmatprep.mubr.msk.bf16.mxu0 %vm5023_vm0, %v5022_v0  ;;  %v4484_v17 = vld [vmem:[#allocation12 + $0x48] ss:$12 sps:$4 sm:$0xff]   ;;  %v4488_v20 = vld [vmem:[#allocation12 + $0x30] ss:$12 sps:$4 sm:$0xff]   ;;  %v4489_v21 = vld [vmem:[#allocation12 + $0x38] ss:$12 sps:$4 sm:$0xff]  }
  0xe8   : > { %4138 = vmatprep.subr.bf16.mxu0 %v5022_v0  ;;  %972 = vmatpush1.bf16.msra.mxu1 %v4472_v8  ;;  %v4486_v19 = vld [vmem:[#allocation12 + $0x34] ss:$12 sps:$4 sm:$0xff]   ;;  %v4490_v22 = vld [vmem:[#allocation12 + $0x1c] ss:$12 sps:$4 sm:$0xff]   ;;  %v4492_v23 = vld [vmem:[#allocation12 + $0x18] ss:$12 sps:$4 sm:$0xff]  }
  0xe9   : > { %973 = vmatprep.subr.bf16.mxu1 %v4474_v10  ;;  %v4493_v24 = vld [vmem:[#allocation12 + $0x20] ss:$12 sps:$4 sm:$0xff]   ;;  %v4494_v25 = vld [vmem:[#allocation12 + $0x4] ss:$12 sps:$4 sm:$0xff]   ;;  %v4497_v27 = vld [vmem:[#allocation12 + $0x8] ss:$12 sps:$4 sm:$0xff]  }
  0xea   : > { %v4496_v26 = vld [vmem:[#allocation12] ss:$12 sps:$4 sm:$0xff]   ;;  %v3804_v29 = vld [vmem:[#allocation11] ss:$0 sm:$0xff]  ;;  %v3807_v31 = vld [vmem:[%s631_s23] ss:$0 sm:$0xff] }
  0xeb   : > { %4139 = vmatpush3.bf16.msra.mxu0 %v4473_v9  ;;  %v5399_v39 = vshrl.u32 %v826_v38, 7  ;;  %v824_v41 = vld [vmem:[%s5719_s6] sm:$0x7]  ;;  %vm1133_vm2 = vcmask 1043456   ;;  %vm1068_vm3 = vcmask 261120   ;;  %s5025_s1 = smov 96  }
  0xec   : > { %4140 = vmatprep.subr.bf16.mxu0 %v5022_v0  ;;  %974 = vmatpush1.bf16.msra.mxu1 %v4476_v11  ;;  %v5431_v8 = vld [vmem:[%s623_s28] ss:$0 sm:$0xff]  ;;  %vm1117_vm4 = vcmask 64512   ;;  %s5026_s24 = smov 64   ;;  %s5027_s18 = smov 32  }
  0xed   : > { %975 = vmatprep.subr.bf16.mxu1 %v4478_v13  ;;  %v836_v40 = vsub.s32 2, %v5399_v39  ;;  %v5406_v42 = vsub.s32 0, %v5399_v39  ;;  %v5409_v43 = vsub.s32 1, %v5399_v39  ;;  %s5810_s15 = sld [smem:[#allocation36_spill]]  ;;  %s3802_s10 = sshll.u32 %s5346_s3, 2 }
  0xee   : > { %s5811_s9 = sld [smem:[#allocation37_spill]]  ;;  %s3604_s20 = scalar_lea.sflag [#allocation5], %s5346_s3 }
  0xef   : > { %4141 = vmatpush3.bf16.msra.mxu0 %v4477_v12  ;;  %v837_v44 = vrot.slane %v824_v41, %v836_v40  ;;  %v829_v45 = vrot.slane %v824_v41, %v5406_v42  ;;  %v833_v46 = vrot.slane %v824_v41, %v5409_v43  ;;  %s5812_s26 = sld [smem:[#allocation39_spill]]  ;;  %s5028_s5 = smov [#allocation18]  }
  0xf0   : > { %4142 = vmatprep.subr.bf16.mxu0 %v5022_v0  ;;  %976 = vmatpush1.bf16.msra.mxu1 %v4480_v14  ;;  %s5814_s21 = sld [smem:[#allocation40_spill]] }
  0xf1   : > { %977 = vmatprep.subr.bf16.mxu1 %v4482_v16  ;;  %s5815_s17 = sld [smem:[#allocation41_spill]] }
  0xf2   : > { %s5816_s14 = sld [smem:[#allocation42_spill]] }
  0xf3   : > { %4143 = vmatpush3.bf16.msra.mxu0 %v4481_v15  ;;  %s5817_s22 = sld [smem:[#allocation29_spill]] }
  0xf4   : > { %4144 = vmatprep.subr.bf16.mxu0 %v5022_v0  ;;  %978 = vmatpush1.bf16.msra.mxu1 %v4484_v17  ;;  %s5818_s23 = sld [smem:[#allocation43_spill]] }
  0xf5   : > { %979 = vmatprep.subr.bf16.mxu1 %v4486_v19  ;;  %s5813_s16 = smov %s5812_s26 }
  0xf7   : > { %4145 = vmatpush3.bf16.msra.mxu0 %v4485_v18 }
  0xf8   : > { %4146 = vmatprep.subr.bf16.mxu0 %v5022_v0  ;;  %980 = vmatpush1.bf16.msra.mxu1 %v4488_v20 }
  0xf9   : > { %981 = vmatprep.subr.bf16.mxu1 %v4490_v22  ;;  %p5819_p7 = scmp.ne.s32.totalorder %s5817_s22, 0 }
  0xfb   : > { %4147 = vmatpush3.bf16.msra.mxu0 %v4489_v21 }
  0xfc   : > { %4148 = vmatprep.subr.bf16.mxu0 %v5022_v0  ;;  %982 = vmatpush1.bf16.msra.mxu1 %v4492_v23 }
  0xfd   : > { %983 = vmatprep.subr.bf16.mxu1 %v4494_v25 }
  0xff   : > { %4149 = vmatpush3.bf16.msra.mxu0 %v4493_v24 }
 0x100   : > { %4150 = vmatprep.subr.bf16.mxu0 %v5022_v0  ;;  %984 = vmatpush1.bf16.msra.mxu1 %v4496_v26 }
 0x101   : > { %4156 = vmatprep.subr.bf16.mxu1 %v5022_v0 }
 0x103   : > { %4151 = vmatpush3.bf16.msra.mxu0 %v4497_v27 }
 0x104   : > { %4162 = vmatprep.subr.bf16.mxu0 %v5022_v0 }
 0x1a6   : > { %v777_v30 = vpop.f32.mrf.mxu0 }
 0x1a7   : > { %v778_v32 = vadd.f32 %v3804_v29, %v777_v30 }
 0x1a8   : > { %v4134_v33 = vpop.f32.mrf.mxu0 }
 0x1a9   : > { %v5391_v34 = vadd.f32 %v3807_v31, %v778_v32 }
 0x1aa   : > { %v780_v35 = vpop.f32.mrf.mxu0 }
 0x1ab   : > { %v791_v36 = vpack.c.bf16 %v5391_v34, %v5391_v34 }
 0x1ac   : > { %v4135_v37 = vpop.f32.mrf.mxu0 }
 0x1ad   : > { %1002 = vmatmul.mubr.bf16.vlgmr.msra.gmra.mxu1 %v791_v36  ;;  %4153 = vmatmul.mubr.bf16.vlgmr.msra.gmra.mxu0 %v791_v36 }
 0x1ae   : > { %4158 = vmatprep.mubr.msk.bf16.mxu1 %vm5023_vm0, %v5022_v0  ;;  %4164 = vmatprep.mubr.msk.bf16.mxu0 %vm5023_vm0, %v5022_v0 }
 0x26d   : > { %v1003_v47 = vpop.f32.mrf.mxu1  ;;  %v1044_v48 = vpop.f32.mrf.mxu0 }
 0x26e   : > { %v1045_v49 = vadd.f32 %v1044_v48, %v837_v44  ;;  %v1004_v52 = vadd.f32 %v1003_v47, %v829_v45  ;;  %v4507_v47 = vld [vmem:[#allocation14 + $0x10] sm:$0xff]  }
 0x26f   : > { %v1005_v50 = vpop.f32.mrf.mxu1  ;;  %v4154_v51 = vpop.f32.mrf.mxu0 }
 0x270   : > { %v4007_v53 = vpack.c.bf16 %v1045_v49, %v1045_v49  ;;  %v1006_v54 = vadd.f32 %v1005_v50, %v833_v46  ;;  %v4506_v46 = vld [vmem:[#allocation14 + $0x18] sm:$0xff]  }
 0x271   : > { %v1007_v55 = vpop.f32.mrf.mxu1  ;;  %v1047_v56 = vpop.f32.mrf.mxu0 }
 0x272   : > { %1064 = vst [vmem:[#allocation2 + $0x8] sm:$0xf] %v4007_v53  ;;  %v4006_v57 = vpack.c.bf16 %v1006_v54, %v1004_v52  ;;  %v4504_v53 = vld [vmem:[#allocation14 + $0x8] sm:$0xff]   ;;  %v4505_v55 = vld [vmem:[#allocation14] sm:$0xff]  }
 0x273   : > { %v1008_v58 = vpop.f32.mrf.mxu1  ;;  %v4155_v59 = vpop.f32.mrf.mxu0 }
 0x274   : > { %1063 = vst [vmem:[#allocation2] sm:$0xff] %v4006_v57 }
 0x279   : > { %v1067_v60 = vld [vmem:[#allocation2 + $0x8] sm:$0xf] }
 0x27a   : > { %v1135_v61 = vsel %vm1133_vm2, %v1067_v60, 0  ;;  %v4500_v27 = vld [vmem:[#allocation2 + $0x8] ss:$0 sps:$4 sm:$0xff]  }
 0x27b   : > { %4163 = vmatpush3.bf16.msra.mxu0 %v1135_v61  ;;  %v1066_v62 = vld [vmem:[#allocation2 + $0x4] sm:$0xf]  ;;  %v4499_v2 = vld [vmem:[#allocation2] ss:$0 sps:$4 sm:$0xff]   ;;  %v4501_v35 = vld [vmem:[#allocation2 + $0x8] ss:$0 sps:$4 sm:$0xff]  }
 0x27c   : > { %v4498_v63 = vld [vmem:[#allocation2 + $0x4] ss:$0 sps:$4 sm:$0xff]   ;;  %v1073_v1 = vsel %vm1068_vm3, %v1066_v62, 0  ;;  %4174 = vmatprep.subr.bf16.mxu0 %v5022_v0  ;;  %v1065_v3 = vld [vmem:[#allocation2] sm:$0xf] }
 0x27d   : > { %4157 = vmatpush3.bf16.xpose.msra.mxu1 %v1073_v1  ;;  %1193 = vrot.lane.b32.xlu0 %v4498_v63, %s5025_s1  ;;  %v4502_v36 = vld [vmem:[#allocation2 + $0x4] ss:$0 sps:$4 sm:$0xff]   ;;  %v4503_v38 = vld [vmem:[#allocation2] ss:$0 sps:$4 sm:$0xff]  }
 0x27e   : > { %4168 = vmatprep.subr.bf16.mxu1 %v5022_v0 }
 0x281   : > { %1188 = vrot.lane.b32.xlu0 %v4499_v2, %s5025_s1 }
 0x284   : > { %4159 = vmatmul.mubr.msk.bf16.vlgmr.msra.gmra.mxu1 %vm1068_vm3, %v1065_v3 }
 0x285   : > { %4170 = vmatprep.mubr.msk.bf16.mxu1 %vm5023_vm0, %v5022_v0 }
 0x2ef   : > { %v1194_v4 = vpop.permute.xlu0 %1193 }
 0x2f0   : > { %v1199_v5 = vsel %vm1068_vm3, %v1194_v4, 0 }
 0x2f1   : > { %4169 = vmatpush3.bf16.xpose.msra.mxu1 %v1199_v5 }
 0x2f2   : > { %4180 = vmatprep.subr.bf16.mxu1 %v5022_v0 }
 0x2f3   : > { %v1189_v6 = vpop.permute.xlu0 %1188 }
 0x2f8   : > { %4171 = vmatmul.mubr.msk.bf16.vlgmr.msra.gmra.mxu1 %vm1068_vm3, %v1189_v6 }
 0x2f9   : > { %4184 = vmatprep.mubr.msk.bf16.mxu1 %vm5023_vm0, %v5022_v0  ;;  %4181 = vmatpush3.bf16.msra.mxu1 %v4506_v46 }
 0x2fa   : > { %4182 = vmatprep.subr.bf16.mxu1 %v5022_v0 }
 0x2fd   : > { %4183 = vmatpush3.bf16.msra.mxu1 %v4507_v47 }
 0x2fe   : > { %4196 = vmatprep.subr.bf16.mxu1 %v5022_v0 }
 0x344   : > { %v1109_v7 = vpop.f32.mrf.mxu1 }
 0x345   : > { %v1115_v9 = vmul.f32 0.17677669, %v1109_v7 }
 0x346   : > { %v4160_v10 = vpop.f32.mrf.mxu1 }
 0x347   : > { %v1116_v11 = vadd.f32 %v5431_v8, %v1115_v9 }
 0x348   : > { %v1112_v12 = vpop.f32.mrf.mxu1 }
 0x349   : > { %v1118_v13 = vsel %vm1117_vm4, %v1116_v11, -inf }
 0x34a   : > { %1119 = vmax.xlane.f32.xlu1 %v1118_v13  ;;  %v4161_v14 = vpop.f32.mrf.mxu1 }
 0x3b8   : > { %v1235_v15 = vpop.f32.mrf.mxu1 }
 0x3b9   : > { %v1241_v16 = vmul.f32 0.17677669, %v1235_v15 }
 0x3ba   : > { %v4172_v17 = vpop.f32.mrf.mxu1 }
 0x3bb   : > { %v1242_v18 = vadd.f32 %v5431_v8, %v1241_v16 }
 0x3bc   : > { %v1238_v19 = vpop.f32.mrf.mxu1 }
 0x3bd   : > { %v1243_v20 = vsel %vm1117_vm4, %v1242_v18, -inf }
 0x3be   : > { %1244 = vmax.xlane.f32.xlu1 %v1243_v20  ;;  %v4173_v21 = vpop.f32.mrf.mxu1 }
 0x3d3   : > { %v1120_v22 = vpop.xlane.xlu1 %1119 }
 0x3d4   : > { %v1121_v23 = vsub.f32 %v1116_v11, %v1120_v22 }
 0x3d6   : > { %v1122_v24 = vmul.f32 1.442695, %v1121_v23 }
 0x3d8   : > { %4644 = vpow2.f32 %v1122_v24 }
 0x3e5   : > { %v4645_v25 = vpop.eup %4644 }
 0x3e6   : > { %v1124_v26 = vsel %vm1117_vm4, %v4645_v25, 0.0 }
 0x3e7   : > { %1125 = vadd.xlane.f32.xlu0 %v1124_v26 }
 0x3fd   : > { %1498 = vrot.lane.b32.xlu0 %v4500_v27, %s5026_s24 }
 0x447   : > { %v1245_v29 = vpop.xlane.xlu1 %1244 }
 0x448   : > { %v1246_v30 = vsub.f32 %v1242_v18, %v1245_v29 }
 0x44a   : > { %v1247_v31 = vmul.f32 1.442695, %v1246_v30  ;;  %v4508_v30 = vld [vmem:[#allocation2 + $0x4] ss:$0 sps:$4 sm:$0xff]  }
 0x44c   : > { %4646 = vpow2.f32 %v1247_v31  ;;  %v4509_v31 = vld [vmem:[#allocation2] ss:$0 sps:$4 sm:$0xff]  }
 0x459   : > { %v4647_v32 = vpop.eup %4646 }
 0x45a   : > { %v1249_v33 = vsel %vm1117_vm4, %v4647_v32, 0.0 }
 0x45b   : > { %1250 = vadd.xlane.f32.xlu1 %v1249_v33 }
 0x46c   : > { %1258 = vrot.lane.b32.xlu1 %v4501_v35, %s5025_s1 }
 0x470   : > { %v1126_v37 = vpop.xlane.xlu0 %1125  ;;  %1433 = vrot.lane.b32.xlu1 %v4502_v36, %s5026_s24 }
 0x471   : > { %4648 = vrcp.f32 %v1126_v37 }
 0x474   : > { %1428 = vrot.lane.b32.xlu1 %v4503_v38, %s5026_s24  ;;  %v1499_v56 = vpop.permute.xlu0 %1498 }
 0x475   : > { %v1504_v60 = vsel %vm1133_vm2, %v1499_v56, 0 }
 0x47e   : > { %v4649_v41 = vpop.eup %4648 }
 0x47f   : > { %v1128_v44 = vmul.f32 %v4649_v41, %v4645_v25 }
 0x481   : > { %v1129_v45 = vpack.c.bf16 %v1128_v44, %v1128_v44 }
 0x483   : > { %4165 = vmatmul.mubr.msk.bf16.vlgmr.msra.gmra.mxu0 %vm1117_vm4, %v1129_v45  ;;  %v4511_v45 = vld [vmem:[#allocation14 + $0x20] sm:$0xff]  }
 0x484   : > { %4176 = vmatprep.mubr.msk.bf16.mxu0 %vm5023_vm0, %v5022_v0 }
 0x4e4   : > { %v1251_v48 = vpop.xlane.xlu1 %1250 }
 0x4e5   : > { %4650 = vrcp.f32 %v1251_v48 }
 0x4e8   : > { %v1259_v49 = vpop.permute.xlu1 %1258 }
 0x4e9   : > { %v1264_v50 = vsel %vm1133_vm2, %v1259_v49, 0 }
 0x4ea   : > { %4175 = vmatpush3.bf16.msra.mxu0 %v1264_v50 }
 0x4eb   : > { %4188 = vmatprep.subr.bf16.mxu0 %v5022_v0 }
 0x4ec   : > { %v1434_v63 = vpop.permute.xlu1 %1433 }
 0x4ed   : > { %v1439_v4 = vsel %vm1068_vm3, %v1434_v63, 0  ;;  %v4512_v63 = vld [vmem:[#allocation2 + $0x8] ss:$0 sps:$4 sm:$0xff]  }
 0x4f0   : > { %v1429_v7 = vpop.permute.xlu1 %1428 }
 0x4f2   : > { %v4651_v51 = vpop.eup %4650 }
 0x4f3   : > { %v1253_v52 = vmul.f32 %v4651_v51, %v4647_v32  ;;  %v4510_v32 = vld [vmem:[#allocation14 + $0x28] sm:$0xff]  }
 0x4f5   : > { %v1254_v54 = vpack.c.bf16 %v1253_v52, %v1253_v52 }
 0x4f7   : > { %4177 = vmatmul.mubr.msk.bf16.vlgmr.msra.gmra.mxu0 %vm1117_vm4, %v1254_v54 }
 0x4f8   : > { %4189 = vmatpush3.bf16.msra.mxu0 %v4504_v53  ;;  %4192 = vmatprep.mubr.msk.bf16.mxu0 %vm5023_vm0, %v5022_v0 }
 0x4f9   : > { %4190 = vmatprep.subr.bf16.mxu0 %v5022_v0 }
 0x4fc   : > { %4191 = vmatpush3.bf16.msra.mxu0 %v4505_v55 }
 0x4fd   : > { %4202 = vmatprep.subr.bf16.mxu0 %v5022_v0 }
 0x543   : > { %v1171_v57 = vpop.f32.mrf.mxu0 }
 0x544   : > { %v1177_v58 = vpack.c.bf16 %v1171_v57, %v1171_v57 }
 0x545   : > { %v4166_v59 = vpop.f32.mrf.mxu0 }
 0x546   : > { %4193 = vmatmul.mubr.msk.bf16.vlgmr.msra.gmra.mxu0 %vm1068_vm3, %v1177_v58 }
 0x547   : > { %4203 = vmatpush3.bf16.msra.mxu0 %v1504_v60  ;;  %v1174_v61 = vpop.f32.mrf.mxu0  ;;  %4204 = vmatprep.mubr.msk.bf16.mxu0 %vm5023_vm0, %v5022_v0 }
 0x548   : > { %4216 = vmatprep.subr.bf16.mxu0 %v5022_v0 }
 0x549   : > { %v4167_v62 = vpop.f32.mrf.mxu0 }
 0x5b7   : > { %v1300_v1 = vpop.f32.mrf.mxu0 }
 0x5b8   : > { %v1306_v2 = vpack.c.bf16 %v1300_v1, %v1300_v1 }
 0x5b9   : > { %v4178_v3 = vpop.f32.mrf.mxu0 }
 0x5ba   : > { %4185 = vmatmul.mubr.msk.bf16.vlgmr.msra.gmra.mxu1 %vm1068_vm3, %v1306_v2 }
 0x5bb   : > { %4197 = vmatpush3.bf16.xpose.msra.mxu1 %v1439_v4  ;;  %v1303_v5 = vpop.f32.mrf.mxu0  ;;  %4198 = vmatprep.mubr.msk.bf16.mxu1 %vm5023_vm0, %v5022_v0 }
 0x5bc   : > { %4208 = vmatprep.subr.bf16.mxu1 %v5022_v0 }
 0x5bd   : > { %v4179_v6 = vpop.f32.mrf.mxu0 }
 0x5be   : > { %v4513_v6 = vld [vmem:[#allocation14 + $0x38] sm:$0xff]  }
 0x5c2   : > { %4199 = vmatmul.mubr.msk.bf16.vlgmr.msra.gmra.mxu1 %vm1068_vm3, %v1429_v7 }
 0x5c3   : > { %4212 = vmatprep.mubr.msk.bf16.mxu1 %vm5023_vm0, %v5022_v0  ;;  %4209 = vmatpush3.bf16.msra.mxu1 %v4510_v32 }
 0x5c4   : > { %4210 = vmatprep.subr.bf16.mxu1 %v5022_v0 }
 0x5c7   : > { %4211 = vmatpush3.bf16.msra.mxu1 %v4511_v45  ;;  %v4532_v45 = vld [vmem:[#allocation15 + $0x24] ss:$8 sps:$4 sm:$0xff]  }
 0x5c8   : > { %4222 = vmatprep.subr.bf16.mxu1 %v5022_v0 }
 0x606   : > { %v5468_v9 = vpop.f32.mrf.mxu0 }
 0x608   : > { %v4194_v10 = vpop.f32.mrf.mxu0 }
 0x60a   : > { %v1419_v11 = vpop.f32.mrf.mxu0 }
 0x60c   : > { %v4195_v12 = vpop.f32.mrf.mxu0 }
 0x67a   : > { %v5470_v13 = vpop.f32.mrf.mxu1 }
 0x67b   : > { %v1417_v1 = vadd.f32 %v5468_v9, %v5470_v13  ;;  %v4514_v9 = vld [vmem:[#allocation14 + $0x30] sm:$0xff]  }
 0x67c   : > { %v4186_v14 = vpop.f32.mrf.mxu1 }
 0x67e   : > { %v1364_v15 = vpop.f32.mrf.mxu1 }
 0x680   : > { %v4187_v16 = vpop.f32.mrf.mxu1 }
 0x682   : > { %v1475_v17 = vpop.f32.mrf.mxu1 }
 0x683   : > { %v1481_v18 = vmul.f32 0.17677669, %v1475_v17 }
 0x684   : > { %v4200_v19 = vpop.f32.mrf.mxu1 }
 0x685   : > { %v1482_v20 = vadd.f32 %v5431_v8, %v1481_v18 }
 0x686   : > { %v1478_v21 = vpop.f32.mrf.mxu1 }
 0x687   : > { %v1483_v22 = vsel %vm1117_vm4, %v1482_v20, -inf  ;;  %v4515_v21 = vld [vmem:[#allocation15 + $0x70] ss:$8 sps:$4 sm:$0xff]  }
 0x688   : > { %1484 = vmax.xlane.f32.xlu1 %v1483_v22  ;;  %v4201_v23 = vpop.f32.mrf.mxu1  ;;  %v4517_v22 = vld [vmem:[#allocation15 + $0x74] ss:$8 sps:$4 sm:$0xff]  }
 0x711   : > { %v1485_v24 = vpop.xlane.xlu1 %1484 }
 0x712   : > { %v1486_v25 = vsub.f32 %v1482_v20, %v1485_v24  ;;  %v3863_v24 = vld [vmem:[%s5721_s8] ss:$0 sm:$0xff] }
 0x714   : > { %v1487_v26 = vmul.f32 1.442695, %v1486_v25 }
 0x716   : > { %4652 = vpow2.f32 %v1487_v26 }
 0x723   : > { %v4653_v27 = vpop.eup %4652 }
 0x724   : > { %v1489_v29 = vsel %vm1117_vm4, %v4653_v27, 0.0 }
 0x725   : > { %1490 = vadd.xlane.f32.xlu0 %v1489_v29 }
 0x73b   : > { %1619 = vrot.lane.b32.xlu0 %v4508_v30, %s5027_s18 }
 0x73f   : > { %1614 = vrot.lane.b32.xlu0 %v4509_v31, %s5027_s18 }
 0x7ae   : > { %v1491_v33 = vpop.xlane.xlu0 %1490 }
 0x7af   : > { %4654 = vrcp.f32 %v1491_v33  ;;  %v4520_v33 = vld [vmem:[#allocation15 + $0x64] ss:$8 sps:$4 sm:$0xff]  }
 0x7b2   : > { %v1620_v37 = vpop.permute.xlu0 %1619 }
 0x7b3   : > { %v1625_v41 = vsel %vm1068_vm3, %v1620_v37, 0  ;;  %v4521_v37 = vld [vmem:[#allocation15 + $0x50] ss:$8 sps:$4 sm:$0xff]  }
 0x7b6   : > { %v1615_v44 = vpop.permute.xlu0 %1614 }
 0x7bc   : > { %v4655_v35 = vpop.eup %4654 }
 0x7bd   : > { %v1493_v36 = vmul.f32 %v4655_v35, %v4653_v27  ;;  %v4518_v35 = vld [vmem:[#allocation15 + $0x60] ss:$8 sps:$4 sm:$0xff]  }
 0x7bf   : > { %v1494_v38 = vpack.c.bf16 %v1493_v36, %v1493_v36  ;;  %v4523_v36 = vld [vmem:[#allocation15 + $0x54] ss:$8 sps:$4 sm:$0xff]  }
 0x7c1   : > { %4205 = vmatmul.mubr.msk.bf16.vlgmr.msra.gmra.mxu0 %vm1117_vm4, %v1494_v38  ;;  %v4526_v38 = vld [vmem:[#allocation15 + $0x44] ss:$8 sps:$4 sm:$0xff]  }
 0x7c2   : > { %4217 = vmatpush3.bf16.xpose.msra.mxu0 %v1625_v41  ;;  %4218 = vmatprep.mubr.msk.bf16.mxu0 %vm5023_vm0, %v5022_v0  ;;  %v4524_v41 = vld [vmem:[#allocation15 + $0x40] ss:$8 sps:$4 sm:$0xff]  }
 0x7c3   : > { %4228 = vmatprep.subr.bf16.mxu0 %v5022_v0 }
 0x7c9   : > { %4219 = vmatmul.mubr.msk.bf16.vlgmr.msra.gmra.mxu0 %vm1068_vm3, %v1615_v44  ;;  %v4527_v44 = vld [vmem:[#allocation15 + $0x30] ss:$8 sps:$4 sm:$0xff]  }
 0x7ca   : > { %4232 = vmatprep.mubr.msk.bf16.mxu0 %vm5023_vm0, %v5022_v0  ;;  %4229 = vmatpush3.bf16.msra.mxu0 %v4513_v6 }
 0x7cb   : > { %4230 = vmatprep.subr.bf16.mxu0 %v5022_v0 }
 0x7ce   : > { %4231 = vmatpush3.bf16.msra.mxu0 %v4514_v9 }
 0x881   : > { %v1540_v46 = vpop.f32.mrf.mxu0 }
 0x882   : > { %v1546_v47 = vpack.c.bf16 %v1540_v46, %v1540_v46  ;;  %v4530_v46 = vld [vmem:[#allocation15 + $0x20] ss:$8 sps:$4 sm:$0xff]  }
 0x883   : > { %v4206_v48 = vpop.f32.mrf.mxu0 }
 0x884   : > { %4213 = vmatmul.mubr.msk.bf16.vlgmr.msra.gmra.mxu1 %vm1068_vm3, %v1546_v47  ;;  %v4535_v47 = vld [vmem:[#allocation15 + $0x14] ss:$8 sps:$4 sm:$0xff]   ;;  %v4533_v48 = vld [vmem:[#allocation15 + $0x10] ss:$8 sps:$4 sm:$0xff]  }
 0x885   : > { %v1543_v49 = vpop.f32.mrf.mxu0  ;;  %4224 = vmatprep.mubr.msk.bf16.mxu1 %vm5023_vm0, %v5022_v0 }
 0x886   : > { %v4538_v49 = vld [vmem:[#allocation15 + $0x4] ss:$8 sps:$4 sm:$0xff]  }
 0x887   : > { %v4207_v50 = vpop.f32.mrf.mxu0 }
 0x888   : > { %v4536_v50 = vld [vmem:[#allocation15] ss:$8 sps:$4 sm:$0xff]  }
 0x889   : > { %v1661_v51 = vpop.f32.mrf.mxu0 }
 0x88a   : > { %v1667_v52 = vmul.f32 0.17677669, %v1661_v51  ;;  %v4539_v51 = vld [vmem:[#allocation17 + $0x78] sm:$0xff]  }
 0x88b   : > { %v4220_v53 = vpop.f32.mrf.mxu0  ;;  %4049 = vmatprep.subr.bf16.mxu0 %v4539_v51  ;;  %v4559_v51 = vld [vmem:[#allocation12 + $0x150] ss:$12 sps:$4 sm:$0xff]  }
 0x88c   : > { %v1668_v54 = vadd.f32 %v5431_v8, %v1667_v52  ;;  %v4540_v52 = vld [vmem:[#allocation17 + $0x38] sm:$0xff]   ;;  %v4541_v53 = vld [vmem:[#allocation17 + $0x70] sm:$0xff]  }
 0x88d   : > { %v1664_v55 = vpop.f32.mrf.mxu0 }
 0x88e   : > { %v1669_v56 = vsel %vm1117_vm4, %v1668_v54, -inf  ;;  %v4543_v55 = vld [vmem:[#allocation17 + $0x68] sm:$0xff]  }
 0x88f   : > { %1670 = vmax.xlane.f32.xlu0 %v1669_v56  ;;  %v4221_v57 = vpop.f32.mrf.mxu0  ;;  %v4544_v56 = vld [vmem:[#allocation17 + $0x28] sm:$0xff]  }
 0x890   : > { %v4545_v57 = vld [vmem:[#allocation17 + $0x60] sm:$0xff]  }
 0x918   : > { %v1671_v58 = vpop.xlane.xlu0 %1670 }
 0x919   : > { %v1672_v59 = vsub.f32 %v1668_v54, %v1671_v58  ;;  %v4542_v54 = vld [vmem:[#allocation17 + $0x30] sm:$0xff]   ;;  %v4546_v58 = vld [vmem:[#allocation17 + $0x20] sm:$0xff]  }
 0x91b   : > { %v1673_v60 = vmul.f32 1.442695, %v1672_v59  ;;  %v4547_v59 = vld [vmem:[#allocation17 + $0x58] sm:$0xff]  }
 0x91d   : > { %4656 = vpow2.f32 %v1673_v60  ;;  %v4548_v60 = vld [vmem:[#allocation17 + $0x18] sm:$0xff]  }
 0x92a   : > { %v4657_v61 = vpop.eup %4656 }
 0x92b   : > { %v1675_v62 = vsel %vm1117_vm4, %v4657_v61, 0.0 }
 0x92c   : > { %1676 = vadd.xlane.f32.xlu1 %v1675_v62  ;;  %v4550_v62 = vld [vmem:[#allocation17 + $0x10] sm:$0xff]  }
 0x93d   : > { %1684 = vrot.lane.b32.xlu1 %v4512_v63, %s5027_s18 }
 0x944   : > { %v1601_v2 = vpop.f32.mrf.mxu1 }
 0x945   : > { %v1607_v3 = vadd.f32 %v1601_v2, %v1417_v1 }
 0x946   : > { %v4214_v4 = vpop.f32.mrf.mxu1 }
 0x948   : > { %v1604_v5 = vpop.f32.mrf.mxu1 }
 0x94a   : > { %v4215_v7 = vpop.f32.mrf.mxu1 }
 0x9b5   : > { %v1677_v10 = vpop.xlane.xlu1 %1676 }
 0x9b6   : > { %4658 = vrcp.f32 %v1677_v10 }
 0x9b9   : > { %v1685_v11 = vpop.permute.xlu1 %1684 }
 0x9ba   : > { %v1690_v12 = vsel %vm1133_vm2, %v1685_v11, 0  ;;  %v3864_v11 = vld [vmem:[%s5810_s15] ss:$0 sm:$0xff] }
 0x9bb   : > { %4223 = vmatpush3.bf16.msra.mxu1 %v1690_v12 }
 0x9bc   : > { %1942 = vmatprep.subr.bf16.mxu1 %v4517_v22 }
 0x9c3   : > { %v4659_v14 = vpop.eup %4658 }
 0x9c4   : > { %v1679_v15 = vmul.f32 %v4659_v14, %v4657_v61  ;;  %v4549_v61 = vld [vmem:[#allocation17 + $0x50] sm:$0xff]  }
 0x9c5   : > { %v3865_v14 = vld [vmem:[%s5811_s9] ss:$0 sm:$0xff] }
 0x9c6   : > { %v1680_v16 = vpack.c.bf16 %v1679_v15, %v1679_v15 }
 0x9c8   : > { %4225 = vmatmul.mubr.msk.bf16.vlgmr.msra.gmra.mxu1 %vm1117_vm4, %v1680_v16 }
 0x9c9   : > { %1974 = vmatprep.mubr.bf16.mxu1 %v5024_v28  ;;  %1943 = vmatpush1.bf16.msra.mxu1 %v4515_v21 }
 0x9ca   : > { %1944 = vmatprep.subr.bf16.mxu1 %v4520_v33 }
 0x9cd   : > { %1945 = vmatpush1.bf16.msra.mxu1 %v4518_v35 }
 0x9ce   : > { %1946 = vmatprep.subr.bf16.mxu1 %v4523_v36  ;;  %v3882_v36 = vld [vmem:[%s5814_s21] ss:$0 sm:$0xff] }
 0x9d1   : > { %1947 = vmatpush1.bf16.msra.mxu1 %v4521_v37 }
 0x9d2   : > { %1948 = vmatprep.subr.bf16.mxu1 %v4526_v38 }
 0x9d5   : > { %1949 = vmatpush1.bf16.msra.mxu1 %v4524_v41 }
 0xa88   : > { %v1726_v13 = vpop.f32.mrf.mxu1 }
 0xa89   : > { %v1732_v17 = vpack.c.bf16 %v1726_v13, %v1726_v13  ;;  %v4551_v13 = vld [vmem:[#allocation17 + $0x48] sm:$0xff]  }
 0xa8a   : > { %v4226_v18 = vpop.f32.mrf.mxu1 }
 0xa8b   : > { %4233 = vmatmul.mubr.msk.bf16.vlgmr.msra.gmra.mxu0 %vm1068_vm3, %v1732_v17  ;;  %v4552_v17 = vld [vmem:[#allocation17 + $0x8] sm:$0xff]   ;;  %v4553_v18 = vld [vmem:[#allocation17 + $0x40] sm:$0xff]  }
 0xa8c   : > { %v1729_v19 = vpop.f32.mrf.mxu1  ;;  %4050 = vmatpush3.bf16.msra.mxu0 %v4540_v52  ;;  %v4562_v52 = vld [vmem:[#allocation12 + $0x158] ss:$12 sps:$4 sm:$0xff]  }
 0xa8d   : > { %4051 = vmatprep.subr.bf16.mxu0 %v4541_v53  ;;  %v4554_v19 = vld [vmem:[#allocation17] sm:$0xff]   ;;  %v4565_v53 = vld [vmem:[#allocation12 + $0x13c] ss:$12 sps:$4 sm:$0xff]  }
 0xa8e   : > { %v4227_v20 = vpop.f32.mrf.mxu1 }
 0xa8f   : > { %v1850_v20 = vld [vmem:[%s5812_s26] sm:$0x3] }
 0xa90   : > { %4052 = vmatpush3.bf16.msra.mxu0 %v4542_v54  ;;  %v1855_v21 = vrot.slane %v1850_v20, %v5406_v42  ;;  %v1859_v22 = vrot.slane %v1850_v20, %v5409_v43  ;;  %v4563_v54 = vld [vmem:[#allocation12 + $0x138] ss:$12 sps:$4 sm:$0xff]   ;;  %v3900_v20 = vld [vmem:[%s5816_s14] ss:$0 sm:$0xff] }
 0xa91   : > { %4053 = vmatprep.subr.bf16.mxu0 %v4543_v55  ;;  %v4566_v55 = vld [vmem:[#allocation12 + $0x140] ss:$12 sps:$4 sm:$0xff]  }
 0xa94   : > { %4054 = vmatpush3.bf16.msra.mxu0 %v4544_v56  ;;  %v4569_v56 = vld [vmem:[#allocation12 + $0x124] ss:$12 sps:$4 sm:$0xff]  }
 0xa95   : > { %4055 = vmatprep.subr.bf16.mxu0 %v4545_v57  ;;  %v4567_v57 = vld [vmem:[#allocation12 + $0x120] ss:$12 sps:$4 sm:$0xff]  }
 0xa98   : > { %4056 = vmatpush3.bf16.msra.mxu0 %v4546_v58  ;;  %v4570_v58 = vld [vmem:[#allocation12 + $0x128] ss:$12 sps:$4 sm:$0xff]  }
 0xa99   : > { %4057 = vmatprep.subr.bf16.mxu0 %v4547_v59  ;;  %v4573_v59 = vld [vmem:[#allocation12 + $0x10c] ss:$12 sps:$4 sm:$0xff]  }
 0xa9c   : > { %4058 = vmatpush3.bf16.msra.mxu0 %v4548_v60  ;;  %v4571_v60 = vld [vmem:[#allocation12 + $0x108] ss:$12 sps:$4 sm:$0xff]  }
 0xa9d   : > { %4059 = vmatprep.subr.bf16.mxu0 %v4549_v61  ;;  %v4574_v61 = vld [vmem:[#allocation12 + $0x110] ss:$12 sps:$4 sm:$0xff]  }
 0xaa0   : > { %4060 = vmatpush3.bf16.msra.mxu0 %v4550_v62  ;;  %v4577_v62 = vld [vmem:[#allocation12 + $0xf4] ss:$12 sps:$4 sm:$0xff]  }
 0xaa1   : > { %4061 = vmatprep.subr.bf16.mxu0 %v4551_v13 }
 0xaa4   : > { %4062 = vmatpush3.bf16.msra.mxu0 %v4552_v17 }
 0xaa5   : > { %4063 = vmatprep.subr.bf16.mxu0 %v4553_v18  ;;  %v3899_v18 = vld [vmem:[%s5815_s17] ss:$0 sm:$0xff] }
 0xaa8   : > { %4064 = vmatpush3.bf16.msra.mxu0 %v4554_v19 }
 0xaa9   : > { %4236 = vmatprep.subr.bf16.mxu0 %v5022_v0 }
 0xb4b   : > { %v1787_v23 = vpop.f32.mrf.mxu0 }
 0xb4c   : > { %v1793_v25 = vadd.f32 %v1787_v23, %v1607_v3 }
 0xb4d   : > { %v4234_v26 = vpop.f32.mrf.mxu0 }
 0xb4e   : > { %v1801_v27 = vadd.f32 %v3863_v24, %v1793_v25 }
 0xb4f   : > { %v1790_v29 = vpop.f32.mrf.mxu0 }
 0xb50   : > { %v5505_v30 = vadd.f32 %v1801_v27, %v5391_v34  ;;  %v4529_v34 = vld [vmem:[#allocation15 + $0x34] ss:$8 sps:$4 sm:$0xff]  }
 0xb51   : > { %v4235_v31 = vpop.f32.mrf.mxu0  ;;  %1950 = vmatprep.subr.bf16.mxu1 %v4529_v34 }
 0xb52   : > { %1805 = vadd.xlane.f32.xlu1 %v5505_v30  ;;  %v1809_v32 = vmul.f32 %v5505_v30, %v5505_v30  ;;  %1951 = vmatpush1.bf16.msra.mxu1 %v4527_v44 }
 0xb53   : > { %1952 = vmatprep.subr.bf16.mxu1 %v4532_v45 }
 0xb54   : > { %1810 = vadd.xlane.f32.xlu0 %v1809_v32 }
 0xb56   : > { %1953 = vmatpush1.bf16.msra.mxu1 %v4530_v46 }
 0xb57   : > { %1954 = vmatprep.subr.bf16.mxu1 %v4535_v47  ;;  %v4555_v47 = vld [vmem:[#allocation12 + $0x168] ss:$12 sps:$4 sm:$0xff]  }
 0xb5a   : > { %1955 = vmatpush1.bf16.msra.mxu1 %v4533_v48  ;;  %v4557_v48 = vld [vmem:[#allocation12 + $0x16c] ss:$12 sps:$4 sm:$0xff]  }
 0xb5b   : > { %1956 = vmatprep.subr.bf16.mxu1 %v4538_v49  ;;  %v4558_v49 = vld [vmem:[#allocation12 + $0x170] ss:$12 sps:$4 sm:$0xff]  }
 0xb5e   : > { %1957 = vmatpush1.bf16.msra.mxu1 %v4536_v50  ;;  %v4561_v50 = vld [vmem:[#allocation12 + $0x154] ss:$12 sps:$4 sm:$0xff]  }
 0xb5f   : > { %2372 = vmatprep.subr.bf16.mxu1 %v4557_v48 }
 0xbdb   : > { %v1806_v63 = vpop.xlane.xlu1 %1805 }
 0xbdc   : > { %v1808_v1 = vmul.f32 0.0078125, %v1806_v63  ;;  %v4575_v63 = vld [vmem:[#allocation12 + $0xf0] ss:$12 sps:$4 sm:$0xff]  }
 0xbdd   : > { %v1811_v2 = vpop.xlane.xlu0 %1810 }
 0xbde   : > { %v1813_v3 = vmul.f32 %v1808_v1, %v1808_v1  ;;  %v1812_v4 = vmul.f32 0.0078125, %v1811_v2  ;;  %v1815_v7 = vsub.f32 %v5505_v30, %v1808_v1  ;;  %v4578_v1 = vld [vmem:[#allocation12 + $0xf8] ss:$12 sps:$4 sm:$0xff]   ;;  %v4581_v2 = vld [vmem:[#allocation12 + $0xdc] ss:$12 sps:$4 sm:$0xff]  }
 0xbe0   : > { %v1814_v5 = vsub.f32 %v1812_v4, %v1813_v3  ;;  %v4579_v3 = vld [vmem:[#allocation12 + $0xd8] ss:$12 sps:$4 sm:$0xff]   ;;  %v4582_v4 = vld [vmem:[#allocation12 + $0xe0] ss:$12 sps:$4 sm:$0xff]  }
 0xbe2   : > { %v1816_v6 = vadd.f32 1e-05, %v1814_v5  ;;  %v4585_v5 = vld [vmem:[#allocation12 + $0xc4] ss:$12 sps:$4 sm:$0xff]  }
 0xbe4   : > { %4660 = vrsqrt.f32 %v1816_v6  ;;  %v4583_v6 = vld [vmem:[#allocation12 + $0xc0] ss:$12 sps:$4 sm:$0xff]  }
 0xbf1   : > { %v4661_v10 = vpop.eup %4660 }
 0xbf2   : > { %v1818_v12 = vmul.f32 %v4661_v10, %v1815_v7  ;;  %v4586_v7 = vld [vmem:[#allocation12 + $0xc8] ss:$12 sps:$4 sm:$0xff]  }
 0xbf4   : > { %v1825_v15 = vmul.f32 %v3864_v11, %v1818_v12 }
 0xbf6   : > { %v1832_v16 = vadd.f32 %v3865_v14, %v1825_v15 }
 0xbf8   : > { %v1833_v9 = vpack.c.bf16 %v1832_v16, %v1832_v16 }
 0xbfa   : > { %1975 = vmatmul.mubr.bf16.vlgmr.msra.gmra.mxu1 %v1833_v9 }
 0xbfb   : > { %2404 = vmatprep.mubr.bf16.mxu1 %v5024_v28  ;;  %2373 = vmatpush1.bf16.msra.mxu1 %v4555_v47 }
 0xbfc   : > { %2374 = vmatprep.subr.bf16.mxu1 %v4561_v50 }
 0xbff   : > { %2375 = vmatpush1.bf16.msra.mxu1 %v4559_v51 }
 0xc00   : > { %2376 = vmatprep.subr.bf16.mxu1 %v4565_v53 }
 0xc03   : > { %2377 = vmatpush1.bf16.msra.mxu1 %v4563_v54 }
 0xc04   : > { %2378 = vmatprep.subr.bf16.mxu1 %v4569_v56 }
 0xc07   : > { %2379 = vmatpush1.bf16.msra.mxu1 %v4567_v57 }
 0xc08   : > { %2380 = vmatprep.subr.bf16.mxu1 %v4573_v59 }
 0xc0b   : > { %2381 = vmatpush1.bf16.msra.mxu1 %v4571_v60 }
 0xc0c   : > { %2382 = vmatprep.subr.bf16.mxu1 %v4577_v62 }
 0xc0f   : > { %2383 = vmatpush1.bf16.msra.mxu1 %v4575_v63 }
 0xc10   : > { %2384 = vmatprep.subr.bf16.mxu1 %v4581_v2 }
 0xc13   : > { %2385 = vmatpush1.bf16.msra.mxu1 %v4579_v3 }
 0xc14   : > { %2386 = vmatprep.subr.bf16.mxu1 %v4585_v5 }
 0xc17   : > { %2387 = vmatpush1.bf16.msra.mxu1 %v4583_v6 }
 0xc18   : > { %4256 = vmatprep.subr.bf16.mxu1 %v5022_v0 }
 0xcba   : > { %v1976_v23 = vpop.f32.mrf.mxu1 }
 0xcbb   : > { %v1977_v24 = vadd.f32 %v1976_v23, %v1855_v21 }
 0xcbc   : > { %v1978_v25 = vpop.f32.mrf.mxu1 }
 0xcbd   : > { %v1979_v26 = vadd.f32 %v1978_v25, %v1859_v22  ;;  %v1983_v27 = vmax.f32 %v1977_v24, 0.0  ;;  %v3901_v24 = vld [vmem:[%s5719_s6 + $0x3] sm:$0x7] }
 0xcbe   : > { %v1980_v29 = vpop.f32.mrf.mxu1  ;;  %v2240_v25 = vrot.slane %v3901_v24, %v836_v40 }
 0xcbf   : > { %v1984_v30 = vmax.f32 %v1979_v26, 0.0  ;;  %v1985_v33 = vpack.c.bf16 %v1983_v27, %v1983_v27  ;;  %v2232_v26 = vrot.slane %v3901_v24, %v5406_v42  ;;  %v2236_v27 = vrot.slane %v3901_v24, %v5409_v43  ;;  %v4595_v24 = vld [vmem:[#allocation14 + $0x50] sm:$0xff]  }
 0xcc0   : > { %v1981_v31 = vpop.f32.mrf.mxu1 }
 0xcc1   : > { %v1986_v32 = vpack.c.bf16 %v1984_v30, %v1984_v30 }
 0xcc3   : > { %2154 = vmatprep.mubr.bf16.mxu0 %v1986_v32 }
 0xcc4   : > { %2155 = vmatmul.mubr.bf16.vlgmr.msra.gmra.mxu0 %v1985_v33 }
 0xcc5   : > { %4252 = vmatprep.mubr.msk.bf16.mxu0 %vm5023_vm0, %v5022_v0  ;;  %4237 = vmatpush3.bf16.msra.mxu0 %v4558_v49 }
 0xcc6   : > { %4238 = vmatprep.subr.bf16.mxu0 %v5022_v0 }
 0xcc9   : > { %4239 = vmatpush3.bf16.msra.mxu0 %v4562_v52 }
 0xcca   : > { %4240 = vmatprep.subr.bf16.mxu0 %v5022_v0 }
 0xccd   : > { %4241 = vmatpush3.bf16.msra.mxu0 %v4566_v55 }
 0xcce   : > { %4242 = vmatprep.subr.bf16.mxu0 %v5022_v0 }
 0xcd1   : > { %4243 = vmatpush3.bf16.msra.mxu0 %v4570_v58 }
 0xcd2   : > { %4244 = vmatprep.subr.bf16.mxu0 %v5022_v0 }
 0xcd5   : > { %4245 = vmatpush3.bf16.msra.mxu0 %v4574_v61 }
 0xcd6   : > { %4246 = vmatprep.subr.bf16.mxu0 %v5022_v0 }
 0xcd9   : > { %4247 = vmatpush3.bf16.msra.mxu0 %v4578_v1 }
 0xcda   : > { %4248 = vmatprep.subr.bf16.mxu0 %v5022_v0 }
 0xcdd   : > { %4249 = vmatpush3.bf16.msra.mxu0 %v4582_v4 }
 0xcde   : > { %4250 = vmatprep.subr.bf16.mxu0 %v5022_v0 }
 0xce1   : > { %4251 = vmatpush3.bf16.msra.mxu0 %v4586_v7 }
 0xce2   : > { %4262 = vmatprep.subr.bf16.mxu0 %v5022_v0 }
 0xd84   : > { %v4065_v35 = vpop.f32.mrf.mxu0 }
 0xd86   : > { %v4066_v37 = vpop.f32.mrf.mxu0 }
 0xd87   : > { %v4067_v38 = vadd.f32 %v4066_v37, %v4065_v35 }
 0xd88   : > { %v4068_v41 = vpop.f32.mrf.mxu0 }
 0xd89   : > { %v2157_v34 = vadd.f32 %v4067_v38, %v3882_v36 }
 0xd8a   : > { %v4069_v44 = vpop.f32.mrf.mxu0 }
 0xd8b   : > { %v5529_v45 = vadd.f32 %v2157_v34, %v1832_v16 }
 0xd8d   : > { %2165 = vadd.xlane.f32.xlu0 %v5529_v45  ;;  %v2168_v46 = vmul.f32 %v5529_v45, %v5529_v45 }
 0xd91   : > { %2169 = vadd.xlane.f32.xlu0 %v2168_v46 }
 0xe16   : > { %v2166_v10 = vpop.xlane.xlu0 %2165 }
 0xe17   : > { %v2167_v11 = vmul.f32 0.0078125, %v2166_v10 }
 0xe19   : > { %v2172_v14 = vmul.f32 %v2167_v11, %v2167_v11  ;;  %v2174_v13 = vsub.f32 %v5529_v45, %v2167_v11 }
 0xe1a   : > { %v2170_v12 = vpop.xlane.xlu0 %2169 }
 0xe1b   : > { %v2171_v15 = vmul.f32 0.0078125, %v2170_v12 }
 0xe1d   : > { %v2173_v16 = vsub.f32 %v2171_v15, %v2172_v14 }
 0xe1f   : > { %v2175_v9 = vadd.f32 1e-05, %v2173_v16 }
 0xe21   : > { %4662 = vrsqrt.f32 %v2175_v9 }
 0xe2e   : > { %v4663_v17 = vpop.eup %4662 }
 0xe2f   : > { %v2177_v19 = vmul.f32 %v4663_v17, %v2174_v13 }
 0xe31   : > { %v2184_v21 = vmul.f32 %v3899_v18, %v2177_v19 }
 0xe33   : > { %v5550_v22 = vadd.f32 %v3900_v20, %v2184_v21 }
 0xe35   : > { %v2192_v23 = vpack.c.bf16 %v5550_v22, %v5550_v22 }
 0xe37   : > { %2405 = vmatmul.mubr.bf16.vlgmr.msra.gmra.mxu1 %v2192_v23  ;;  %4253 = vmatmul.mubr.bf16.vlgmr.msra.gmra.mxu0 %v2192_v23  ;;  %v4594_v23 = vld [vmem:[#allocation14 + $0x58] sm:$0xff]  }
 0xe38   : > { %4258 = vmatprep.mubr.msk.bf16.mxu1 %vm5023_vm0, %v5022_v0  ;;  %4264 = vmatprep.mubr.msk.bf16.mxu0 %vm5023_vm0, %v5022_v0 }
 0xef7   : > { %v2406_v29 = vpop.f32.mrf.mxu1  ;;  %v2447_v30 = vpop.f32.mrf.mxu0 }
 0xef8   : > { %v2448_v31 = vadd.f32 %v2447_v30, %v2240_v25  ;;  %v2407_v35 = vadd.f32 %v2406_v29, %v2232_v26 }
 0xef9   : > { %v2408_v32 = vpop.f32.mrf.mxu1  ;;  %v4254_v33 = vpop.f32.mrf.mxu0 }
 0xefa   : > { %v4009_v36 = vpack.c.bf16 %v2448_v31, %v2448_v31  ;;  %v2409_v37 = vadd.f32 %v2408_v32, %v2236_v27  ;;  %v4592_v31 = vld [vmem:[#allocation14 + $0x48] sm:$0xff]   ;;  %v4593_v33 = vld [vmem:[#allocation14 + $0x40] sm:$0xff]  }
 0xefb   : > { %v2410_v38 = vpop.f32.mrf.mxu1  ;;  %v2450_v41 = vpop.f32.mrf.mxu0 }
 0xefc   : > { %2467 = vst [vmem:[#allocation2 + $0x8] sm:$0xf] %v4009_v36  ;;  %v4008_v34 = vpack.c.bf16 %v2409_v37, %v2407_v35 }
 0xefd   : > { %v2411_v44 = vpop.f32.mrf.mxu1  ;;  %v4255_v45 = vpop.f32.mrf.mxu0 }
 0xefe   : > { %2466 = vst [vmem:[#allocation2] sm:$0xff] %v4008_v34 }
 0xf03   : > { %v2470_v39 = vld [vmem:[#allocation2 + $0x8] sm:$0xf] }
 0xf04   : > { %v2535_v40 = vsel %vm1133_vm2, %v2470_v39, 0  ;;  %v4590_v13 = vld [vmem:[#allocation2 + $0x8] ss:$0 sps:$4 sm:$0xff]  }
 0xf05   : > { %4263 = vmatpush3.bf16.msra.mxu0 %v2535_v40  ;;  %v2469_v46 = vld [vmem:[#allocation2 + $0x4] sm:$0xf]  ;;  %v4588_v49 = vld [vmem:[#allocation2] ss:$0 sps:$4 sm:$0xff]  }
 0xf06   : > { %v4587_v47 = vld [vmem:[#allocation2 + $0x4] ss:$0 sps:$4 sm:$0xff]   ;;  %v2475_v48 = vsel %vm1068_vm3, %v2469_v46, 0  ;;  %4274 = vmatprep.subr.bf16.mxu0 %v5022_v0  ;;  %2589 = vrot.lane.b32.xlu1 %v4588_v49, %s5025_s1  ;;  %v2468_v50 = vld [vmem:[#allocation2] sm:$0xf] }
 0xf07   : > { %4257 = vmatpush3.bf16.xpose.msra.mxu1 %v2475_v48  ;;  %2594 = vrot.lane.b32.xlu0 %v4587_v47, %s5025_s1  ;;  %v4589_v5 = vld [vmem:[#allocation2 + $0x4] ss:$0 sps:$4 sm:$0xff]   ;;  %v4591_v18 = vld [vmem:[#allocation2] ss:$0 sps:$4 sm:$0xff]  }
 0xf08   : > { %4268 = vmatprep.subr.bf16.mxu1 %v5022_v0 }
 0xf0e   : > { %4259 = vmatmul.mubr.msk.bf16.vlgmr.msra.gmra.mxu1 %vm1068_vm3, %v2468_v50 }
 0xf0f   : > { %4270 = vmatprep.mubr.msk.bf16.mxu1 %vm5023_vm0, %v5022_v0 }
 0xf78   : > { %v2590_v53 = vpop.permute.xlu1 %2589 }
 0xf79   : > { %v2595_v51 = vpop.permute.xlu0 %2594 }
 0xf7a   : > { %v2600_v52 = vsel %vm1068_vm3, %v2595_v51, 0 }
 0xf7b   : > { %4269 = vmatpush3.bf16.xpose.msra.mxu1 %v2600_v52 }
 0xf7c   : > { %4280 = vmatprep.subr.bf16.mxu1 %v5022_v0 }
 0xf82   : > { %4271 = vmatmul.mubr.msk.bf16.vlgmr.msra.gmra.mxu1 %vm1068_vm3, %v2590_v53 }
 0xf83   : > { %4284 = vmatprep.mubr.msk.bf16.mxu1 %vm5023_vm0, %v5022_v0  ;;  %4281 = vmatpush3.bf16.msra.mxu1 %v4594_v23 }
 0xf84   : > { %4282 = vmatprep.subr.bf16.mxu1 %v5022_v0 }
 0xf87   : > { %4283 = vmatpush3.bf16.msra.mxu1 %v4595_v24 }
 0xf88   : > { %4296 = vmatprep.subr.bf16.mxu1 %v5022_v0 }
 0xfce   : > { %v2511_v54 = vpop.f32.mrf.mxu1 }
 0xfcf   : > { %v2517_v55 = vmul.f32 0.17677669, %v2511_v54 }
 0xfd0   : > { %v4260_v56 = vpop.f32.mrf.mxu1 }
 0xfd1   : > { %v2518_v57 = vadd.f32 %v5431_v8, %v2517_v55 }
 0xfd2   : > { %v2514_v58 = vpop.f32.mrf.mxu1 }
 0xfd3   : > { %v2519_v59 = vsel %vm1117_vm4, %v2518_v57, -inf }
 0xfd4   : > { %2520 = vmax.xlane.f32.xlu0 %v2519_v59  ;;  %v4261_v60 = vpop.f32.mrf.mxu1 }
 0xfd5   : > { %v4684_v60 = vld [vmem:[%s623_s28] ss:$0 sm:$0xff]  ;;  %s4929_s28 = sshll.u32 %s5028_s5, 4  ;;  %s4930_s28 = int_to_ptr.vmem [resolvable:$false] %s4929_s28 }
0x1042   : > { %v2636_v61 = vpop.f32.mrf.mxu1 }
0x1043   : > { %v2642_v62 = vmul.f32 0.17677669, %v2636_v61 }
0x1044   : > { %v4272_v63 = vpop.f32.mrf.mxu1 }
0x1045   : > { %v2643_v1 = vadd.f32 %v5431_v8, %v2642_v62 }
0x1046   : > { %v2639_v2 = vpop.f32.mrf.mxu1 }
0x1047   : > { %v2644_v3 = vsel %vm1117_vm4, %v2643_v1, -inf  ;;  %v4596_v2 = vld [vmem:[#allocation2 + $0x4] ss:$0 sps:$4 sm:$0xff]  }
0x1048   : > { %2645 = vmax.xlane.f32.xlu1 %v2644_v3  ;;  %v4273_v4 = vpop.f32.mrf.mxu1  ;;  %v4597_v3 = vld [vmem:[#allocation2] ss:$0 sps:$4 sm:$0xff]  }
0x1059   : > { %2834 = vrot.lane.b32.xlu1 %v4589_v5, %s5026_s24 }
0x105d   : > { %v2521_v6 = vpop.xlane.xlu0 %2520 }
0x105e   : > { %v2522_v7 = vsub.f32 %v2518_v57, %v2521_v6 }
0x1060   : > { %v2523_v10 = vmul.f32 1.442695, %v2522_v7 }
0x1062   : > { %4664 = vpow2.f32 %v2523_v10 }
0x106f   : > { %v4665_v11 = vpop.eup %4664 }
0x1070   : > { %v2525_v12 = vsel %vm1117_vm4, %v4665_v11, 0.0 }
0x1071   : > { %2526 = vadd.xlane.f32.xlu0 %v2525_v12  ;;  %v4599_v12 = vld [vmem:[#allocation14 + $0x68] sm:$0xff]  }
0x10d1   : > { %v2646_v14 = vpop.xlane.xlu1 %2645 }
0x10d2   : > { %v2647_v15 = vsub.f32 %v2643_v1, %v2646_v14 }
0x10d4   : > { %v2648_v16 = vmul.f32 1.442695, %v2647_v15 }
0x10d5   : > { %v2835_v34 = vpop.permute.xlu1 %2834 }
0x10d6   : > { %4666 = vpow2.f32 %v2648_v16  ;;  %v2840_v40 = vsel %vm1068_vm3, %v2835_v34, 0 }
0x10e3   : > { %v4667_v8 = vpop.eup %4666 }
0x10e4   : > { %v2650_v9 = vsel %vm1117_vm4, %v4667_v8, 0.0 }
0x10e5   : > { %2651 = vadd.xlane.f32.xlu0 %v2650_v9 }
0x10fa   : > { %v2527_v17 = vpop.xlane.xlu0 %2526 }
0x10fb   : > { %4668 = vrcp.f32 %v2527_v17  ;;  %2659 = vrot.lane.b32.xlu0 %v4590_v13, %s5025_s1 }
0x10ff   : > { %2829 = vrot.lane.b32.xlu0 %v4591_v18, %s5026_s24 }
0x1108   : > { %v4669_v19 = vpop.eup %4668 }
0x1109   : > { %v2529_v20 = vmul.f32 %v4669_v19, %v4665_v11  ;;  %v4598_v11 = vld [vmem:[#allocation2 + $0x8] ss:$0 sps:$4 sm:$0xff]  }
0x110b   : > { %v2530_v21 = vpack.c.bf16 %v2529_v20, %v2529_v20  ;;  %v4600_v20 = vld [vmem:[#allocation14 + $0x60] sm:$0xff]  }
0x110d   : > { %4265 = vmatmul.mubr.msk.bf16.vlgmr.msra.gmra.mxu0 %vm1117_vm4, %v2530_v21 }
0x110e   : > { %4276 = vmatprep.mubr.msk.bf16.mxu0 %vm5023_vm0, %v5022_v0 }
0x116e   : > { %v2652_v25 = vpop.xlane.xlu0 %2651 }
0x116f   : > { %4670 = vrcp.f32 %v2652_v25 }
0x1172   : > { %v2660_v26 = vpop.permute.xlu0 %2659 }
0x1173   : > { %v2665_v27 = vsel %vm1133_vm2, %v2660_v26, 0 }
0x1174   : > { %4275 = vmatpush3.bf16.msra.mxu0 %v2665_v27 }
0x1175   : > { %4288 = vmatprep.subr.bf16.mxu0 %v5022_v0 }
0x1176   : > { %v2830_v48 = vpop.permute.xlu0 %2829 }
0x117c   : > { %v4671_v29 = vpop.eup %4670 }
0x117d   : > { %v2654_v30 = vmul.f32 %v4671_v29, %v4667_v8 }
0x117f   : > { %v2655_v32 = vpack.c.bf16 %v2654_v30, %v2654_v30 }
0x1181   : > { %4277 = vmatmul.mubr.msk.bf16.vlgmr.msra.gmra.mxu0 %vm1117_vm4, %v2655_v32 }
0x1182   : > { %4289 = vmatpush3.bf16.msra.mxu0 %v4592_v31  ;;  %4292 = vmatprep.mubr.msk.bf16.mxu0 %vm5023_vm0, %v5022_v0 }
0x1183   : > { %4290 = vmatprep.subr.bf16.mxu0 %v5022_v0 }
0x1186   : > { %4291 = vmatpush3.bf16.msra.mxu0 %v4593_v33 }
0x1187   : > { %4302 = vmatprep.subr.bf16.mxu0 %v5022_v0 }
0x11cd   : > { %v2571_v35 = vpop.f32.mrf.mxu0 }
0x11ce   : > { %v2577_v36 = vpack.c.bf16 %v2571_v35, %v2571_v35 }
0x11cf   : > { %v4266_v37 = vpop.f32.mrf.mxu0 }
0x11d0   : > { %4293 = vmatmul.mubr.msk.bf16.vlgmr.msra.gmra.mxu0 %vm1068_vm3, %v2577_v36  ;;  %v4601_v36 = vld [vmem:[#allocation2 + $0x8] ss:$0 sps:$4 sm:$0xff]  }
0x11d1   : > { %v2574_v38 = vpop.f32.mrf.mxu0  ;;  %4304 = vmatprep.mubr.msk.bf16.mxu0 %vm5023_vm0, %v5022_v0 }
0x11d3   : > { %v4267_v41 = vpop.f32.mrf.mxu0 }
0x1241   : > { %v2701_v44 = vpop.f32.mrf.mxu0 }
0x1242   : > { %v2707_v45 = vpack.c.bf16 %v2701_v44, %v2701_v44 }
0x1243   : > { %v4278_v39 = vpop.f32.mrf.mxu0 }
0x1244   : > { %4285 = vmatmul.mubr.msk.bf16.vlgmr.msra.gmra.mxu1 %vm1068_vm3, %v2707_v45 }
0x1245   : > { %4297 = vmatpush3.bf16.xpose.msra.mxu1 %v2840_v40  ;;  %v2704_v46 = vpop.f32.mrf.mxu0  ;;  %4298 = vmatprep.mubr.msk.bf16.mxu1 %vm5023_vm0, %v5022_v0 }
0x1246   : > { %4308 = vmatprep.subr.bf16.mxu1 %v5022_v0 }
0x1247   : > { %v4279_v47 = vpop.f32.mrf.mxu0 }
0x124c   : > { %4299 = vmatmul.mubr.msk.bf16.vlgmr.msra.gmra.mxu1 %vm1068_vm3, %v2830_v48 }
0x124d   : > { %4312 = vmatprep.mubr.msk.bf16.mxu1 %vm5023_vm0, %v5022_v0  ;;  %4309 = vmatpush3.bf16.msra.mxu1 %v4599_v12  ;;  %v4612_v12 = vld [vmem:[#allocation15 + $0xd4] ss:$8 sps:$4 sm:$0xff]  }
0x124e   : > { %4310 = vmatprep.subr.bf16.mxu1 %v5022_v0 }
0x1251   : > { %4311 = vmatpush3.bf16.msra.mxu1 %v4600_v20  ;;  %v4625_v20 = vld [vmem:[#allocation15 + $0x80] ss:$8 sps:$4 sm:$0xff]  }
0x1252   : > { %4322 = vmatprep.subr.bf16.mxu1 %v5022_v0 }
0x1290   : > { %v5611_v49 = vpop.f32.mrf.mxu0 }
0x1292   : > { %v4294_v50 = vpop.f32.mrf.mxu0 }
0x1294   : > { %v2820_v51 = vpop.f32.mrf.mxu0 }
0x1295   : > { %v4602_v51 = vld [vmem:[#allocation14 + $0x78] sm:$0xff]  }
0x1296   : > { %v4295_v52 = vpop.f32.mrf.mxu0 }
0x1304   : > { %v5613_v53 = vpop.f32.mrf.mxu1 }
0x1305   : > { %v2818_v40 = vadd.f32 %v5611_v49, %v5613_v53 }
0x1306   : > { %v4286_v54 = vpop.f32.mrf.mxu1 }
0x1308   : > { %v2765_v55 = vpop.f32.mrf.mxu1 }
0x130a   : > { %v4287_v56 = vpop.f32.mrf.mxu1 }
0x130c   : > { %v2876_v57 = vpop.f32.mrf.mxu1 }
0x130d   : > { %v2882_v58 = vmul.f32 0.17677669, %v2876_v57 }
0x130e   : > { %v4300_v59 = vpop.f32.mrf.mxu1 }
0x130f   : > { %v2883_v61 = vadd.f32 %v4684_v60, %v2882_v58  ;;  %v4603_v58 = vld [vmem:[#allocation14 + $0x70] sm:$0xff]  }
0x1310   : > { %v2879_v62 = vpop.f32.mrf.mxu1 }
0x1311   : > { %v2884_v63 = vsel %vm1117_vm4, %v2883_v61, -inf }
0x1312   : > { %2885 = vmax.xlane.f32.xlu1 %v2884_v63  ;;  %v4301_v1 = vpop.f32.mrf.mxu1 }
0x1323   : > { %3020 = vrot.lane.b32.xlu1 %v4596_v2, %s5027_s18 }
0x1327   : > { %3015 = vrot.lane.b32.xlu1 %v4597_v3, %s5027_s18 }
0x139b   : > { %v2886_v4 = vpop.xlane.xlu1 %2885 }
0x139c   : > { %v2887_v5 = vsub.f32 %v2883_v61, %v2886_v4 }
0x139e   : > { %v2888_v6 = vmul.f32 1.442695, %v2887_v5 }
0x139f   : > { %v3021_v13 = vpop.permute.xlu1 %3020 }
0x13a0   : > { %4672 = vpow2.f32 %v2888_v6  ;;  %v3026_v18 = vsel %vm1068_vm3, %v3021_v13, 0  ;;  %v4604_v6 = vld [vmem:[#allocation15 + $0xf0] ss:$8 sps:$4 sm:$0xff]   ;;  %v4619_v13 = vld [vmem:[#allocation15 + $0xa0] ss:$8 sps:$4 sm:$0xff]  }
0x13a3   : > { %v3016_v19 = vpop.permute.xlu1 %3015 }
0x13ad   : > { %v4673_v7 = vpop.eup %4672 }
0x13ae   : > { %v2890_v10 = vsel %vm1117_vm4, %v4673_v7, 0.0 }
0x13af   : > { %2891 = vadd.xlane.f32.xlu0 %v2890_v10  ;;  %v4609_v10 = vld [vmem:[#allocation15 + $0xe4] ss:$8 sps:$4 sm:$0xff]  }
0x13c5   : > { %2899 = vrot.lane.b32.xlu0 %v4598_v11, %s5026_s24  ;;  %v4607_v11 = vld [vmem:[#allocation15 + $0xe0] ss:$8 sps:$4 sm:$0xff]   ;;  %s4003_s24 = sshll.u32 %s5140_s0, 6  ;;  %s4931_s0 = scalar_lea.vmem %s4930_s28, 128 }
0x13c6   : > { %s3615_s4 = scalar_lea.hbm %s5818_s23, %s4003_s24 }
0x1438   : > { %v2892_v14 = vpop.xlane.xlu0 %2891 }
0x1439   : > { %4674 = vrcp.f32 %v2892_v14  ;;  %v4610_v14 = vld [vmem:[#allocation15 + $0xd0] ss:$8 sps:$4 sm:$0xff]  }
0x143c   : > { %v2900_v15 = vpop.permute.xlu0 %2899 }
0x143d   : > { %v2905_v16 = vsel %vm1133_vm2, %v2900_v15, 0  ;;  %v4613_v15 = vld [vmem:[#allocation15 + $0xc0] ss:$8 sps:$4 sm:$0xff]  }
0x143e   : > { %4303 = vmatpush3.bf16.msra.mxu0 %v2905_v16  ;;  %v4618_v16 = vld [vmem:[#allocation15 + $0xb4] ss:$8 sps:$4 sm:$0xff]  }
0x143f   : > { %4316 = vmatprep.subr.bf16.mxu0 %v5022_v0 }
0x1446   : > { %v4675_v8 = vpop.eup %4674 }
0x1447   : > { %v2894_v9 = vmul.f32 %v4675_v8, %v4673_v7  ;;  %v4606_v7 = vld [vmem:[#allocation15 + $0xf4] ss:$8 sps:$4 sm:$0xff]   ;;  %v4616_v8 = vld [vmem:[#allocation15 + $0xb0] ss:$8 sps:$4 sm:$0xff]  }
0x1449   : > { %v2895_v17 = vpack.c.bf16 %v2894_v9, %v2894_v9  ;;  %v4621_v9 = vld [vmem:[#allocation15 + $0xa4] ss:$8 sps:$4 sm:$0xff]  }
0x144b   : > { %4305 = vmatmul.mubr.msk.bf16.vlgmr.msra.gmra.mxu0 %vm1117_vm4, %v2895_v17  ;;  %v4624_v17 = vld [vmem:[#allocation15 + $0x94] ss:$8 sps:$4 sm:$0xff]  }
0x144c   : > { %4317 = vmatpush3.bf16.xpose.msra.mxu0 %v3026_v18  ;;  %4318 = vmatprep.mubr.msk.bf16.mxu0 %vm5023_vm0, %v5022_v0  ;;  %v4622_v18 = vld [vmem:[#allocation15 + $0x90] ss:$8 sps:$4 sm:$0xff]  }
0x144d   : > { %4328 = vmatprep.subr.bf16.mxu0 %v5022_v0 }
0x1453   : > { %4319 = vmatmul.mubr.msk.bf16.vlgmr.msra.gmra.mxu0 %vm1068_vm3, %v3016_v19  ;;  %v4627_v19 = vld [vmem:[#allocation15 + $0x84] ss:$8 sps:$4 sm:$0xff]  }
0x1454   : > { %4332 = vmatprep.mubr.msk.bf16.mxu0 %vm5023_vm0, %v5022_v0  ;;  %4329 = vmatpush3.bf16.msra.mxu0 %v4602_v51 }
0x1455   : > { %4330 = vmatprep.subr.bf16.mxu0 %v5022_v0 }
0x1458   : > { %4331 = vmatpush3.bf16.msra.mxu0 %v4603_v58  ;;  %v3963_v58 = vld [vmem:[%s5813_s16 + $0x2] sm:$0x3] }
0x150b   : > { %v2941_v21 = vpop.f32.mrf.mxu0 }
0x150c   : > { %v2947_v23 = vpack.c.bf16 %v2941_v21, %v2941_v21  ;;  %v4628_v21 = vld [vmem:[#allocation17 + $0xf8] sm:$0xff]  }
0x150d   : > { %v4306_v24 = vpop.f32.mrf.mxu0  ;;  %4108 = vmatprep.subr.bf16.mxu0 %v4628_v21  ;;  %v4001_v21 = vld [vmem:[%s5816_s14 + $0x1] ss:$0 sm:$0xff] }
0x150e   : > { %4313 = vmatmul.mubr.msk.bf16.vlgmr.msra.gmra.mxu1 %vm1068_vm3, %v2947_v23  ;;  %v4629_v23 = vld [vmem:[#allocation17 + $0xb8] sm:$0xff]   ;;  %v4630_v24 = vld [vmem:[#allocation17 + $0xf0] sm:$0xff]  }
0x150f   : > { %v2944_v25 = vpop.f32.mrf.mxu0  ;;  %4324 = vmatprep.mubr.msk.bf16.mxu1 %vm5023_vm0, %v5022_v0  ;;  %v3958_v0 = vld [vmem:[%s5721_s8 + $0x1] ss:$0 sm:$0xff] }
0x1510   : > { %v4631_v25 = vld [vmem:[#allocation17 + $0xb0] sm:$0xff]  }
0x1511   : > { %v4307_v26 = vpop.f32.mrf.mxu0 }
0x1512   : > { %v4632_v26 = vld [vmem:[#allocation17 + $0xe8] sm:$0xff]  }
0x1513   : > { %v3062_v27 = vpop.f32.mrf.mxu0 }
0x1514   : > { %v3068_v29 = vmul.f32 0.17677669, %v3062_v27  ;;  %v4633_v27 = vld [vmem:[#allocation17 + $0xa8] sm:$0xff]  }
0x1515   : > { %v4320_v30 = vpop.f32.mrf.mxu0 }
0x1516   : > { %v3069_v31 = vadd.f32 %v4684_v60, %v3068_v29  ;;  %v4634_v29 = vld [vmem:[#allocation17 + $0xe0] sm:$0xff]  }
0x1517   : > { %v3065_v32 = vpop.f32.mrf.mxu0  ;;  %v4635_v30 = vld [vmem:[#allocation17 + $0xa0] sm:$0xff]  }
0x1518   : > { %v3070_v33 = vsel %vm1117_vm4, %v3069_v31, -inf  ;;  %v4637_v32 = vld [vmem:[#allocation17 + $0x98] sm:$0xff]  }
0x1519   : > { %3071 = vmax.xlane.f32.xlu0 %v3070_v33  ;;  %v4321_v35 = vpop.f32.mrf.mxu0  ;;  %v4638_v33 = vld [vmem:[#allocation17 + $0xd0] sm:$0xff]  }
0x151a   : > { %v4639_v35 = vld [vmem:[#allocation17 + $0x90] sm:$0xff]  }
0x152f   : > { %3085 = vrot.lane.b32.xlu0 %v4601_v36, %s5027_s18  ;;  %s713_s18 = scalar_lea.vmem [#allocation18], %s3802_s10 }
0x1530   : > { %s3617_s12 = sshll.u32 %s713_s18, 4  ;;  %s3618_s12 = int_to_ptr.vmem [resolvable:$true] %s3617_s12 }
0x1531   : > { %s4925_s29 = scalar_lea.vmem %s3618_s12, 64  ;;  %p4932_p13 = scmp.lt.s32.totalorder %s3618_s12, %s4930_s28 }
0x1532   : > { %p4926_p6 = scmp.ne.s32.totalorder %s3618_s12, %s4925_s29  ;;  %p4933_p5 = scmp.lt.s32.totalorder %s4931_s0, %s4925_s29 }
0x1534   : > { %p4927_p8 = pnand %p4926_p6, %p5819_p7  ;;  %p4934_p1 = por %p4933_p5, %p4932_p13 }
0x1536   : > { %p4928_p3 = pneg %p4927_p8 }
0x1538   : > { %p4935_p10 = pnand %p4934_p1, %p4928_p3 }
0x15a2   : > { %v3072_v37 = vpop.xlane.xlu0 %3071 }
0x15a3   : > { %v3073_v38 = vsub.f32 %v3069_v31, %v3072_v37  ;;  %v4636_v31 = vld [vmem:[#allocation17 + $0xd8] sm:$0xff]  }
0x15a5   : > { %v3074_v41 = vmul.f32 1.442695, %v3073_v38 }
0x15a6   : > { %v3086_v34 = vpop.permute.xlu0 %3085 }
0x15a7   : > { %4676 = vpow2.f32 %v3074_v41  ;;  %v3091_v44 = vsel %vm1133_vm2, %v3086_v34, 0 }
0x15a8   : > { %4323 = vmatpush3.bf16.msra.mxu1 %v3091_v44 }
0x15a9   : > { %3347 = vmatprep.subr.bf16.mxu1 %v4606_v7 }
0x15b4   : > { %v4677_v45 = vpop.eup %4676 }
0x15b5   : > { %v3076_v39 = vsel %vm1117_vm4, %v4677_v45, 0.0 }
0x15b6   : > { %3077 = vadd.xlane.f32.xlu1 %v3076_v39 }
0x15ce   : > { %v3002_v46 = vpop.f32.mrf.mxu1 }
0x15cf   : > { %v3008_v47 = vadd.f32 %v3002_v46, %v2818_v40  ;;  %v3961_v46 = vld [vmem:[%s5810_s15 + $0x1] ss:$0 sm:$0xff] }
0x15d0   : > { %v4314_v48 = vpop.f32.mrf.mxu1 }
0x15d1   : > { %v3962_v48 = vld [vmem:[%s5811_s9 + $0x1] ss:$0 sm:$0xff] }
0x15d2   : > { %v3005_v50 = vpop.f32.mrf.mxu1 }
0x15d4   : > { %v4315_v52 = vpop.f32.mrf.mxu1 }
0x163f   : > { %v3078_v54 = vpop.xlane.xlu1 %3077 }
0x1640   : > { %4678 = vrcp.f32 %v3078_v54  ;;  %v4640_v54 = vld [vmem:[#allocation17 + $0xc8] sm:$0xff]  }
0x164d   : > { %v4679_v55 = vpop.eup %4678 }
0x164e   : > { %v3080_v56 = vmul.f32 %v4679_v55, %v4677_v45  ;;  %v4641_v55 = vld [vmem:[#allocation17 + $0x88] sm:$0xff]  }
0x1650   : > { %v3081_v57 = vpack.c.bf16 %v3080_v56, %v3080_v56  ;;  %v4642_v56 = vld [vmem:[#allocation17 + $0xc0] sm:$0xff]  }
0x1652   : > { %4325 = vmatmul.mubr.msk.bf16.vlgmr.msra.gmra.mxu1 %vm1117_vm4, %v3081_v57  ;;  %v4643_v57 = vld [vmem:[#allocation17 + $0x80] sm:$0xff]  }
0x1653   : > { %3379 = vmatprep.mubr.bf16.mxu1 %v5024_v28  ;;  %3348 = vmatpush1.bf16.msra.mxu1 %v4604_v6 }
0x1654   : > { %3349 = vmatprep.subr.bf16.mxu1 %v4609_v10 }
0x1657   : > { %3350 = vmatpush1.bf16.msra.mxu1 %v4607_v11 }
0x1658   : > { %3351 = vmatprep.subr.bf16.mxu1 %v4612_v12 }
0x165b   : > { %3352 = vmatpush1.bf16.msra.mxu1 %v4610_v14 }
0x1712   : > { %v3127_v49 = vpop.f32.mrf.mxu1 }
0x1713   : > { %v3133_v53 = vpack.c.bf16 %v3127_v49, %v3127_v49  ;;  %v3260_v49 = vrot.slane %v3963_v58, %v5406_v42 }
0x1714   : > { %v4326_v59 = vpop.f32.mrf.mxu1 }
0x1715   : > { %4333 = vmatmul.mubr.msk.bf16.vlgmr.msra.gmra.mxu0 %vm1068_vm3, %v3133_v53  ;;  %v3264_v53 = vrot.slane %v3963_v58, %v5409_v43 }
0x1716   : > { %v3130_v60 = vpop.f32.mrf.mxu1  ;;  %4109 = vmatpush3.bf16.msra.mxu0 %v4629_v23 }
0x1717   : > { %4110 = vmatprep.subr.bf16.mxu0 %v4630_v24 }
0x1718   : > { %v4327_v61 = vpop.f32.mrf.mxu1 }
0x171a   : > { %4111 = vmatpush3.bf16.msra.mxu0 %v4631_v25 }
0x171b   : > { %4112 = vmatprep.subr.bf16.mxu0 %v4632_v26 }
0x171e   : > { %4113 = vmatpush3.bf16.msra.mxu0 %v4633_v27 }
0x171f   : > { %4114 = vmatprep.subr.bf16.mxu0 %v4634_v29 }
0x1722   : > { %4115 = vmatpush3.bf16.msra.mxu0 %v4635_v30 }
0x1723   : > { %4116 = vmatprep.subr.bf16.mxu0 %v4636_v31 }
0x1726   : > { %4117 = vmatpush3.bf16.msra.mxu0 %v4637_v32 }
0x1727   : > { %4118 = vmatprep.subr.bf16.mxu0 %v4638_v33 }
0x172a   : > { %4119 = vmatpush3.bf16.msra.mxu0 %v4639_v35 }
0x172b   : > { %4120 = vmatprep.subr.bf16.mxu0 %v4640_v54 }
0x172e   : > { %4121 = vmatpush3.bf16.msra.mxu0 %v4641_v55 }
0x172f   : > { %4122 = vmatprep.subr.bf16.mxu0 %v4642_v56 }
0x1732   : > { %4123 = vmatpush3.bf16.msra.mxu0 %v4643_v57 }
0x17d5   : > { %v3188_v62 = vpop.f32.mrf.mxu0 }
0x17d6   : > { %v3194_v63 = vadd.f32 %v3188_v62, %v3008_v47 }
0x17d7   : > { %v4334_v1 = vpop.f32.mrf.mxu0 }
0x17d8   : > { %v3203_v2 = vadd.f32 %v3958_v0, %v3194_v63 }
0x17d9   : > { %v3191_v3 = vpop.f32.mrf.mxu0 }
0x17da   : > { %v5651_v28 = vadd.f32 %v3203_v2, %v5550_v22  ;;  %v4615_v22 = vld [vmem:[#allocation15 + $0xc4] ss:$8 sps:$4 sm:$0xff]  }
0x17db   : > { %v4335_v4 = vpop.f32.mrf.mxu0  ;;  %3353 = vmatprep.subr.bf16.mxu1 %v4615_v22 }
0x17dc   : > { %3209 = vadd.xlane.f32.xlu1 %v5651_v28  ;;  %v3212_v5 = vmul.f32 %v5651_v28, %v5651_v28  ;;  %3354 = vmatpush1.bf16.msra.mxu1 %v4613_v15 }
0x17dd   : > { %3355 = vmatprep.subr.bf16.mxu1 %v4618_v16 }
0x17e0   : > { %3213 = vadd.xlane.f32.xlu1 %v3212_v5  ;;  %3356 = vmatpush1.bf16.msra.mxu1 %v4616_v8  ;;  %v3981_v5 = vld [vmem:[%s5814_s21 + $0x1] ss:$0 sm:$0xff] }
0x17e1   : > { %3357 = vmatprep.subr.bf16.mxu1 %v4621_v9 }
0x17e4   : > { %3358 = vmatpush1.bf16.msra.mxu1 %v4619_v13 }
0x17e5   : > { %3359 = vmatprep.subr.bf16.mxu1 %v4624_v17 }
0x17e8   : > { %3360 = vmatpush1.bf16.msra.mxu1 %v4622_v18 }
0x17e9   : > { %3361 = vmatprep.subr.bf16.mxu1 %v4627_v19  ;;  %v4000_v19 = vld [vmem:[%s5815_s17 + $0x1] ss:$0 sm:$0xff] }
0x17ec   : > { %3362 = vmatpush1.bf16.msra.mxu1 %v4625_v20 }
0x1865   : > { %v3210_v36 = vpop.xlane.xlu1 %3209 }
0x1866   : > { %v3211_v37 = vmul.f32 0.0078125, %v3210_v36 }
0x1868   : > { %v3216_v41 = vmul.f32 %v3211_v37, %v3211_v37  ;;  %v3218_v39 = vsub.f32 %v5651_v28, %v3211_v37 }
0x1869   : > { %v3214_v38 = vpop.xlane.xlu1 %3213 }
0x186a   : > { %v3215_v34 = vmul.f32 0.0078125, %v3214_v38 }
0x186c   : > { %v3217_v44 = vsub.f32 %v3215_v34, %v3216_v41 }
0x186e   : > { %v3219_v45 = vadd.f32 1e-05, %v3217_v44 }
0x1870   : > { %4680 = vrsqrt.f32 %v3219_v45 }
0x187d   : > { %v4681_v40 = vpop.eup %4680 }
0x187e   : > { %v3221_v47 = vmul.f32 %v4681_v40, %v3218_v39 }
0x1880   : > { %v3228_v50 = vmul.f32 %v3961_v46, %v3221_v47 }
0x1882   : > { %v3235_v51 = vadd.f32 %v3962_v48, %v3228_v50 }
0x1884   : > { %v3236_v52 = vpack.c.bf16 %v3235_v51, %v3235_v51 }
0x1886   : > { %3380 = vmatmul.mubr.bf16.vlgmr.msra.gmra.mxu1 %v3236_v52 }
0x1946   : > { %v3381_v59 = vpop.f32.mrf.mxu1 }
0x1947   : > { %v3382_v60 = vadd.f32 %v3381_v59, %v3260_v49 }
0x1948   : > { %v3383_v61 = vpop.f32.mrf.mxu1 }
0x1949   : > { %v3384_v62 = vadd.f32 %v3383_v61, %v3264_v53  ;;  %v3388_v0 = vmax.f32 %v3382_v60, 0.0 }
0x194a   : > { %v3385_v63 = vpop.f32.mrf.mxu1 }
0x194b   : > { %v3389_v1 = vmax.f32 %v3384_v62, 0.0  ;;  %v3390_v28 = vpack.c.bf16 %v3388_v0, %v3388_v0 }
0x194c   : > { %v3386_v2 = vpop.f32.mrf.mxu1 }
0x194d   : > { %v3391_v3 = vpack.c.bf16 %v3389_v1, %v3389_v1 }
0x194f   : > { %3561 = vmatprep.mubr.bf16.mxu0 %v3391_v3 }
0x1950   : > { %3562 = vmatmul.mubr.bf16.vlgmr.msra.gmra.mxu0 %v3390_v28 }
0x1a10   : > { %v4124_v4 = vpop.f32.mrf.mxu0 }
0x1a12   : > { %v4125_v42 = vpop.f32.mrf.mxu0 }
0x1a13   : > { %v4126_v6 = vadd.f32 %v4125_v42, %v4124_v4 }
0x1a14   : > { %v4127_v43 = vpop.f32.mrf.mxu0 }
0x1a15   : > { %v3564_v7 = vadd.f32 %v4126_v6, %v3981_v5 }
0x1a16   : > { %v4128_v10 = vpop.f32.mrf.mxu0 }
0x1a17   : > { %v3569_v11 = vadd.f32 %v3564_v7, %v3235_v51 }
0x1a19   : > { %3574 = vadd.xlane.f32.xlu1 %v3569_v11  ;;  %v3577_v12 = vmul.f32 %v3569_v11, %v3569_v11 }
0x1a1d   : > { %3578 = vadd.xlane.f32.xlu1 %v3577_v12 }
0x1aa2   : > { %v3575_v14 = vpop.xlane.xlu1 %3574 }
0x1aa3   : > { %v3576_v22 = vmul.f32 0.0078125, %v3575_v14 }
0x1aa5   : > { %v3581_v16 = vmul.f32 %v3576_v22, %v3576_v22  ;;  %v3583_v17 = vsub.f32 %v3569_v11, %v3576_v22 }
0x1aa6   : > { %v3579_v15 = vpop.xlane.xlu1 %3578 }
0x1aa7   : > { %v3580_v8 = vmul.f32 0.0078125, %v3579_v15 }
0x1aa9   : > { %v3582_v9 = vsub.f32 %v3580_v8, %v3581_v16 }
0x1aab   : > { %v3584_v13 = vadd.f32 1e-05, %v3582_v9 }
0x1aad   : > { %4682 = vrsqrt.f32 %v3584_v13 }
0x1aba   : > { %v4683_v18 = vpop.eup %4682 }
0x1abb   : > { %v3586_v20 = vmul.f32 %v4683_v18, %v3583_v17 }
0x1abd   : > { %v3593_v23 = vmul.f32 %v4000_v19, %v3586_v20 }
0x1abf   : > { %v3600_v24 = vadd.f32 %v4001_v21, %v3593_v23 }
0x1ac1   : > { %v3601_v25 = vpack.c.bf16 %v3600_v24, %v3600_v24 }
0x1ac3   : > { %3602 = vst [vmem:[%s713_s18] sm:$0xf] %v3601_v25 }
0x1ac4   : > { %4938 = shalt.err (!%p4935_p10)
}
0x1ac5   : > { %s4939_s10 = scalar_lea.hbm %s3615_s4, 64  ;;  %s4943_s24 = scalar_lea.hbm %s5818_s23, 128 }
0x1ac6   : > { %p4940_p4 = scmp.ne.s32.totalorder %s3615_s4, %s4939_s10  ;;  %p4944_p12 = scmp.lt.s32.totalorder %s3615_s4, %s5818_s23 }
0x1ac7   : > { %p4945_p11 = scmp.lt.s32.totalorder %s4943_s24, %s4939_s10 }
0x1ac8   : > { %p4941_p9 = pnand %p4940_p4, %p5819_p7 }
0x1ac9   : > { %p4946_p2 = por %p4945_p11, %p4944_p12 }
0x1aca   : > { %p4942_p0 = pneg %p4941_p9 }
0x1acc   : > { %p4947_p6 = pnand %p4946_p2, %p4942_p0 }
0x1ace   : > { %4950 = shalt.err (!%p4947_p6)
}
0x1acf   : > { %4366 = dma.vmem_to_hbm [thread:$0]  (%p5819_p7), %s3618_s12, 64, %s3615_s4, %s3604_s20  }
0x1ad0 PF: > { %s5820_s30 = sld [smem:[#allocation25_spill]]  ;;  %p5823_p3 = scmp.ge.s32.totalorder %s5005_s27, 2 }
0x1ad1   : > { %s5821_s29 = sld [smem:[#allocation30_spill]] }
0x1ad6   : > { %s3629_s5 = sand.u32 1, %s5820_s30  }
0x1ad7   : > { %p5822_p8 = scmp.ne.s32.totalorder %s5821_s29, 0  ;;  %s3630_s28 = scalar_lea.sflag [#allocation5], %s3629_s5 }
0x1ad9   : > { %p4398_p13 = pnand %p5823_p3, %p5822_p8 }
0x1adb   : > { %p4399_p5 = pneg %p4398_p13 }
0x1add   : > { %4988 = dma.done.wait (%p4399_p5), %s3630_s28, 64  }
0x1ade   : > { %4990 = vsyncadd (%p4399_p5), %s3630_s28, 4294967232  ;;  %s5824_s27 = sld [smem:[#allocation27_spill]]  ;;  %s5827_s24 = smov %s4997_s25 }
0x1adf   : > { %s5825_s0 = sld [smem:[#allocation26_spill]] }
0x1ae0   : > { %s5826_s26 = sld [smem:[#allocation28_spill]] }
0x1ae4   : > { %p36_p1 = scmp.ge.s32.totalorder %s5824_s27, 4  }
0x1ae5   : > { %s5828_s25 = smov %s5825_s0 }
0x1ae6   :  { %38 = sbr.rel (!%p36_p1) target bundleno = 24 (0x18), region = 199 }
0x1aeb   :  { %3635 = vsyncpa [#allocation4], 1 }
0x1aec   :  { %3637 = vsyncpa [#allocation4 + $0x1], 1 }
0x1aed   :  { %3638 = vsyncpa [#allocation7], 1 }
0x1aee   :  { %3640 = vsyncpa [#allocation7 + $0x1], 1 }
0x1aef   :  { %3641 = vsyncpa [#allocation10], 1 }
0x1af0   :  { %3642 = vsyncpa [#allocation13], 1 }
0x1af1   :  { %3643 = vsyncpa [#allocation16], 1 }
0x1af2   :  { %3644 = vsyncpa [#allocation5], 1 }
0x1af3   :  { %3646 = vsyncpa [#allocation5 + $0x1], 1 }

</bundles_post_ra>
